<compile_context>
chip_gen: v6e
topology: v6e:2x2x1
jax: 0.10.0
libtpu: 0.0.40
codegen_flags: <defaults>
</compile_context>

<pallas_src>
import functools

import jax
import jax.numpy as jnp
from jax.experimental import pallas as pl
from jax.experimental.pallas import tpu as pltpu


# ----------------------------- config (small, synthetic) ----------------------
VOCAB_SIZE = 64
HIDDEN = 32
NUM_LAYERS = 2
NUM_HEADS = 4
HEAD_DIM = HIDDEN // NUM_HEADS
INTERMEDIATE = 64
MAX_POS = 16
TYPE_VOCAB = 2
NUM_LABELS = 2
LN_EPS = 1e-12

BATCH = 2
SEQ = 8

_VMEM = pl.BlockSpec(memory_space=pltpu.MemorySpace.VMEM)


# ----------------------------- in-kernel helpers ------------------------------
def _layernorm(x, g, b):
    """LayerNorm over last dim (f32).  x:[M,H]  g,b:[1,H]."""
    mu = jnp.mean(x, axis=-1, keepdims=True)
    xc = x - mu
    var = jnp.mean(xc * xc, axis=-1, keepdims=True)
    return xc * jax.lax.rsqrt(var + LN_EPS) * g + b


def _dense(x, w_bf16, b_f32):
    """act-free dense: bf16 MXU inputs, f32 accumulate.  x:[M,K] w:[K,N] b:[1,N]."""
    return jnp.dot(x.astype(jnp.bfloat16), w_bf16,
                   preferred_element_type=jnp.float32) + b_f32


def _gelu(y):
    # tanh-approximation GELU ('gelu_new').
    # TODO(synk): HF BERT default hidden_act='gelu' is exact erf GELU; tanh
    # approximation is used here (erf has no guaranteed Mosaic lowering).
    c = jnp.float32(0.7978845608028654)  # sqrt(2/pi)
    return 0.5 * y * (1.0 + jnp.tanh(c * (y + 0.044715 * y * y * y)))


# ----------------------------- fused forward kernel ---------------------------
def bert_fused_kernel(
    emb_ref, mask_ref,
    emb_ln_g_ref, emb_ln_b_ref,
    wqkv_ref, bqkv_ref, wo_ref, bo_ref, ln1_g_ref, ln1_b_ref,
    w1_ref, b1_ref, w2_ref, b2_ref, ln2_g_ref, ln2_b_ref,
    pooler_w_ref, pooler_b_ref, cls_w_ref, cls_b_ref,
    o_ref,
    ctx_scratch, qkv_scratch,
    *, batch, seq,
):
    """Whole-model forward: emb-LN -> L x (fused-QKV attn + add&LN + GELU FFN +
    add&LN) -> CLS pooler(tanh) -> classifier.  Everything VMEM-resident."""
    H, nH, D = HIDDEN, NUM_HEADS, HEAD_DIM
    scale = jnp.float32(1.0 / (D ** 0.5))

    # embeddings LayerNorm
    x = _layernorm(emb_ref[...], emb_ln_g_ref[...], emb_ln_b_ref[...])   # [B*S, H]

    # additive key mask, kept as a [B, S] row (broadcast per head inside loop)
    neg_bias = (1.0 - mask_ref[...]) * jnp.float32(-10000.0)             # [B, S]

    for l in range(NUM_LAYERS):
        # ---- fused QKV projection: one [B*S, H] x [H, 3H] matmul ----
        qkv_scratch[...] = _dense(x, wqkv_ref[l], bqkv_ref[l])           # [B*S, 3H]

        # ---- per-(batch, head) scaled-dot-product attention; heads are static
        #      column slices of the QKV scratch (no reshape/transpose glue) ----
        for b in range(batch):
            r0 = b * seq
            bias_b = neg_bias[b:b + 1, :]                                # [1, S]
            for hd in range(nH):
                c0 = hd * D
                q = qkv_scratch[r0:r0 + seq, c0:c0 + D]                  # [S, D]
                k = qkv_scratch[r0:r0 + seq, H + c0:H + c0 + D]          # [S, D]
                v = qkv_scratch[r0:r0 + seq, 2 * H + c0:2 * H + c0 + D]  # [S, D]

                # scores = q @ k^T (contract last dims; no explicit transpose)
                s = jax.lax.dot_general(q, k, (((1,), (1,)), ((), ())),
                                        preferred_element_type=jnp.float32)
                s = s * scale + bias_b
                s = s - jnp.max(s, axis=-1, keepdims=True)
                p = jnp.exp(s)
                p = p * pl.reciprocal(jnp.sum(p, axis=-1, keepdims=True),
                                      approx=True)
                ctx_scratch[r0:r0 + seq, c0:c0 + D] = jnp.dot(
                    p, v, preferred_element_type=jnp.float32)

        # ---- attention output projection + residual + LayerNorm (fused) ----
        attn_out = _dense(ctx_scratch[...], wo_ref[l], bo_ref[l])
        x = _layernorm(x + attn_out, ln1_g_ref[l], ln1_b_ref[l])

        # ---- FFN (GELU up, down) + residual + LayerNorm (fused) ----
        ff = _gelu(_dense(x, w1_ref[l], b1_ref[l]))
        ff = _dense(ff, w2_ref[l], b2_ref[l])
        x = _layernorm(x + ff, ln2_g_ref[l], ln2_b_ref[l])

    # ---- CLS pooling + pooler(tanh) + classifier, fused in-kernel ----
    for b in range(batch):
        ctx_scratch[b:b + 1, :] = x[b * seq:b * seq + 1, :]   # stage CLS rows
    cls = ctx_scratch[0:batch, :]                             # [B, H]
    pooled = jnp.tanh(_dense(cls, pooler_w_ref[...], pooler_b_ref[...]))
    o_ref[...] = _dense(pooled, cls_w_ref[...], cls_b_ref[...])   # [B, NUM_LABELS]

    # TODO(synk): dropout (training mode) is not modeled; this is inference parity.


# ----------------------------- parameters -------------------------------------
def init_params(key):
    """Parameters stored in kernel-ready form: per-layer tensors stacked on a
    leading layer axis, QKV weights pre-concatenated, weights pre-cast to bf16,
    biases / LN params kept f32 and already shaped [1, N]."""
    def nrm(k, shape):
        return (0.02 * jax.random.normal(k, shape)).astype(jnp.float32)

    keys = iter(jax.random.split(key, 8 + NUM_LAYERS * 8))
    H, I = HIDDEN, INTERMEDIATE

    p = {
        "word_emb": nrm(next(keys), (VOCAB_SIZE, H)),
        "pos_emb": nrm(next(keys), (MAX_POS, H)),
        "type_emb": nrm(next(keys), (TYPE_VOCAB, H)),
        "emb_ln_g": jnp.ones((1, H), jnp.float32),
        "emb_ln_b": jnp.zeros((1, H), jnp.float32),
        "pooler_w": nrm(next(keys), (H, H)).astype(jnp.bfloat16),
        "pooler_b": jnp.zeros((1, H), jnp.float32),
        "cls_w": nrm(next(keys), (H, NUM_LABELS)).astype(jnp.bfloat16),
        "cls_b": jnp.zeros((1, NUM_LABELS), jnp.float32),
    }

    wqkv, bqkv, wo, bo = [], [], [], []
    ln1_g, ln1_b, w1, b1, w2, b2, ln2_g, ln2_b = ([] for _ in range(8))
    for _ in range(NUM_LAYERS):
        wq, wk, wv = (nrm(next(keys), (H, H)) for _ in range(3))
        wqkv.append(jnp.concatenate([wq, wk, wv], axis=1))        # [H, 3H]
        bqkv.append(jnp.zeros((1, 3 * H), jnp.float32))
        wo.append(nrm(next(keys), (H, H)))
        bo.append(jnp.zeros((1, H), jnp.float32))
        ln1_g.append(jnp.ones((1, H), jnp.float32))
        ln1_b.append(jnp.zeros((1, H), jnp.float32))
        w1.append(nrm(next(keys), (H, I)))
        b1.append(jnp.zeros((1, I), jnp.float32))
        w2.append(nrm(next(keys), (I, H)))
        b2.append(jnp.zeros((1, H), jnp.float32))
        ln2_g.append(jnp.ones((1, H), jnp.float32))
        ln2_b.append(jnp.zeros((1, H), jnp.float32))

    p.update(
        wqkv=jnp.stack(wqkv).astype(jnp.bfloat16), bqkv=jnp.stack(bqkv),
        wo=jnp.stack(wo).astype(jnp.bfloat16), bo=jnp.stack(bo),
        ln1_g=jnp.stack(ln1_g), ln1_b=jnp.stack(ln1_b),
        w1=jnp.stack(w1).astype(jnp.bfloat16), b1=jnp.stack(b1),
        w2=jnp.stack(w2).astype(jnp.bfloat16), b2=jnp.stack(b2),
        ln2_g=jnp.stack(ln2_g), ln2_b=jnp.stack(ln2_b),
    )
    return p


# ----------------------------- model forward ----------------------------------
def sentiment_model_forward(params, input_ids, attention_mask, token_type_ids):
    B, S = input_ids.shape
    H = HIDDEN

    # --- embeddings (gather is JAX glue; everything downstream is one kernel) ---
    pos_ids = jnp.arange(S, dtype=jnp.int32)
    emb = (jnp.take(params["word_emb"], input_ids, axis=0)
           + jnp.take(params["pos_emb"], pos_ids, axis=0)[None, :, :]
           + jnp.take(params["type_emb"], token_type_ids, axis=0))
    emb = emb.reshape(B * S, H)
    mask = attention_mask.astype(jnp.float32)                    # [B, S]

    logits = pl.pallas_call(
        functools.partial(bert_fused_kernel, batch=B, seq=S),
        out_shape=jax.ShapeDtypeStruct((B, NUM_LABELS), jnp.float32),
        in_specs=[_VMEM] * 20,
        out_specs=_VMEM,
        scratch_shapes=[
            pltpu.VMEM((B * S, H), jnp.float32),        # per-layer attn context
            pltpu.VMEM((B * S, 3 * H), jnp.float32),    # fused QKV activations
        ],
    )(
        emb, mask,
        params["emb_ln_g"], params["emb_ln_b"],
        params["wqkv"], params["bqkv"], params["wo"], params["bo"],
        params["ln1_g"], params["ln1_b"],
        params["w1"], params["b1"], params["w2"], params["b2"],
        params["ln2_g"], params["ln2_b"],
        params["pooler_w"], params["pooler_b"], params["cls_w"], params["cls_b"],
    )

    # HF BertForSequenceClassification with return_dict=False returns a tuple
    return (logits,)


# ----------------------------- main -------------------------------------------
if __name__ == "__main__":
    key = jax.random.PRNGKey(0)
    pkey, ikey, tkey = jax.random.split(key, 3)

    params = init_params(pkey)

    input_ids = jax.random.randint(ikey, (BATCH, SEQ), 0, VOCAB_SIZE, dtype=jnp.int32)
    attention_mask = jnp.ones((BATCH, SEQ), dtype=jnp.int32).at[1, 6:].set(0)  # pad tail of 2nd ex
    token_type_ids = jnp.zeros((BATCH, SEQ), dtype=jnp.int32).at[:, 4:].set(1)

    fwd = jax.jit(functools.partial(sentiment_model_forward, params))
    (logits,) = fwd(input_ids, attention_mask, token_type_ids)
    jax.block_until_ready(logits)

    assert logits.shape == (BATCH, NUM_LABELS)
    assert logits.dtype == jnp.float32
    print("KERNEL_OK")
</pallas_src>

<mosaic_0001>
module attributes {stable_mosaic.version = 11 : i64} {
  func.func @bert_fused_kernel(%arg0: memref<16x32xf32, #tpu.memory_space<vmem>>, %arg1: memref<2x8xf32, #tpu.memory_space<vmem>>, %arg2: memref<1x32xf32, #tpu.memory_space<vmem>>, %arg3: memref<1x32xf32, #tpu.memory_space<vmem>>, %arg4: memref<2x32x96xbf16, #tpu.memory_space<vmem>>, %arg5: memref<2x1x96xf32, #tpu.memory_space<vmem>>, %arg6: memref<2x32x32xbf16, #tpu.memory_space<vmem>>, %arg7: memref<2x1x32xf32, #tpu.memory_space<vmem>>, %arg8: memref<2x1x32xf32, #tpu.memory_space<vmem>>, %arg9: memref<2x1x32xf32, #tpu.memory_space<vmem>>, %arg10: memref<2x32x64xbf16, #tpu.memory_space<vmem>>, %arg11: memref<2x1x64xf32, #tpu.memory_space<vmem>>, %arg12: memref<2x64x32xbf16, #tpu.memory_space<vmem>>, %arg13: memref<2x1x32xf32, #tpu.memory_space<vmem>>, %arg14: memref<2x1x32xf32, #tpu.memory_space<vmem>>, %arg15: memref<2x1x32xf32, #tpu.memory_space<vmem>>, %arg16: memref<32x32xbf16, #tpu.memory_space<vmem>>, %arg17: memref<1x32xf32, #tpu.memory_space<vmem>>, %arg18: memref<32x2xbf16, #tpu.memory_space<vmem>>, %arg19: memref<1x2xf32, #tpu.memory_space<vmem>>, %arg20: memref<2x2xf32, #tpu.memory_space<vmem>>, %arg21: memref<16x32xf32, #tpu.memory_space<vmem>>, %arg22: memref<16x96xf32, #tpu.memory_space<vmem>>) attributes {dimension_semantics = [], scalar_prefetch = 0 : i64, scratch_operands = 2 : i64, tpu.core_type = #tpu.core_type<tc>} {
    %c0 = arith.constant 0 : index
    %c0_0 = arith.constant 0 : index
    %0 = vector.load %arg0[%c0, %c0_0] : memref<16x32xf32, #tpu.memory_space<vmem>>, vector<16x32xf32>
    %c0_1 = arith.constant 0 : index
    %c0_2 = arith.constant 0 : index
    %1 = vector.load %arg2[%c0_1, %c0_2] : memref<1x32xf32, #tpu.memory_space<vmem>>, vector<1x32xf32>
    %c0_3 = arith.constant 0 : index
    %c0_4 = arith.constant 0 : index
    %2 = vector.load %arg3[%c0_3, %c0_4] : memref<1x32xf32, #tpu.memory_space<vmem>>, vector<1x32xf32>
    %cst = arith.constant dense<0.000000e+00> : vector<16xf32>
    %3 = vector.multi_reduction <add>, %0, %cst [1] : vector<16x32xf32> to vector<16xf32>
    %4 = vector.shape_cast %3 : vector<16xf32> to vector<16x1xf32>
    %cst_5 = arith.constant 3.200000e+01 : f32
    %5 = vector.broadcast %cst_5 : f32 to vector<16x1xf32>
    %6 = arith.divf %4, %5 : vector<16x1xf32>
    %7 = vector.broadcast %6 : vector<16x1xf32> to vector<16x32xf32>
    %8 = arith.subf %0, %7 : vector<16x32xf32>
    %9 = arith.mulf %8, %8 : vector<16x32xf32>
    %cst_6 = arith.constant dense<0.000000e+00> : vector<16xf32>
    %10 = vector.multi_reduction <add>, %9, %cst_6 [1] : vector<16x32xf32> to vector<16xf32>
    %11 = vector.shape_cast %10 : vector<16xf32> to vector<16x1xf32>
    %cst_7 = arith.constant 3.200000e+01 : f32
    %12 = vector.broadcast %cst_7 : f32 to vector<16x1xf32>
    %13 = arith.divf %11, %12 : vector<16x1xf32>
    %cst_8 = arith.constant 9.99999996E-13 : f32
    %14 = vector.broadcast %cst_8 : f32 to vector<16x1xf32>
    %15 = arith.addf %13, %14 : vector<16x1xf32>
    %16 = math.rsqrt %15 : vector<16x1xf32>
    %17 = vector.broadcast %16 : vector<16x1xf32> to vector<16x32xf32>
    %18 = arith.mulf %8, %17 : vector<16x32xf32>
    %19 = vector.broadcast %1 : vector<1x32xf32> to vector<16x32xf32>
    %20 = arith.mulf %18, %19 : vector<16x32xf32>
    %21 = vector.broadcast %2 : vector<1x32xf32> to vector<16x32xf32>
    %22 = arith.addf %20, %21 : vector<16x32xf32>
    %c0_9 = arith.constant 0 : index
    %c0_10 = arith.constant 0 : index
    %23 = vector.load %arg1[%c0_9, %c0_10] : memref<2x8xf32, #tpu.memory_space<vmem>>, vector<2x8xf32>
    %cst_11 = arith.constant 1.000000e+00 : f32
    %24 = vector.broadcast %cst_11 : f32 to vector<2x8xf32>
    %25 = arith.subf %24, %23 : vector<2x8xf32>
    %cst_12 = arith.constant -1.000000e+04 : f32
    %26 = vector.broadcast %cst_12 : f32 to vector<2x8xf32>
    %27 = arith.mulf %25, %26 : vector<2x8xf32>
    %c0_13 = arith.constant 0 : index
    %c0_14 = arith.constant 0 : index
    %c0_15 = arith.constant 0 : index
    %28 = vector.load %arg4[%c0_13, %c0_14, %c0_15] : memref<2x32x96xbf16, #tpu.memory_space<vmem>>, vector<1x32x96xbf16>
    %29 = vector.shape_cast %28 : vector<1x32x96xbf16> to vector<32x96xbf16>
    %c0_16 = arith.constant 0 : index
    %c0_17 = arith.constant 0 : index
    %c0_18 = arith.constant 0 : index
    %30 = vector.load %arg5[%c0_16, %c0_17, %c0_18] : memref<2x1x96xf32, #tpu.memory_space<vmem>>, vector<1x1x96xf32>
    %31 = vector.shape_cast %30 : vector<1x1x96xf32> to vector<1x96xf32>
    %32 = arith.truncf %22 : vector<16x32xf32> to vector<16x32xbf16>
    %cst_19 = arith.constant dense<0.000000e+00> : vector<16x96xf32>
    %33 = tpu.matmul %32, %29, %cst_19 {dimension_numbers = #tpu.dot_dimension_numbers<[1], [0], [0], [1], [0, 0, 1, 1], [], []>} : vector<16x32xbf16>, vector<32x96xbf16>, vector<16x96xf32> -> vector<16x96xf32>
    %34 = vector.broadcast %31 : vector<1x96xf32> to vector<16x96xf32>
    %35 = arith.addf %33, %34 : vector<16x96xf32>
    %c0_20 = arith.constant 0 : index
    %c0_21 = arith.constant 0 : index
    %36 = vector.load %arg22[%c0_20, %c0_21] : memref<16x96xf32, #tpu.memory_space<vmem>>, vector<16x96xf32>
    tpu.vector_store %arg22[%c0_20, %c0_21], %35 {strides = array<i32>} : memref<16x96xf32, #tpu.memory_space<vmem>>, vector<16x96xf32>,
    %37 = vector.extract_strided_slice %27 {offsets = [0, 0], sizes = [1, 8], strides = [1, 1]} : vector<2x8xf32> to vector<1x8xf32>
    %c0_22 = arith.constant 0 : index
    %c0_23 = arith.constant 0 : index
    %38 = vector.load %arg22[%c0_22, %c0_23] : memref<16x96xf32, #tpu.memory_space<vmem>>, vector<8x8xf32>
    %c0_24 = arith.constant 0 : index
    %c32 = arith.constant 32 : index
    %39 = vector.load %arg22[%c0_24, %c32] : memref<16x96xf32, #tpu.memory_space<vmem>>, vector<8x8xf32>
    %c0_25 = arith.constant 0 : index
    %c64 = arith.constant 64 : index
    %40 = vector.load %arg22[%c0_25, %c64] : memref<16x96xf32, #tpu.memory_space<vmem>>, vector<8x8xf32>
    %cst_26 = arith.constant dense<0.000000e+00> : vector<8x8xf32>
    %41 = tpu.matmul %38, %39, %cst_26 {dimension_numbers = #tpu.dot_dimension_numbers<[1], [1], [0], [0], [0, 0, 1, 0], [], []>} : vector<8x8xf32>, vector<8x8xf32>, vector<8x8xf32> -> vector<8x8xf32>
    %cst_27 = arith.constant 0.353553385 : f32
    %42 = vector.broadcast %cst_27 : f32 to vector<8x8xf32>
    %43 = arith.mulf %41, %42 : vector<8x8xf32>
    %44 = vector.broadcast %37 : vector<1x8xf32> to vector<8x8xf32>
    %45 = arith.addf %43, %44 : vector<8x8xf32>
    %cst_28 = arith.constant dense<0xFF800000> : vector<8xf32>
    %46 = vector.multi_reduction <maximumf>, %45, %cst_28 [1] : vector<8x8xf32> to vector<8xf32>
    %47 = vector.shape_cast %46 : vector<8xf32> to vector<8x1xf32>
    %48 = vector.broadcast %47 : vector<8x1xf32> to vector<8x8xf32>
    %49 = arith.subf %45, %48 : vector<8x8xf32>
    %50 = math.exp %49 : vector<8x8xf32>
    %cst_29 = arith.constant dense<0.000000e+00> : vector<8xf32>
    %51 = vector.multi_reduction <add>, %50, %cst_29 [1] : vector<8x8xf32> to vector<8xf32>
    %52 = vector.shape_cast %51 : vector<8xf32> to vector<8x1xf32>
    %53 = tpu.reciprocal %52 {approx = true} : vector<8x1xf32> -> vector<8x1xf32>
    %54 = vector.broadcast %53 : vector<8x1xf32> to vector<8x8xf32>
    %55 = arith.mulf %50, %54 : vector<8x8xf32>
    %cst_30 = arith.constant dense<0.000000e+00> : vector<8x8xf32>
    %56 = tpu.matmul %55, %40, %cst_30 {dimension_numbers = #tpu.dot_dimension_numbers<[1], [0], [0], [1], [0, 0, 1, 1], [], []>} : vector<8x8xf32>, vector<8x8xf32>, vector<8x8xf32> -> vector<8x8xf32>
    %c0_31 = arith.constant 0 : index
    %c0_32 = arith.constant 0 : index
    %57 = vector.load %arg21[%c0_31, %c0_32] : memref<16x32xf32, #tpu.memory_space<vmem>>, vector<8x8xf32>
    tpu.vector_store %arg21[%c0_31, %c0_32], %56 {strides = array<i32>} : memref<16x32xf32, #tpu.memory_space<vmem>>, vector<8x8xf32>,
    %c0_33 = arith.constant 0 : index
    %c8 = arith.constant 8 : index
    %58 = vector.load %arg22[%c0_33, %c8] : memref<16x96xf32, #tpu.memory_space<vmem>>, vector<8x8xf32>
    %c0_34 = arith.constant 0 : index
    %c40 = arith.constant 40 : index
    %59 = vector.load %arg22[%c0_34, %c40] : memref<16x96xf32, #tpu.memory_space<vmem>>, vector<8x8xf32>
    %c0_35 = arith.constant 0 : index
    %c72 = arith.constant 72 : index
    %60 = vector.load %arg22[%c0_35, %c72] : memref<16x96xf32, #tpu.memory_space<vmem>>, vector<8x8xf32>
    %cst_36 = arith.constant dense<0.000000e+00> : vector<8x8xf32>
    %61 = tpu.matmul %58, %59, %cst_36 {dimension_numbers = #tpu.dot_dimension_numbers<[1], [1], [0], [0], [0, 0, 1, 0], [], []>} : vector<8x8xf32>, vector<8x8xf32>, vector<8x8xf32> -> vector<8x8xf32>
    %cst_37 = arith.constant 0.353553385 : f32
    %62 = vector.broadcast %cst_37 : f32 to vector<8x8xf32>
    %63 = arith.mulf %61, %62 : vector<8x8xf32>
    %64 = vector.broadcast %37 : vector<1x8xf32> to vector<8x8xf32>
    %65 = arith.addf %63, %64 : vector<8x8xf32>
    %cst_38 = arith.constant dense<0xFF800000> : vector<8xf32>
    %66 = vector.multi_reduction <maximumf>, %65, %cst_38 [1] : vector<8x8xf32> to vector<8xf32>
    %67 = vector.shape_cast %66 : vector<8xf32> to vector<8x1xf32>
    %68 = vector.broadcast %67 : vector<8x1xf32> to vector<8x8xf32>
    %69 = arith.subf %65, %68 : vector<8x8xf32>
    %70 = math.exp %69 : vector<8x8xf32>
    %cst_39 = arith.constant dense<0.000000e+00> : vector<8xf32>
    %71 = vector.multi_reduction <add>, %70, %cst_39 [1] : vector<8x8xf32> to vector<8xf32>
    %72 = vector.shape_cast %71 : vector<8xf32> to vector<8x1xf32>
    %73 = tpu.reciprocal %72 {approx = true} : vector<8x1xf32> -> vector<8x1xf32>
    %74 = vector.broadcast %73 : vector<8x1xf32> to vector<8x8xf32>
    %75 = arith.mulf %70, %74 : vector<8x8xf32>
    %cst_40 = arith.constant dense<0.000000e+00> : vector<8x8xf32>
    %76 = tpu.matmul %75, %60, %cst_40 {dimension_numbers = #tpu.dot_dimension_numbers<[1], [0], [0], [1], [0, 0, 1, 1], [], []>} : vector<8x8xf32>, vector<8x8xf32>, vector<8x8xf32> -> vector<8x8xf32>
    %c0_41 = arith.constant 0 : index
    %c8_42 = arith.constant 8 : index
    %77 = vector.load %arg21[%c0_41, %c8_42] : memref<16x32xf32, #tpu.memory_space<vmem>>, vector<8x8xf32>
    tpu.vector_store %arg21[%c0_41, %c8_42], %76 {strides = array<i32>} : memref<16x32xf32, #tpu.memory_space<vmem>>, vector<8x8xf32>,
    %c0_43 = arith.constant 0 : index
    %c16 = arith.constant 16 : index
    %78 = vector.load %arg22[%c0_43, %c16] : memref<16x96xf32, #tpu.memory_space<vmem>>, vector<8x8xf32>
    %c0_44 = arith.constant 0 : index
    %c48 = arith.constant 48 : index
    %79 = vector.load %arg22[%c0_44, %c48] : memref<16x96xf32, #tpu.memory_space<vmem>>, vector<8x8xf32>
    %c0_45 = arith.constant 0 : index
    %c80 = arith.constant 80 : index
    %80 = vector.load %arg22[%c0_45, %c80] : memref<16x96xf32, #tpu.memory_space<vmem>>, vector<8x8xf32>
    %cst_46 = arith.constant dense<0.000000e+00> : vector<8x8xf32>
    %81 = tpu.matmul %78, %79, %cst_46 {dimension_numbers = #tpu.dot_dimension_numbers<[1], [1], [0], [0], [0, 0, 1, 0], [], []>} : vector<8x8xf32>, vector<8x8xf32>, vector<8x8xf32> -> vector<8x8xf32>
    %cst_47 = arith.constant 0.353553385 : f32
    %82 = vector.broadcast %cst_47 : f32 to vector<8x8xf32>
    %83 = arith.mulf %81, %82 : vector<8x8xf32>
    %84 = vector.broadcast %37 : vector<1x8xf32> to vector<8x8xf32>
    %85 = arith.addf %83, %84 : vector<8x8xf32>
    %cst_48 = arith.constant dense<0xFF800000> : vector<8xf32>
    %86 = vector.multi_reduction <maximumf>, %85, %cst_48 [1] : vector<8x8xf32> to vector<8xf32>
    %87 = vector.shape_cast %86 : vector<8xf32> to vector<8x1xf32>
    %88 = vector.broadcast %87 : vector<8x1xf32> to vector<8x8xf32>
    %89 = arith.subf %85, %88 : vector<8x8xf32>
    %90 = math.exp %89 : vector<8x8xf32>
    %cst_49 = arith.constant dense<0.000000e+00> : vector<8xf32>
    %91 = vector.multi_reduction <add>, %90, %cst_49 [1] : vector<8x8xf32> to vector<8xf32>
    %92 = vector.shape_cast %91 : vector<8xf32> to vector<8x1xf32>
    %93 = tpu.reciprocal %92 {approx = true} : vector<8x1xf32> -> vector<8x1xf32>
    %94 = vector.broadcast %93 : vector<8x1xf32> to vector<8x8xf32>
    %95 = arith.mulf %90, %94 : vector<8x8xf32>
    %cst_50 = arith.constant dense<0.000000e+00> : vector<8x8xf32>
    %96 = tpu.matmul %95, %80, %cst_50 {dimension_numbers = #tpu.dot_dimension_numbers<[1], [0], [0], [1], [0, 0, 1, 1], [], []>} : vector<8x8xf32>, vector<8x8xf32>, vector<8x8xf32> -> vector<8x8xf32>
    %c0_51 = arith.constant 0 : index
    %c16_52 = arith.constant 16 : index
    %97 = vector.load %arg21[%c0_51, %c16_52] : memref<16x32xf32, #tpu.memory_space<vmem>>, vector<8x8xf32>
    tpu.vector_store %arg21[%c0_51, %c16_52], %96 {strides = array<i32>} : memref<16x32xf32, #tpu.memory_space<vmem>>, vector<8x8xf32>,
    %c0_53 = arith.constant 0 : index
    %c24 = arith.constant 24 : index
    %98 = vector.load %arg22[%c0_53, %c24] : memref<16x96xf32, #tpu.memory_space<vmem>>, vector<8x8xf32>
    %c0_54 = arith.constant 0 : index
    %c56 = arith.constant 56 : index
    %99 = vector.load %arg22[%c0_54, %c56] : memref<16x96xf32, #tpu.memory_space<vmem>>, vector<8x8xf32>
    %c0_55 = arith.constant 0 : index
    %c88 = arith.constant 88 : index
    %100 = vector.load %arg22[%c0_55, %c88] : memref<16x96xf32, #tpu.memory_space<vmem>>, vector<8x8xf32>
    %cst_56 = arith.constant dense<0.000000e+00> : vector<8x8xf32>
    %101 = tpu.matmul %98, %99, %cst_56 {dimension_numbers = #tpu.dot_dimension_numbers<[1], [1], [0], [0], [0, 0, 1, 0], [], []>} : vector<8x8xf32>, vector<8x8xf32>, vector<8x8xf32> -> vector<8x8xf32>
    %cst_57 = arith.constant 0.353553385 : f32
    %102 = vector.broadcast %cst_57 : f32 to vector<8x8xf32>
    %103 = arith.mulf %101, %102 : vector<8x8xf32>
    %104 = vector.broadcast %37 : vector<1x8xf32> to vector<8x8xf32>
    %105 = arith.addf %103, %104 : vector<8x8xf32>
    %cst_58 = arith.constant dense<0xFF800000> : vector<8xf32>
    %106 = vector.multi_reduction <maximumf>, %105, %cst_58 [1] : vector<8x8xf32> to vector<8xf32>
    %107 = vector.shape_cast %106 : vector<8xf32> to vector<8x1xf32>
    %108 = vector.broadcast %107 : vector<8x1xf32> to vector<8x8xf32>
    %109 = arith.subf %105, %108 : vector<8x8xf32>
    %110 = math.exp %109 : vector<8x8xf32>
    %cst_59 = arith.constant dense<0.000000e+00> : vector<8xf32>
    %111 = vector.multi_reduction <add>, %110, %cst_59 [1] : vector<8x8xf32> to vector<8xf32>
    %112 = vector.shape_cast %111 : vector<8xf32> to vector<8x1xf32>
    %113 = tpu.reciprocal %112 {approx = true} : vector<8x1xf32> -> vector<8x1xf32>
    %114 = vector.broadcast %113 : vector<8x1xf32> to vector<8x8xf32>
    %115 = arith.mulf %110, %114 : vector<8x8xf32>
    %cst_60 = arith.constant dense<0.000000e+00> : vector<8x8xf32>
    %116 = tpu.matmul %115, %100, %cst_60 {dimension_numbers = #tpu.dot_dimension_numbers<[1], [0], [0], [1], [0, 0, 1, 1], [], []>} : vector<8x8xf32>, vector<8x8xf32>, vector<8x8xf32> -> vector<8x8xf32>
    %c0_61 = arith.constant 0 : index
    %c24_62 = arith.constant 24 : index
    %117 = vector.load %arg21[%c0_61, %c24_62] : memref<16x32xf32, #tpu.memory_space<vmem>>, vector<8x8xf32>
    tpu.vector_store %arg21[%c0_61, %c24_62], %116 {strides = array<i32>} : memref<16x32xf32, #tpu.memory_space<vmem>>, vector<8x8xf32>,
    %118 = vector.extract_strided_slice %27 {offsets = [1, 0], sizes = [1, 8], strides = [1, 1]} : vector<2x8xf32> to vector<1x8xf32>
    %c8_63 = arith.constant 8 : index
    %c0_64 = arith.constant 0 : index
    %119 = vector.load %arg22[%c8_63, %c0_64] : memref<16x96xf32, #tpu.memory_space<vmem>>, vector<8x8xf32>
    %c8_65 = arith.constant 8 : index
    %c32_66 = arith.constant 32 : index
    %120 = vector.load %arg22[%c8_65, %c32_66] : memref<16x96xf32, #tpu.memory_space<vmem>>, vector<8x8xf32>
    %c8_67 = arith.constant 8 : index
    %c64_68 = arith.constant 64 : index
    %121 = vector.load %arg22[%c8_67, %c64_68] : memref<16x96xf32, #tpu.memory_space<vmem>>, vector<8x8xf32>
    %cst_69 = arith.constant dense<0.000000e+00> : vector<8x8xf32>
    %122 = tpu.matmul %119, %120, %cst_69 {dimension_numbers = #tpu.dot_dimension_numbers<[1], [1], [0], [0], [0, 0, 1, 0], [], []>} : vector<8x8xf32>, vector<8x8xf32>, vector<8x8xf32> -> vector<8x8xf32>
    %cst_70 = arith.constant 0.353553385 : f32
    %123 = vector.broadcast %cst_70 : f32 to vector<8x8xf32>
    %124 = arith.mulf %122, %123 : vector<8x8xf32>
    %125 = vector.broadcast %118 : vector<1x8xf32> to vector<8x8xf32>
    %126 = arith.addf %124, %125 : vector<8x8xf32>
    %cst_71 = arith.constant dense<0xFF800000> : vector<8xf32>
    %127 = vector.multi_reduction <maximumf>, %126, %cst_71 [1] : vector<8x8xf32> to vector<8xf32>
    %128 = vector.shape_cast %127 : vector<8xf32> to vector<8x1xf32>
    %129 = vector.broadcast %128 : vector<8x1xf32> to vector<8x8xf32>
    %130 = arith.subf %126, %129 : vector<8x8xf32>
    %131 = math.exp %130 : vector<8x8xf32>
    %cst_72 = arith.constant dense<0.000000e+00> : vector<8xf32>
    %132 = vector.multi_reduction <add>, %131, %cst_72 [1] : vector<8x8xf32> to vector<8xf32>
    %133 = vector.shape_cast %132 : vector<8xf32> to vector<8x1xf32>
    %134 = tpu.reciprocal %133 {approx = true} : vector<8x1xf32> -> vector<8x1xf32>
    %135 = vector.broadcast %134 : vector<8x1xf32> to vector<8x8xf32>
    %136 = arith.mulf %131, %135 : vector<8x8xf32>
    %cst_73 = arith.constant dense<0.000000e+00> : vector<8x8xf32>
    %137 = tpu.matmul %136, %121, %cst_73 {dimension_numbers = #tpu.dot_dimension_numbers<[1], [0], [0], [1], [0, 0, 1, 1], [], []>} : vector<8x8xf32>, vector<8x8xf32>, vector<8x8xf32> -> vector<8x8xf32>
    %c8_74 = arith.constant 8 : index
    %c0_75 = arith.constant 0 : index
    %138 = vector.load %arg21[%c8_74, %c0_75] : memref<16x32xf32, #tpu.memory_space<vmem>>, vector<8x8xf32>
    tpu.vector_store %arg21[%c8_74, %c0_75], %137 {strides = array<i32>} : memref<16x32xf32, #tpu.memory_space<vmem>>, vector<8x8xf32>,
    %c8_76 = arith.constant 8 : index
    %c8_77 = arith.constant 8 : index
    %139 = vector.load %arg22[%c8_76, %c8_77] : memref<16x96xf32, #tpu.memory_space<vmem>>, vector<8x8xf32>
    %c8_78 = arith.constant 8 : index
    %c40_79 = arith.constant 40 : index
    %140 = vector.load %arg22[%c8_78, %c40_79] : memref<16x96xf32, #tpu.memory_space<vmem>>, vector<8x8xf32>
    %c8_80 = arith.constant 8 : index
    %c72_81 = arith.constant 72 : index
    %141 = vector.load %arg22[%c8_80, %c72_81] : memref<16x96xf32, #tpu.memory_space<vmem>>, vector<8x8xf32>
    %cst_82 = arith.constant dense<0.000000e+00> : vector<8x8xf32>
    %142 = tpu.matmul %139, %140, %cst_82 {dimension_numbers = #tpu.dot_dimension_numbers<[1], [1], [0], [0], [0, 0, 1, 0], [], []>} : vector<8x8xf32>, vector<8x8xf32>, vector<8x8xf32> -> vector<8x8xf32>
    %cst_83 = arith.constant 0.353553385 : f32
    %143 = vector.broadcast %cst_83 : f32 to vector<8x8xf32>
    %144 = arith.mulf %142, %143 : vector<8x8xf32>
    %145 = vector.broadcast %118 : vector<1x8xf32> to vector<8x8xf32>
    %146 = arith.addf %144, %145 : vector<8x8xf32>
    %cst_84 = arith.constant dense<0xFF800000> : vector<8xf32>
    %147 = vector.multi_reduction <maximumf>, %146, %cst_84 [1] : vector<8x8xf32> to vector<8xf32>
    %148 = vector.shape_cast %147 : vector<8xf32> to vector<8x1xf32>
    %149 = vector.broadcast %148 : vector<8x1xf32> to vector<8x8xf32>
    %150 = arith.subf %146, %149 : vector<8x8xf32>
    %151 = math.exp %150 : vector<8x8xf32>
    %cst_85 = arith.constant dense<0.000000e+00> : vector<8xf32>
    %152 = vector.multi_reduction <add>, %151, %cst_85 [1] : vector<8x8xf32> to vector<8xf32>
    %153 = vector.shape_cast %152 : vector<8xf32> to vector<8x1xf32>
    %154 = tpu.reciprocal %153 {approx = true} : vector<8x1xf32> -> vector<8x1xf32>
    %155 = vector.broadcast %154 : vector<8x1xf32> to vector<8x8xf32>
    %156 = arith.mulf %151, %155 : vector<8x8xf32>
    %cst_86 = arith.constant dense<0.000000e+00> : vector<8x8xf32>
    %157 = tpu.matmul %156, %141, %cst_86 {dimension_numbers = #tpu.dot_dimension_numbers<[1], [0], [0], [1], [0, 0, 1, 1], [], []>} : vector<8x8xf32>, vector<8x8xf32>, vector<8x8xf32> -> vector<8x8xf32>
    %c8_87 = arith.constant 8 : index
    %c8_88 = arith.constant 8 : index
    %158 = vector.load %arg21[%c8_87, %c8_88] : memref<16x32xf32, #tpu.memory_space<vmem>>, vector<8x8xf32>
    tpu.vector_store %arg21[%c8_87, %c8_88], %157 {strides = array<i32>} : memref<16x32xf32, #tpu.memory_space<vmem>>, vector<8x8xf32>,
    %c8_89 = arith.constant 8 : index
    %c16_90 = arith.constant 16 : index
    %159 = vector.load %arg22[%c8_89, %c16_90] : memref<16x96xf32, #tpu.memory_space<vmem>>, vector<8x8xf32>
    %c8_91 = arith.constant 8 : index
    %c48_92 = arith.constant 48 : index
    %160 = vector.load %arg22[%c8_91, %c48_92] : memref<16x96xf32, #tpu.memory_space<vmem>>, vector<8x8xf32>
    %c8_93 = arith.constant 8 : index
    %c80_94 = arith.constant 80 : index
    %161 = vector.load %arg22[%c8_93, %c80_94] : memref<16x96xf32, #tpu.memory_space<vmem>>, vector<8x8xf32>
    %cst_95 = arith.constant dense<0.000000e+00> : vector<8x8xf32>
    %162 = tpu.matmul %159, %160, %cst_95 {dimension_numbers = #tpu.dot_dimension_numbers<[1], [1], [0], [0], [0, 0, 1, 0], [], []>} : vector<8x8xf32>, vector<8x8xf32>, vector<8x8xf32> -> vector<8x8xf32>
    %cst_96 = arith.constant 0.353553385 : f32
    %163 = vector.broadcast %cst_96 : f32 to vector<8x8xf32>
    %164 = arith.mulf %162, %163 : vector<8x8xf32>
    %165 = vector.broadcast %118 : vector<1x8xf32> to vector<8x8xf32>
    %166 = arith.addf %164, %165 : vector<8x8xf32>
    %cst_97 = arith.constant dense<0xFF800000> : vector<8xf32>
    %167 = vector.multi_reduction <maximumf>, %166, %cst_97 [1] : vector<8x8xf32> to vector<8xf32>
    %168 = vector.shape_cast %167 : vector<8xf32> to vector<8x1xf32>
    %169 = vector.broadcast %168 : vector<8x1xf32> to vector<8x8xf32>
    %170 = arith.subf %166, %169 : vector<8x8xf32>
    %171 = math.exp %170 : vector<8x8xf32>
    %cst_98 = arith.constant dense<0.000000e+00> : vector<8xf32>
    %172 = vector.multi_reduction <add>, %171, %cst_98 [1] : vector<8x8xf32> to vector<8xf32>
    %173 = vector.shape_cast %172 : vector<8xf32> to vector<8x1xf32>
    %174 = tpu.reciprocal %173 {approx = true} : vector<8x1xf32> -> vector<8x1xf32>
    %175 = vector.broadcast %174 : vector<8x1xf32> to vector<8x8xf32>
    %176 = arith.mulf %171, %175 : vector<8x8xf32>
    %cst_99 = arith.constant dense<0.000000e+00> : vector<8x8xf32>
    %177 = tpu.matmul %176, %161, %cst_99 {dimension_numbers = #tpu.dot_dimension_numbers<[1], [0], [0], [1], [0, 0, 1, 1], [], []>} : vector<8x8xf32>, vector<8x8xf32>, vector<8x8xf32> -> vector<8x8xf32>
    %c8_100 = arith.constant 8 : index
    %c16_101 = arith.constant 16 : index
    %178 = vector.load %arg21[%c8_100, %c16_101] : memref<16x32xf32, #tpu.memory_space<vmem>>, vector<8x8xf32>
    tpu.vector_store %arg21[%c8_100, %c16_101], %177 {strides = array<i32>} : memref<16x32xf32, #tpu.memory_space<vmem>>, vector<8x8xf32>,
    %c8_102 = arith.constant 8 : index
    %c24_103 = arith.constant 24 : index
    %179 = vector.load %arg22[%c8_102, %c24_103] : memref<16x96xf32, #tpu.memory_space<vmem>>, vector<8x8xf32>
    %c8_104 = arith.constant 8 : index
    %c56_105 = arith.constant 56 : index
    %180 = vector.load %arg22[%c8_104, %c56_105] : memref<16x96xf32, #tpu.memory_space<vmem>>, vector<8x8xf32>
    %c8_106 = arith.constant 8 : index
    %c88_107 = arith.constant 88 : index
    %181 = vector.load %arg22[%c8_106, %c88_107] : memref<16x96xf32, #tpu.memory_space<vmem>>, vector<8x8xf32>
    %cst_108 = arith.constant dense<0.000000e+00> : vector<8x8xf32>
    %182 = tpu.matmul %179, %180, %cst_108 {dimension_numbers = #tpu.dot_dimension_numbers<[1], [1], [0], [0], [0, 0, 1, 0], [], []>} : vector<8x8xf32>, vector<8x8xf32>, vector<8x8xf32> -> vector<8x8xf32>
    %cst_109 = arith.constant 0.353553385 : f32
    %183 = vector.broadcast %cst_109 : f32 to vector<8x8xf32>
    %184 = arith.mulf %182, %183 : vector<8x8xf32>
    %185 = vector.broadcast %118 : vector<1x8xf32> to vector<8x8xf32>
    %186 = arith.addf %184, %185 : vector<8x8xf32>
    %cst_110 = arith.constant dense<0xFF800000> : vector<8xf32>
    %187 = vector.multi_reduction <maximumf>, %186, %cst_110 [1] : vector<8x8xf32> to vector<8xf32>
    %188 = vector.shape_cast %187 : vector<8xf32> to vector<8x1xf32>
    %189 = vector.broadcast %188 : vector<8x1xf32> to vector<8x8xf32>
    %190 = arith.subf %186, %189 : vector<8x8xf32>
    %191 = math.exp %190 : vector<8x8xf32>
    %cst_111 = arith.constant dense<0.000000e+00> : vector<8xf32>
    %192 = vector.multi_reduction <add>, %191, %cst_111 [1] : vector<8x8xf32> to vector<8xf32>
    %193 = vector.shape_cast %192 : vector<8xf32> to vector<8x1xf32>
    %194 = tpu.reciprocal %193 {approx = true} : vector<8x1xf32> -> vector<8x1xf32>
    %195 = vector.broadcast %194 : vector<8x1xf32> to vector<8x8xf32>
    %196 = arith.mulf %191, %195 : vector<8x8xf32>
    %cst_112 = arith.constant dense<0.000000e+00> : vector<8x8xf32>
    %197 = tpu.matmul %196, %181, %cst_112 {dimension_numbers = #tpu.dot_dimension_numbers<[1], [0], [0], [1], [0, 0, 1, 1], [], []>} : vector<8x8xf32>, vector<8x8xf32>, vector<8x8xf32> -> vector<8x8xf32>
    %c8_113 = arith.constant 8 : index
    %c24_114 = arith.constant 24 : index
    %198 = vector.load %arg21[%c8_113, %c24_114] : memref<16x32xf32, #tpu.memory_space<vmem>>, vector<8x8xf32>
    tpu.vector_store %arg21[%c8_113, %c24_114], %197 {strides = array<i32>} : memref<16x32xf32, #tpu.memory_space<vmem>>, vector<8x8xf32>,
    %c0_115 = arith.constant 0 : index
    %c0_116 = arith.constant 0 : index
    %199 = vector.load %arg21[%c0_115, %c0_116] : memref<16x32xf32, #tpu.memory_space<vmem>>, vector<16x32xf32>
    %c0_117 = arith.constant 0 : index
    %c0_118 = arith.constant 0 : index
    %c0_119 = arith.constant 0 : index
    %200 = vector.load %arg6[%c0_117, %c0_118, %c0_119] : memref<2x32x32xbf16, #tpu.memory_space<vmem>>, vector<1x32x32xbf16>
    %201 = vector.shape_cast %200 : vector<1x32x32xbf16> to vector<32x32xbf16>
    %c0_120 = arith.constant 0 : index
    %c0_121 = arith.constant 0 : index
    %c0_122 = arith.constant 0 : index
    %202 = vector.load %arg7[%c0_120, %c0_121, %c0_122] : memref<2x1x32xf32, #tpu.memory_space<vmem>>, vector<1x1x32xf32>
    %203 = vector.shape_cast %202 : vector<1x1x32xf32> to vector<1x32xf32>
    %204 = arith.truncf %199 : vector<16x32xf32> to vector<16x32xbf16>
    %cst_123 = arith.constant dense<0.000000e+00> : vector<16x32xf32>
    %205 = tpu.matmul %204, %201, %cst_123 {dimension_numbers = #tpu.dot_dimension_numbers<[1], [0], [0], [1], [0, 0, 1, 1], [], []>} : vector<16x32xbf16>, vector<32x32xbf16>, vector<16x32xf32> -> vector<16x32xf32>
    %206 = vector.broadcast %203 : vector<1x32xf32> to vector<16x32xf32>
    %207 = arith.addf %205, %206 : vector<16x32xf32>
    %208 = arith.addf %22, %207 : vector<16x32xf32>
    %c0_124 = arith.constant 0 : index
    %c0_125 = arith.constant 0 : index
    %c0_126 = arith.constant 0 : index
    %209 = vector.load %arg8[%c0_124, %c0_125, %c0_126] : memref<2x1x32xf32, #tpu.memory_space<vmem>>, vector<1x1x32xf32>
    %210 = vector.shape_cast %209 : vector<1x1x32xf32> to vector<1x32xf32>
    %c0_127 = arith.constant 0 : index
    %c0_128 = arith.constant 0 : index
    %c0_129 = arith.constant 0 : index
    %211 = vector.load %arg9[%c0_127, %c0_128, %c0_129] : memref<2x1x32xf32, #tpu.memory_space<vmem>>, vector<1x1x32xf32>
    %212 = vector.shape_cast %211 : vector<1x1x32xf32> to vector<1x32xf32>
    %cst_130 = arith.constant dense<0.000000e+00> : vector<16xf32>
    %213 = vector.multi_reduction <add>, %208, %cst_130 [1] : vector<16x32xf32> to vector<16xf32>
    %214 = vector.shape_cast %213 : vector<16xf32> to vector<16x1xf32>
    %cst_131 = arith.constant 3.200000e+01 : f32
    %215 = vector.broadcast %cst_131 : f32 to vector<16x1xf32>
    %216 = arith.divf %214, %215 : vector<16x1xf32>
    %217 = vector.broadcast %216 : vector<16x1xf32> to vector<16x32xf32>
    %218 = arith.subf %208, %217 : vector<16x32xf32>
    %219 = arith.mulf %218, %218 : vector<16x32xf32>
    %cst_132 = arith.constant dense<0.000000e+00> : vector<16xf32>
    %220 = vector.multi_reduction <add>, %219, %cst_132 [1] : vector<16x32xf32> to vector<16xf32>
    %221 = vector.shape_cast %220 : vector<16xf32> to vector<16x1xf32>
    %cst_133 = arith.constant 3.200000e+01 : f32
    %222 = vector.broadcast %cst_133 : f32 to vector<16x1xf32>
    %223 = arith.divf %221, %222 : vector<16x1xf32>
    %cst_134 = arith.constant 9.99999996E-13 : f32
    %224 = vector.broadcast %cst_134 : f32 to vector<16x1xf32>
    %225 = arith.addf %223, %224 : vector<16x1xf32>
    %226 = math.rsqrt %225 : vector<16x1xf32>
    %227 = vector.broadcast %226 : vector<16x1xf32> to vector<16x32xf32>
    %228 = arith.mulf %218, %227 : vector<16x32xf32>
    %229 = vector.broadcast %210 : vector<1x32xf32> to vector<16x32xf32>
    %230 = arith.mulf %228, %229 : vector<16x32xf32>
    %231 = vector.broadcast %212 : vector<1x32xf32> to vector<16x32xf32>
    %232 = arith.addf %230, %231 : vector<16x32xf32>
    %c0_135 = arith.constant 0 : index
    %c0_136 = arith.constant 0 : index
    %c0_137 = arith.constant 0 : index
    %233 = vector.load %arg10[%c0_135, %c0_136, %c0_137] : memref<2x32x64xbf16, #tpu.memory_space<vmem>>, vector<1x32x64xbf16>
    %234 = vector.shape_cast %233 : vector<1x32x64xbf16> to vector<32x64xbf16>
    %c0_138 = arith.constant 0 : index
    %c0_139 = arith.constant 0 : index
    %c0_140 = arith.constant 0 : index
    %235 = vector.load %arg11[%c0_138, %c0_139, %c0_140] : memref<2x1x64xf32, #tpu.memory_space<vmem>>, vector<1x1x64xf32>
    %236 = vector.shape_cast %235 : vector<1x1x64xf32> to vector<1x64xf32>
    %237 = arith.truncf %232 : vector<16x32xf32> to vector<16x32xbf16>
    %cst_141 = arith.constant dense<0.000000e+00> : vector<16x64xf32>
    %238 = tpu.matmul %237, %234, %cst_141 {dimension_numbers = #tpu.dot_dimension_numbers<[1], [0], [0], [1], [0, 0, 1, 1], [], []>} : vector<16x32xbf16>, vector<32x64xbf16>, vector<16x64xf32> -> vector<16x64xf32>
    %239 = vector.broadcast %236 : vector<1x64xf32> to vector<16x64xf32>
    %240 = arith.addf %238, %239 : vector<16x64xf32>
    %cst_142 = arith.constant 5.000000e-01 : f32
    %241 = vector.broadcast %cst_142 : f32 to vector<16x64xf32>
    %242 = arith.mulf %241, %240 : vector<16x64xf32>
    %cst_143 = arith.constant 4.471500e-02 : f32
    %243 = vector.broadcast %cst_143 : f32 to vector<16x64xf32>
    %244 = arith.mulf %243, %240 : vector<16x64xf32>
    %245 = arith.mulf %244, %240 : vector<16x64xf32>
    %246 = arith.mulf %245, %240 : vector<16x64xf32>
    %247 = arith.addf %240, %246 : vector<16x64xf32>
    %cst_144 = arith.constant 0.797884583 : f32
    %248 = vector.broadcast %cst_144 : f32 to vector<16x64xf32>
    %249 = arith.mulf %248, %247 : vector<16x64xf32>
    %250 = math.tanh %249 : vector<16x64xf32>
    %cst_145 = arith.constant 1.000000e+00 : f32
    %251 = vector.broadcast %cst_145 : f32 to vector<16x64xf32>
    %252 = arith.addf %251, %250 : vector<16x64xf32>
    %253 = arith.mulf %242, %252 : vector<16x64xf32>
    %c0_146 = arith.constant 0 : index
    %c0_147 = arith.constant 0 : index
    %c0_148 = arith.constant 0 : index
    %254 = vector.load %arg12[%c0_146, %c0_147, %c0_148] : memref<2x64x32xbf16, #tpu.memory_space<vmem>>, vector<1x64x32xbf16>
    %255 = vector.shape_cast %254 : vector<1x64x32xbf16> to vector<64x32xbf16>
    %c0_149 = arith.constant 0 : index
    %c0_150 = arith.constant 0 : index
    %c0_151 = arith.constant 0 : index
    %256 = vector.load %arg13[%c0_149, %c0_150, %c0_151] : memref<2x1x32xf32, #tpu.memory_space<vmem>>, vector<1x1x32xf32>
    %257 = vector.shape_cast %256 : vector<1x1x32xf32> to vector<1x32xf32>
    %258 = arith.truncf %253 : vector<16x64xf32> to vector<16x64xbf16>
    %cst_152 = arith.constant dense<0.000000e+00> : vector<16x32xf32>
    %259 = tpu.matmul %258, %255, %cst_152 {dimension_numbers = #tpu.dot_dimension_numbers<[1], [0], [0], [1], [0, 0, 1, 1], [], []>} : vector<16x64xbf16>, vector<64x32xbf16>, vector<16x32xf32> -> vector<16x32xf32>
    %260 = vector.broadcast %257 : vector<1x32xf32> to vector<16x32xf32>
    %261 = arith.addf %259, %260 : vector<16x32xf32>
    %262 = arith.addf %232, %261 : vector<16x32xf32>
    %c0_153 = arith.constant 0 : index
    %c0_154 = arith.constant 0 : index
    %c0_155 = arith.constant 0 : index
    %263 = vector.load %arg14[%c0_153, %c0_154, %c0_155] : memref<2x1x32xf32, #tpu.memory_space<vmem>>, vector<1x1x32xf32>
    %264 = vector.shape_cast %263 : vector<1x1x32xf32> to vector<1x32xf32>
    %c0_156 = arith.constant 0 : index
    %c0_157 = arith.constant 0 : index
    %c0_158 = arith.constant 0 : index
    %265 = vector.load %arg15[%c0_156, %c0_157, %c0_158] : memref<2x1x32xf32, #tpu.memory_space<vmem>>, vector<1x1x32xf32>
    %266 = vector.shape_cast %265 : vector<1x1x32xf32> to vector<1x32xf32>
    %cst_159 = arith.constant dense<0.000000e+00> : vector<16xf32>
    %267 = vector.multi_reduction <add>, %262, %cst_159 [1] : vector<16x32xf32> to vector<16xf32>
    %268 = vector.shape_cast %267 : vector<16xf32> to vector<16x1xf32>
    %cst_160 = arith.constant 3.200000e+01 : f32
    %269 = vector.broadcast %cst_160 : f32 to vector<16x1xf32>
    %270 = arith.divf %268, %269 : vector<16x1xf32>
    %271 = vector.broadcast %270 : vector<16x1xf32> to vector<16x32xf32>
    %272 = arith.subf %262, %271 : vector<16x32xf32>
    %273 = arith.mulf %272, %272 : vector<16x32xf32>
    %cst_161 = arith.constant dense<0.000000e+00> : vector<16xf32>
    %274 = vector.multi_reduction <add>, %273, %cst_161 [1] : vector<16x32xf32> to vector<16xf32>
    %275 = vector.shape_cast %274 : vector<16xf32> to vector<16x1xf32>
    %cst_162 = arith.constant 3.200000e+01 : f32
    %276 = vector.broadcast %cst_162 : f32 to vector<16x1xf32>
    %277 = arith.divf %275, %276 : vector<16x1xf32>
    %cst_163 = arith.constant 9.99999996E-13 : f32
    %278 = vector.broadcast %cst_163 : f32 to vector<16x1xf32>
    %279 = arith.addf %277, %278 : vector<16x1xf32>
    %280 = math.rsqrt %279 : vector<16x1xf32>
    %281 = vector.broadcast %280 : vector<16x1xf32> to vector<16x32xf32>
    %282 = arith.mulf %272, %281 : vector<16x32xf32>
    %283 = vector.broadcast %264 : vector<1x32xf32> to vector<16x32xf32>
    %284 = arith.mulf %282, %283 : vector<16x32xf32>
    %285 = vector.broadcast %266 : vector<1x32xf32> to vector<16x32xf32>
    %286 = arith.addf %284, %285 : vector<16x32xf32>
    %c1 = arith.constant 1 : index
    %c0_164 = arith.constant 0 : index
    %c0_165 = arith.constant 0 : index
    %287 = vector.load %arg4[%c1, %c0_164, %c0_165] : memref<2x32x96xbf16, #tpu.memory_space<vmem>>, vector<1x32x96xbf16>
    %288 = vector.shape_cast %287 : vector<1x32x96xbf16> to vector<32x96xbf16>
    %c1_166 = arith.constant 1 : index
    %c0_167 = arith.constant 0 : index
    %c0_168 = arith.constant 0 : index
    %289 = vector.load %arg5[%c1_166, %c0_167, %c0_168] : memref<2x1x96xf32, #tpu.memory_space<vmem>>, vector<1x1x96xf32>
    %290 = vector.shape_cast %289 : vector<1x1x96xf32> to vector<1x96xf32>
    %291 = arith.truncf %286 : vector<16x32xf32> to vector<16x32xbf16>
    %cst_169 = arith.constant dense<0.000000e+00> : vector<16x96xf32>
    %292 = tpu.matmul %291, %288, %cst_169 {dimension_numbers = #tpu.dot_dimension_numbers<[1], [0], [0], [1], [0, 0, 1, 1], [], []>} : vector<16x32xbf16>, vector<32x96xbf16>, vector<16x96xf32> -> vector<16x96xf32>
    %293 = vector.broadcast %290 : vector<1x96xf32> to vector<16x96xf32>
    %294 = arith.addf %292, %293 : vector<16x96xf32>
    %c0_170 = arith.constant 0 : index
    %c0_171 = arith.constant 0 : index
    %295 = vector.load %arg22[%c0_170, %c0_171] : memref<16x96xf32, #tpu.memory_space<vmem>>, vector<16x96xf32>
    tpu.vector_store %arg22[%c0_170, %c0_171], %294 {strides = array<i32>} : memref<16x96xf32, #tpu.memory_space<vmem>>, vector<16x96xf32>,
    %296 = vector.extract_strided_slice %27 {offsets = [0, 0], sizes = [1, 8], strides = [1, 1]} : vector<2x8xf32> to vector<1x8xf32>
    %c0_172 = arith.constant 0 : index
    %c0_173 = arith.constant 0 : index
    %297 = vector.load %arg22[%c0_172, %c0_173] : memref<16x96xf32, #tpu.memory_space<vmem>>, vector<8x8xf32>
    %c0_174 = arith.constant 0 : index
    %c32_175 = arith.constant 32 : index
    %298 = vector.load %arg22[%c0_174, %c32_175] : memref<16x96xf32, #tpu.memory_space<vmem>>, vector<8x8xf32>
    %c0_176 = arith.constant 0 : index
    %c64_177 = arith.constant 64 : index
    %299 = vector.load %arg22[%c0_176, %c64_177] : memref<16x96xf32, #tpu.memory_space<vmem>>, vector<8x8xf32>
    %cst_178 = arith.constant dense<0.000000e+00> : vector<8x8xf32>
    %300 = tpu.matmul %297, %298, %cst_178 {dimension_numbers = #tpu.dot_dimension_numbers<[1], [1], [0], [0], [0, 0, 1, 0], [], []>} : vector<8x8xf32>, vector<8x8xf32>, vector<8x8xf32> -> vector<8x8xf32>
    %cst_179 = arith.constant 0.353553385 : f32
    %301 = vector.broadcast %cst_179 : f32 to vector<8x8xf32>
    %302 = arith.mulf %300, %301 : vector<8x8xf32>
    %303 = vector.broadcast %296 : vector<1x8xf32> to vector<8x8xf32>
    %304 = arith.addf %302, %303 : vector<8x8xf32>
    %cst_180 = arith.constant dense<0xFF800000> : vector<8xf32>
    %305 = vector.multi_reduction <maximumf>, %304, %cst_180 [1] : vector<8x8xf32> to vector<8xf32>
    %306 = vector.shape_cast %305 : vector<8xf32> to vector<8x1xf32>
    %307 = vector.broadcast %306 : vector<8x1xf32> to vector<8x8xf32>
    %308 = arith.subf %304, %307 : vector<8x8xf32>
    %309 = math.exp %308 : vector<8x8xf32>
    %cst_181 = arith.constant dense<0.000000e+00> : vector<8xf32>
    %310 = vector.multi_reduction <add>, %309, %cst_181 [1] : vector<8x8xf32> to vector<8xf32>
    %311 = vector.shape_cast %310 : vector<8xf32> to vector<8x1xf32>
    %312 = tpu.reciprocal %311 {approx = true} : vector<8x1xf32> -> vector<8x1xf32>
    %313 = vector.broadcast %312 : vector<8x1xf32> to vector<8x8xf32>
    %314 = arith.mulf %309, %313 : vector<8x8xf32>
    %cst_182 = arith.constant dense<0.000000e+00> : vector<8x8xf32>
    %315 = tpu.matmul %314, %299, %cst_182 {dimension_numbers = #tpu.dot_dimension_numbers<[1], [0], [0], [1], [0, 0, 1, 1], [], []>} : vector<8x8xf32>, vector<8x8xf32>, vector<8x8xf32> -> vector<8x8xf32>
    %c0_183 = arith.constant 0 : index
    %c0_184 = arith.constant 0 : index
    %316 = vector.load %arg21[%c0_183, %c0_184] : memref<16x32xf32, #tpu.memory_space<vmem>>, vector<8x8xf32>
    tpu.vector_store %arg21[%c0_183, %c0_184], %315 {strides = array<i32>} : memref<16x32xf32, #tpu.memory_space<vmem>>, vector<8x8xf32>,
    %c0_185 = arith.constant 0 : index
    %c8_186 = arith.constant 8 : index
    %317 = vector.load %arg22[%c0_185, %c8_186] : memref<16x96xf32, #tpu.memory_space<vmem>>, vector<8x8xf32>
    %c0_187 = arith.constant 0 : index
    %c40_188 = arith.constant 40 : index
    %318 = vector.load %arg22[%c0_187, %c40_188] : memref<16x96xf32, #tpu.memory_space<vmem>>, vector<8x8xf32>
    %c0_189 = arith.constant 0 : index
    %c72_190 = arith.constant 72 : index
    %319 = vector.load %arg22[%c0_189, %c72_190] : memref<16x96xf32, #tpu.memory_space<vmem>>, vector<8x8xf32>
    %cst_191 = arith.constant dense<0.000000e+00> : vector<8x8xf32>
    %320 = tpu.matmul %317, %318, %cst_191 {dimension_numbers = #tpu.dot_dimension_numbers<[1], [1], [0], [0], [0, 0, 1, 0], [], []>} : vector<8x8xf32>, vector<8x8xf32>, vector<8x8xf32> -> vector<8x8xf32>
    %cst_192 = arith.constant 0.353553385 : f32
    %321 = vector.broadcast %cst_192 : f32 to vector<8x8xf32>
    %322 = arith.mulf %320, %321 : vector<8x8xf32>
    %323 = vector.broadcast %296 : vector<1x8xf32> to vector<8x8xf32>
    %324 = arith.addf %322, %323 : vector<8x8xf32>
    %cst_193 = arith.constant dense<0xFF800000> : vector<8xf32>
    %325 = vector.multi_reduction <maximumf>, %324, %cst_193 [1] : vector<8x8xf32> to vector<8xf32>
    %326 = vector.shape_cast %325 : vector<8xf32> to vector<8x1xf32>
    %327 = vector.broadcast %326 : vector<8x1xf32> to vector<8x8xf32>
    %328 = arith.subf %324, %327 : vector<8x8xf32>
    %329 = math.exp %328 : vector<8x8xf32>
    %cst_194 = arith.constant dense<0.000000e+00> : vector<8xf32>
    %330 = vector.multi_reduction <add>, %329, %cst_194 [1] : vector<8x8xf32> to vector<8xf32>
    %331 = vector.shape_cast %330 : vector<8xf32> to vector<8x1xf32>
    %332 = tpu.reciprocal %331 {approx = true} : vector<8x1xf32> -> vector<8x1xf32>
    %333 = vector.broadcast %332 : vector<8x1xf32> to vector<8x8xf32>
    %334 = arith.mulf %329, %333 : vector<8x8xf32>
    %cst_195 = arith.constant dense<0.000000e+00> : vector<8x8xf32>
    %335 = tpu.matmul %334, %319, %cst_195 {dimension_numbers = #tpu.dot_dimension_numbers<[1], [0], [0], [1], [0, 0, 1, 1], [], []>} : vector<8x8xf32>, vector<8x8xf32>, vector<8x8xf32> -> vector<8x8xf32>
    %c0_196 = arith.constant 0 : index
    %c8_197 = arith.constant 8 : index
    %336 = vector.load %arg21[%c0_196, %c8_197] : memref<16x32xf32, #tpu.memory_space<vmem>>, vector<8x8xf32>
    tpu.vector_store %arg21[%c0_196, %c8_197], %335 {strides = array<i32>} : memref<16x32xf32, #tpu.memory_space<vmem>>, vector<8x8xf32>,
    %c0_198 = arith.constant 0 : index
    %c16_199 = arith.constant 16 : index
    %337 = vector.load %arg22[%c0_198, %c16_199] : memref<16x96xf32, #tpu.memory_space<vmem>>, vector<8x8xf32>
    %c0_200 = arith.constant 0 : index
    %c48_201 = arith.constant 48 : index
    %338 = vector.load %arg22[%c0_200, %c48_201] : memref<16x96xf32, #tpu.memory_space<vmem>>, vector<8x8xf32>
    %c0_202 = arith.constant 0 : index
    %c80_203 = arith.constant 80 : index
    %339 = vector.load %arg22[%c0_202, %c80_203] : memref<16x96xf32, #tpu.memory_space<vmem>>, vector<8x8xf32>
    %cst_204 = arith.constant dense<0.000000e+00> : vector<8x8xf32>
    %340 = tpu.matmul %337, %338, %cst_204 {dimension_numbers = #tpu.dot_dimension_numbers<[1], [1], [0], [0], [0, 0, 1, 0], [], []>} : vector<8x8xf32>, vector<8x8xf32>, vector<8x8xf32> -> vector<8x8xf32>
    %cst_205 = arith.constant 0.353553385 : f32
    %341 = vector.broadcast %cst_205 : f32 to vector<8x8xf32>
    %342 = arith.mulf %340, %341 : vector<8x8xf32>
    %343 = vector.broadcast %296 : vector<1x8xf32> to vector<8x8xf32>
    %344 = arith.addf %342, %343 : vector<8x8xf32>
    %cst_206 = arith.constant dense<0xFF800000> : vector<8xf32>
    %345 = vector.multi_reduction <maximumf>, %344, %cst_206 [1] : vector<8x8xf32> to vector<8xf32>
    %346 = vector.shape_cast %345 : vector<8xf32> to vector<8x1xf32>
    %347 = vector.broadcast %346 : vector<8x1xf32> to vector<8x8xf32>
    %348 = arith.subf %344, %347 : vector<8x8xf32>
    %349 = math.exp %348 : vector<8x8xf32>
    %cst_207 = arith.constant dense<0.000000e+00> : vector<8xf32>
    %350 = vector.multi_reduction <add>, %349, %cst_207 [1] : vector<8x8xf32> to vector<8xf32>
    %351 = vector.shape_cast %350 : vector<8xf32> to vector<8x1xf32>
    %352 = tpu.reciprocal %351 {approx = true} : vector<8x1xf32> -> vector<8x1xf32>
    %353 = vector.broadcast %352 : vector<8x1xf32> to vector<8x8xf32>
    %354 = arith.mulf %349, %353 : vector<8x8xf32>
    %cst_208 = arith.constant dense<0.000000e+00> : vector<8x8xf32>
    %355 = tpu.matmul %354, %339, %cst_208 {dimension_numbers = #tpu.dot_dimension_numbers<[1], [0], [0], [1], [0, 0, 1, 1], [], []>} : vector<8x8xf32>, vector<8x8xf32>, vector<8x8xf32> -> vector<8x8xf32>
    %c0_209 = arith.constant 0 : index
    %c16_210 = arith.constant 16 : index
    %356 = vector.load %arg21[%c0_209, %c16_210] : memref<16x32xf32, #tpu.memory_space<vmem>>, vector<8x8xf32>
    tpu.vector_store %arg21[%c0_209, %c16_210], %355 {strides = array<i32>} : memref<16x32xf32, #tpu.memory_space<vmem>>, vector<8x8xf32>,
    %c0_211 = arith.constant 0 : index
    %c24_212 = arith.constant 24 : index
    %357 = vector.load %arg22[%c0_211, %c24_212] : memref<16x96xf32, #tpu.memory_space<vmem>>, vector<8x8xf32>
    %c0_213 = arith.constant 0 : index
    %c56_214 = arith.constant 56 : index
    %358 = vector.load %arg22[%c0_213, %c56_214] : memref<16x96xf32, #tpu.memory_space<vmem>>, vector<8x8xf32>
    %c0_215 = arith.constant 0 : index
    %c88_216 = arith.constant 88 : index
    %359 = vector.load %arg22[%c0_215, %c88_216] : memref<16x96xf32, #tpu.memory_space<vmem>>, vector<8x8xf32>
    %cst_217 = arith.constant dense<0.000000e+00> : vector<8x8xf32>
    %360 = tpu.matmul %357, %358, %cst_217 {dimension_numbers = #tpu.dot_dimension_numbers<[1], [1], [0], [0], [0, 0, 1, 0], [], []>} : vector<8x8xf32>, vector<8x8xf32>, vector<8x8xf32> -> vector<8x8xf32>
    %cst_218 = arith.constant 0.353553385 : f32
    %361 = vector.broadcast %cst_218 : f32 to vector<8x8xf32>
    %362 = arith.mulf %360, %361 : vector<8x8xf32>
    %363 = vector.broadcast %296 : vector<1x8xf32> to vector<8x8xf32>
    %364 = arith.addf %362, %363 : vector<8x8xf32>
    %cst_219 = arith.constant dense<0xFF800000> : vector<8xf32>
    %365 = vector.multi_reduction <maximumf>, %364, %cst_219 [1] : vector<8x8xf32> to vector<8xf32>
    %366 = vector.shape_cast %365 : vector<8xf32> to vector<8x1xf32>
    %367 = vector.broadcast %366 : vector<8x1xf32> to vector<8x8xf32>
    %368 = arith.subf %364, %367 : vector<8x8xf32>
    %369 = math.exp %368 : vector<8x8xf32>
    %cst_220 = arith.constant dense<0.000000e+00> : vector<8xf32>
    %370 = vector.multi_reduction <add>, %369, %cst_220 [1] : vector<8x8xf32> to vector<8xf32>
    %371 = vector.shape_cast %370 : vector<8xf32> to vector<8x1xf32>
    %372 = tpu.reciprocal %371 {approx = true} : vector<8x1xf32> -> vector<8x1xf32>
    %373 = vector.broadcast %372 : vector<8x1xf32> to vector<8x8xf32>
    %374 = arith.mulf %369, %373 : vector<8x8xf32>
    %cst_221 = arith.constant dense<0.000000e+00> : vector<8x8xf32>
    %375 = tpu.matmul %374, %359, %cst_221 {dimension_numbers = #tpu.dot_dimension_numbers<[1], [0], [0], [1], [0, 0, 1, 1], [], []>} : vector<8x8xf32>, vector<8x8xf32>, vector<8x8xf32> -> vector<8x8xf32>
    %c0_222 = arith.constant 0 : index
    %c24_223 = arith.constant 24 : index
    %376 = vector.load %arg21[%c0_222, %c24_223] : memref<16x32xf32, #tpu.memory_space<vmem>>, vector<8x8xf32>
    tpu.vector_store %arg21[%c0_222, %c24_223], %375 {strides = array<i32>} : memref<16x32xf32, #tpu.memory_space<vmem>>, vector<8x8xf32>,
    %377 = vector.extract_strided_slice %27 {offsets = [1, 0], sizes = [1, 8], strides = [1, 1]} : vector<2x8xf32> to vector<1x8xf32>
    %c8_224 = arith.constant 8 : index
    %c0_225 = arith.constant 0 : index
    %378 = vector.load %arg22[%c8_224, %c0_225] : memref<16x96xf32, #tpu.memory_space<vmem>>, vector<8x8xf32>
    %c8_226 = arith.constant 8 : index
    %c32_227 = arith.constant 32 : index
    %379 = vector.load %arg22[%c8_226, %c32_227] : memref<16x96xf32, #tpu.memory_space<vmem>>, vector<8x8xf32>
    %c8_228 = arith.constant 8 : index
    %c64_229 = arith.constant 64 : index
    %380 = vector.load %arg22[%c8_228, %c64_229] : memref<16x96xf32, #tpu.memory_space<vmem>>, vector<8x8xf32>
    %cst_230 = arith.constant dense<0.000000e+00> : vector<8x8xf32>
    %381 = tpu.matmul %378, %379, %cst_230 {dimension_numbers = #tpu.dot_dimension_numbers<[1], [1], [0], [0], [0, 0, 1, 0], [], []>} : vector<8x8xf32>, vector<8x8xf32>, vector<8x8xf32> -> vector<8x8xf32>
    %cst_231 = arith.constant 0.353553385 : f32
    %382 = vector.broadcast %cst_231 : f32 to vector<8x8xf32>
    %383 = arith.mulf %381, %382 : vector<8x8xf32>
    %384 = vector.broadcast %377 : vector<1x8xf32> to vector<8x8xf32>
    %385 = arith.addf %383, %384 : vector<8x8xf32>
    %cst_232 = arith.constant dense<0xFF800000> : vector<8xf32>
    %386 = vector.multi_reduction <maximumf>, %385, %cst_232 [1] : vector<8x8xf32> to vector<8xf32>
    %387 = vector.shape_cast %386 : vector<8xf32> to vector<8x1xf32>
    %388 = vector.broadcast %387 : vector<8x1xf32> to vector<8x8xf32>
    %389 = arith.subf %385, %388 : vector<8x8xf32>
    %390 = math.exp %389 : vector<8x8xf32>
    %cst_233 = arith.constant dense<0.000000e+00> : vector<8xf32>
    %391 = vector.multi_reduction <add>, %390, %cst_233 [1] : vector<8x8xf32> to vector<8xf32>
    %392 = vector.shape_cast %391 : vector<8xf32> to vector<8x1xf32>
    %393 = tpu.reciprocal %392 {approx = true} : vector<8x1xf32> -> vector<8x1xf32>
    %394 = vector.broadcast %393 : vector<8x1xf32> to vector<8x8xf32>
    %395 = arith.mulf %390, %394 : vector<8x8xf32>
    %cst_234 = arith.constant dense<0.000000e+00> : vector<8x8xf32>
    %396 = tpu.matmul %395, %380, %cst_234 {dimension_numbers = #tpu.dot_dimension_numbers<[1], [0], [0], [1], [0, 0, 1, 1], [], []>} : vector<8x8xf32>, vector<8x8xf32>, vector<8x8xf32> -> vector<8x8xf32>
    %c8_235 = arith.constant 8 : index
    %c0_236 = arith.constant 0 : index
    %397 = vector.load %arg21[%c8_235, %c0_236] : memref<16x32xf32, #tpu.memory_space<vmem>>, vector<8x8xf32>
    tpu.vector_store %arg21[%c8_235, %c0_236], %396 {strides = array<i32>} : memref<16x32xf32, #tpu.memory_space<vmem>>, vector<8x8xf32>,
    %c8_237 = arith.constant 8 : index
    %c8_238 = arith.constant 8 : index
    %398 = vector.load %arg22[%c8_237, %c8_238] : memref<16x96xf32, #tpu.memory_space<vmem>>, vector<8x8xf32>
    %c8_239 = arith.constant 8 : index
    %c40_240 = arith.constant 40 : index
    %399 = vector.load %arg22[%c8_239, %c40_240] : memref<16x96xf32, #tpu.memory_space<vmem>>, vector<8x8xf32>
    %c8_241 = arith.constant 8 : index
    %c72_242 = arith.constant 72 : index
    %400 = vector.load %arg22[%c8_241, %c72_242] : memref<16x96xf32, #tpu.memory_space<vmem>>, vector<8x8xf32>
    %cst_243 = arith.constant dense<0.000000e+00> : vector<8x8xf32>
    %401 = tpu.matmul %398, %399, %cst_243 {dimension_numbers = #tpu.dot_dimension_numbers<[1], [1], [0], [0], [0, 0, 1, 0], [], []>} : vector<8x8xf32>, vector<8x8xf32>, vector<8x8xf32> -> vector<8x8xf32>
    %cst_244 = arith.constant 0.353553385 : f32
    %402 = vector.broadcast %cst_244 : f32 to vector<8x8xf32>
    %403 = arith.mulf %401, %402 : vector<8x8xf32>
    %404 = vector.broadcast %377 : vector<1x8xf32> to vector<8x8xf32>
    %405 = arith.addf %403, %404 : vector<8x8xf32>
    %cst_245 = arith.constant dense<0xFF800000> : vector<8xf32>
    %406 = vector.multi_reduction <maximumf>, %405, %cst_245 [1] : vector<8x8xf32> to vector<8xf32>
    %407 = vector.shape_cast %406 : vector<8xf32> to vector<8x1xf32>
    %408 = vector.broadcast %407 : vector<8x1xf32> to vector<8x8xf32>
    %409 = arith.subf %405, %408 : vector<8x8xf32>
    %410 = math.exp %409 : vector<8x8xf32>
    %cst_246 = arith.constant dense<0.000000e+00> : vector<8xf32>
    %411 = vector.multi_reduction <add>, %410, %cst_246 [1] : vector<8x8xf32> to vector<8xf32>
    %412 = vector.shape_cast %411 : vector<8xf32> to vector<8x1xf32>
    %413 = tpu.reciprocal %412 {approx = true} : vector<8x1xf32> -> vector<8x1xf32>
    %414 = vector.broadcast %413 : vector<8x1xf32> to vector<8x8xf32>
    %415 = arith.mulf %410, %414 : vector<8x8xf32>
    %cst_247 = arith.constant dense<0.000000e+00> : vector<8x8xf32>
    %416 = tpu.matmul %415, %400, %cst_247 {dimension_numbers = #tpu.dot_dimension_numbers<[1], [0], [0], [1], [0, 0, 1, 1], [], []>} : vector<8x8xf32>, vector<8x8xf32>, vector<8x8xf32> -> vector<8x8xf32>
    %c8_248 = arith.constant 8 : index
    %c8_249 = arith.constant 8 : index
    %417 = vector.load %arg21[%c8_248, %c8_249] : memref<16x32xf32, #tpu.memory_space<vmem>>, vector<8x8xf32>
    tpu.vector_store %arg21[%c8_248, %c8_249], %416 {strides = array<i32>} : memref<16x32xf32, #tpu.memory_space<vmem>>, vector<8x8xf32>,
    %c8_250 = arith.constant 8 : index
    %c16_251 = arith.constant 16 : index
    %418 = vector.load %arg22[%c8_250, %c16_251] : memref<16x96xf32, #tpu.memory_space<vmem>>, vector<8x8xf32>
    %c8_252 = arith.constant 8 : index
    %c48_253 = arith.constant 48 : index
    %419 = vector.load %arg22[%c8_252, %c48_253] : memref<16x96xf32, #tpu.memory_space<vmem>>, vector<8x8xf32>
    %c8_254 = arith.constant 8 : index
    %c80_255 = arith.constant 80 : index
    %420 = vector.load %arg22[%c8_254, %c80_255] : memref<16x96xf32, #tpu.memory_space<vmem>>, vector<8x8xf32>
    %cst_256 = arith.constant dense<0.000000e+00> : vector<8x8xf32>
    %421 = tpu.matmul %418, %419, %cst_256 {dimension_numbers = #tpu.dot_dimension_numbers<[1], [1], [0], [0], [0, 0, 1, 0], [], []>} : vector<8x8xf32>, vector<8x8xf32>, vector<8x8xf32> -> vector<8x8xf32>
    %cst_257 = arith.constant 0.353553385 : f32
    %422 = vector.broadcast %cst_257 : f32 to vector<8x8xf32>
    %423 = arith.mulf %421, %422 : vector<8x8xf32>
    %424 = vector.broadcast %377 : vector<1x8xf32> to vector<8x8xf32>
    %425 = arith.addf %423, %424 : vector<8x8xf32>
    %cst_258 = arith.constant dense<0xFF800000> : vector<8xf32>
    %426 = vector.multi_reduction <maximumf>, %425, %cst_258 [1] : vector<8x8xf32> to vector<8xf32>
    %427 = vector.shape_cast %426 : vector<8xf32> to vector<8x1xf32>
    %428 = vector.broadcast %427 : vector<8x1xf32> to vector<8x8xf32>
    %429 = arith.subf %425, %428 : vector<8x8xf32>
    %430 = math.exp %429 : vector<8x8xf32>
    %cst_259 = arith.constant dense<0.000000e+00> : vector<8xf32>
    %431 = vector.multi_reduction <add>, %430, %cst_259 [1] : vector<8x8xf32> to vector<8xf32>
    %432 = vector.shape_cast %431 : vector<8xf32> to vector<8x1xf32>
    %433 = tpu.reciprocal %432 {approx = true} : vector<8x1xf32> -> vector<8x1xf32>
    %434 = vector.broadcast %433 : vector<8x1xf32> to vector<8x8xf32>
    %435 = arith.mulf %430, %434 : vector<8x8xf32>
    %cst_260 = arith.constant dense<0.000000e+00> : vector<8x8xf32>
    %436 = tpu.matmul %435, %420, %cst_260 {dimension_numbers = #tpu.dot_dimension_numbers<[1], [0], [0], [1], [0, 0, 1, 1], [], []>} : vector<8x8xf32>, vector<8x8xf32>, vector<8x8xf32> -> vector<8x8xf32>
    %c8_261 = arith.constant 8 : index
    %c16_262 = arith.constant 16 : index
    %437 = vector.load %arg21[%c8_261, %c16_262] : memref<16x32xf32, #tpu.memory_space<vmem>>, vector<8x8xf32>
    tpu.vector_store %arg21[%c8_261, %c16_262], %436 {strides = array<i32>} : memref<16x32xf32, #tpu.memory_space<vmem>>, vector<8x8xf32>,
    %c8_263 = arith.constant 8 : index
    %c24_264 = arith.constant 24 : index
    %438 = vector.load %arg22[%c8_263, %c24_264] : memref<16x96xf32, #tpu.memory_space<vmem>>, vector<8x8xf32>
    %c8_265 = arith.constant 8 : index
    %c56_266 = arith.constant 56 : index
    %439 = vector.load %arg22[%c8_265, %c56_266] : memref<16x96xf32, #tpu.memory_space<vmem>>, vector<8x8xf32>
    %c8_267 = arith.constant 8 : index
    %c88_268 = arith.constant 88 : index
    %440 = vector.load %arg22[%c8_267, %c88_268] : memref<16x96xf32, #tpu.memory_space<vmem>>, vector<8x8xf32>
    %cst_269 = arith.constant dense<0.000000e+00> : vector<8x8xf32>
    %441 = tpu.matmul %438, %439, %cst_269 {dimension_numbers = #tpu.dot_dimension_numbers<[1], [1], [0], [0], [0, 0, 1, 0], [], []>} : vector<8x8xf32>, vector<8x8xf32>, vector<8x8xf32> -> vector<8x8xf32>
    %cst_270 = arith.constant 0.353553385 : f32
    %442 = vector.broadcast %cst_270 : f32 to vector<8x8xf32>
    %443 = arith.mulf %441, %442 : vector<8x8xf32>
    %444 = vector.broadcast %377 : vector<1x8xf32> to vector<8x8xf32>
    %445 = arith.addf %443, %444 : vector<8x8xf32>
    %cst_271 = arith.constant dense<0xFF800000> : vector<8xf32>
    %446 = vector.multi_reduction <maximumf>, %445, %cst_271 [1] : vector<8x8xf32> to vector<8xf32>
    %447 = vector.shape_cast %446 : vector<8xf32> to vector<8x1xf32>
    %448 = vector.broadcast %447 : vector<8x1xf32> to vector<8x8xf32>
    %449 = arith.subf %445, %448 : vector<8x8xf32>
    %450 = math.exp %449 : vector<8x8xf32>
    %cst_272 = arith.constant dense<0.000000e+00> : vector<8xf32>
    %451 = vector.multi_reduction <add>, %450, %cst_272 [1] : vector<8x8xf32> to vector<8xf32>
    %452 = vector.shape_cast %451 : vector<8xf32> to vector<8x1xf32>
    %453 = tpu.reciprocal %452 {approx = true} : vector<8x1xf32> -> vector<8x1xf32>
    %454 = vector.broadcast %453 : vector<8x1xf32> to vector<8x8xf32>
    %455 = arith.mulf %450, %454 : vector<8x8xf32>
    %cst_273 = arith.constant dense<0.000000e+00> : vector<8x8xf32>
    %456 = tpu.matmul %455, %440, %cst_273 {dimension_numbers = #tpu.dot_dimension_numbers<[1], [0], [0], [1], [0, 0, 1, 1], [], []>} : vector<8x8xf32>, vector<8x8xf32>, vector<8x8xf32> -> vector<8x8xf32>
    %c8_274 = arith.constant 8 : index
    %c24_275 = arith.constant 24 : index
    %457 = vector.load %arg21[%c8_274, %c24_275] : memref<16x32xf32, #tpu.memory_space<vmem>>, vector<8x8xf32>
    tpu.vector_store %arg21[%c8_274, %c24_275], %456 {strides = array<i32>} : memref<16x32xf32, #tpu.memory_space<vmem>>, vector<8x8xf32>,
    %c0_276 = arith.constant 0 : index
    %c0_277 = arith.constant 0 : index
    %458 = vector.load %arg21[%c0_276, %c0_277] : memref<16x32xf32, #tpu.memory_space<vmem>>, vector<16x32xf32>
    %c1_278 = arith.constant 1 : index
    %c0_279 = arith.constant 0 : index
    %c0_280 = arith.constant 0 : index
    %459 = vector.load %arg6[%c1_278, %c0_279, %c0_280] : memref<2x32x32xbf16, #tpu.memory_space<vmem>>, vector<1x32x32xbf16>
    %460 = vector.shape_cast %459 : vector<1x32x32xbf16> to vector<32x32xbf16>
    %c1_281 = arith.constant 1 : index
    %c0_282 = arith.constant 0 : index
    %c0_283 = arith.constant 0 : index
    %461 = vector.load %arg7[%c1_281, %c0_282, %c0_283] : memref<2x1x32xf32, #tpu.memory_space<vmem>>, vector<1x1x32xf32>
    %462 = vector.shape_cast %461 : vector<1x1x32xf32> to vector<1x32xf32>
    %463 = arith.truncf %458 : vector<16x32xf32> to vector<16x32xbf16>
    %cst_284 = arith.constant dense<0.000000e+00> : vector<16x32xf32>
    %464 = tpu.matmul %463, %460, %cst_284 {dimension_numbers = #tpu.dot_dimension_numbers<[1], [0], [0], [1], [0, 0, 1, 1], [], []>} : vector<16x32xbf16>, vector<32x32xbf16>, vector<16x32xf32> -> vector<16x32xf32>
    %465 = vector.broadcast %462 : vector<1x32xf32> to vector<16x32xf32>
    %466 = arith.addf %464, %465 : vector<16x32xf32>
    %467 = arith.addf %286, %466 : vector<16x32xf32>
    %c1_285 = arith.constant 1 : index
    %c0_286 = arith.constant 0 : index
    %c0_287 = arith.constant 0 : index
    %468 = vector.load %arg8[%c1_285, %c0_286, %c0_287] : memref<2x1x32xf32, #tpu.memory_space<vmem>>, vector<1x1x32xf32>
    %469 = vector.shape_cast %468 : vector<1x1x32xf32> to vector<1x32xf32>
    %c1_288 = arith.constant 1 : index
    %c0_289 = arith.constant 0 : index
    %c0_290 = arith.constant 0 : index
    %470 = vector.load %arg9[%c1_288, %c0_289, %c0_290] : memref<2x1x32xf32, #tpu.memory_space<vmem>>, vector<1x1x32xf32>
    %471 = vector.shape_cast %470 : vector<1x1x32xf32> to vector<1x32xf32>
    %cst_291 = arith.constant dense<0.000000e+00> : vector<16xf32>
    %472 = vector.multi_reduction <add>, %467, %cst_291 [1] : vector<16x32xf32> to vector<16xf32>
    %473 = vector.shape_cast %472 : vector<16xf32> to vector<16x1xf32>
    %cst_292 = arith.constant 3.200000e+01 : f32
    %474 = vector.broadcast %cst_292 : f32 to vector<16x1xf32>
    %475 = arith.divf %473, %474 : vector<16x1xf32>
    %476 = vector.broadcast %475 : vector<16x1xf32> to vector<16x32xf32>
    %477 = arith.subf %467, %476 : vector<16x32xf32>
    %478 = arith.mulf %477, %477 : vector<16x32xf32>
    %cst_293 = arith.constant dense<0.000000e+00> : vector<16xf32>
    %479 = vector.multi_reduction <add>, %478, %cst_293 [1] : vector<16x32xf32> to vector<16xf32>
    %480 = vector.shape_cast %479 : vector<16xf32> to vector<16x1xf32>
    %cst_294 = arith.constant 3.200000e+01 : f32
    %481 = vector.broadcast %cst_294 : f32 to vector<16x1xf32>
    %482 = arith.divf %480, %481 : vector<16x1xf32>
    %cst_295 = arith.constant 9.99999996E-13 : f32
    %483 = vector.broadcast %cst_295 : f32 to vector<16x1xf32>
    %484 = arith.addf %482, %483 : vector<16x1xf32>
    %485 = math.rsqrt %484 : vector<16x1xf32>
    %486 = vector.broadcast %485 : vector<16x1xf32> to vector<16x32xf32>
    %487 = arith.mulf %477, %486 : vector<16x32xf32>
    %488 = vector.broadcast %469 : vector<1x32xf32> to vector<16x32xf32>
    %489 = arith.mulf %487, %488 : vector<16x32xf32>
    %490 = vector.broadcast %471 : vector<1x32xf32> to vector<16x32xf32>
    %491 = arith.addf %489, %490 : vector<16x32xf32>
    %c1_296 = arith.constant 1 : index
    %c0_297 = arith.constant 0 : index
    %c0_298 = arith.constant 0 : index
    %492 = vector.load %arg10[%c1_296, %c0_297, %c0_298] : memref<2x32x64xbf16, #tpu.memory_space<vmem>>, vector<1x32x64xbf16>
    %493 = vector.shape_cast %492 : vector<1x32x64xbf16> to vector<32x64xbf16>
    %c1_299 = arith.constant 1 : index
    %c0_300 = arith.constant 0 : index
    %c0_301 = arith.constant 0 : index
    %494 = vector.load %arg11[%c1_299, %c0_300, %c0_301] : memref<2x1x64xf32, #tpu.memory_space<vmem>>, vector<1x1x64xf32>
    %495 = vector.shape_cast %494 : vector<1x1x64xf32> to vector<1x64xf32>
    %496 = arith.truncf %491 : vector<16x32xf32> to vector<16x32xbf16>
    %cst_302 = arith.constant dense<0.000000e+00> : vector<16x64xf32>
    %497 = tpu.matmul %496, %493, %cst_302 {dimension_numbers = #tpu.dot_dimension_numbers<[1], [0], [0], [1], [0, 0, 1, 1], [], []>} : vector<16x32xbf16>, vector<32x64xbf16>, vector<16x64xf32> -> vector<16x64xf32>
    %498 = vector.broadcast %495 : vector<1x64xf32> to vector<16x64xf32>
    %499 = arith.addf %497, %498 : vector<16x64xf32>
    %cst_303 = arith.constant 5.000000e-01 : f32
    %500 = vector.broadcast %cst_303 : f32 to vector<16x64xf32>
    %501 = arith.mulf %500, %499 : vector<16x64xf32>
    %cst_304 = arith.constant 4.471500e-02 : f32
    %502 = vector.broadcast %cst_304 : f32 to vector<16x64xf32>
    %503 = arith.mulf %502, %499 : vector<16x64xf32>
    %504 = arith.mulf %503, %499 : vector<16x64xf32>
    %505 = arith.mulf %504, %499 : vector<16x64xf32>
    %506 = arith.addf %499, %505 : vector<16x64xf32>
    %cst_305 = arith.constant 0.797884583 : f32
    %507 = vector.broadcast %cst_305 : f32 to vector<16x64xf32>
    %508 = arith.mulf %507, %506 : vector<16x64xf32>
    %509 = math.tanh %508 : vector<16x64xf32>
    %cst_306 = arith.constant 1.000000e+00 : f32
    %510 = vector.broadcast %cst_306 : f32 to vector<16x64xf32>
    %511 = arith.addf %510, %509 : vector<16x64xf32>
    %512 = arith.mulf %501, %511 : vector<16x64xf32>
    %c1_307 = arith.constant 1 : index
    %c0_308 = arith.constant 0 : index
    %c0_309 = arith.constant 0 : index
    %513 = vector.load %arg12[%c1_307, %c0_308, %c0_309] : memref<2x64x32xbf16, #tpu.memory_space<vmem>>, vector<1x64x32xbf16>
    %514 = vector.shape_cast %513 : vector<1x64x32xbf16> to vector<64x32xbf16>
    %c1_310 = arith.constant 1 : index
    %c0_311 = arith.constant 0 : index
    %c0_312 = arith.constant 0 : index
    %515 = vector.load %arg13[%c1_310, %c0_311, %c0_312] : memref<2x1x32xf32, #tpu.memory_space<vmem>>, vector<1x1x32xf32>
    %516 = vector.shape_cast %515 : vector<1x1x32xf32> to vector<1x32xf32>
    %517 = arith.truncf %512 : vector<16x64xf32> to vector<16x64xbf16>
    %cst_313 = arith.constant dense<0.000000e+00> : vector<16x32xf32>
    %518 = tpu.matmul %517, %514, %cst_313 {dimension_numbers = #tpu.dot_dimension_numbers<[1], [0], [0], [1], [0, 0, 1, 1], [], []>} : vector<16x64xbf16>, vector<64x32xbf16>, vector<16x32xf32> -> vector<16x32xf32>
    %519 = vector.broadcast %516 : vector<1x32xf32> to vector<16x32xf32>
    %520 = arith.addf %518, %519 : vector<16x32xf32>
    %521 = arith.addf %491, %520 : vector<16x32xf32>
    %c1_314 = arith.constant 1 : index
    %c0_315 = arith.constant 0 : index
    %c0_316 = arith.constant 0 : index
    %522 = vector.load %arg14[%c1_314, %c0_315, %c0_316] : memref<2x1x32xf32, #tpu.memory_space<vmem>>, vector<1x1x32xf32>
    %523 = vector.shape_cast %522 : vector<1x1x32xf32> to vector<1x32xf32>
    %c1_317 = arith.constant 1 : index
    %c0_318 = arith.constant 0 : index
    %c0_319 = arith.constant 0 : index
    %524 = vector.load %arg15[%c1_317, %c0_318, %c0_319] : memref<2x1x32xf32, #tpu.memory_space<vmem>>, vector<1x1x32xf32>
    %525 = vector.shape_cast %524 : vector<1x1x32xf32> to vector<1x32xf32>
    %cst_320 = arith.constant dense<0.000000e+00> : vector<16xf32>
    %526 = vector.multi_reduction <add>, %521, %cst_320 [1] : vector<16x32xf32> to vector<16xf32>
    %527 = vector.shape_cast %526 : vector<16xf32> to vector<16x1xf32>
    %cst_321 = arith.constant 3.200000e+01 : f32
    %528 = vector.broadcast %cst_321 : f32 to vector<16x1xf32>
    %529 = arith.divf %527, %528 : vector<16x1xf32>
    %530 = vector.broadcast %529 : vector<16x1xf32> to vector<16x32xf32>
    %531 = arith.subf %521, %530 : vector<16x32xf32>
    %532 = arith.mulf %531, %531 : vector<16x32xf32>
    %cst_322 = arith.constant dense<0.000000e+00> : vector<16xf32>
    %533 = vector.multi_reduction <add>, %532, %cst_322 [1] : vector<16x32xf32> to vector<16xf32>
    %534 = vector.shape_cast %533 : vector<16xf32> to vector<16x1xf32>
    %cst_323 = arith.constant 3.200000e+01 : f32
    %535 = vector.broadcast %cst_323 : f32 to vector<16x1xf32>
    %536 = arith.divf %534, %535 : vector<16x1xf32>
    %cst_324 = arith.constant 9.99999996E-13 : f32
    %537 = vector.broadcast %cst_324 : f32 to vector<16x1xf32>
    %538 = arith.addf %536, %537 : vector<16x1xf32>
    %539 = math.rsqrt %538 : vector<16x1xf32>
    %540 = vector.broadcast %539 : vector<16x1xf32> to vector<16x32xf32>
    %541 = arith.mulf %531, %540 : vector<16x32xf32>
    %542 = vector.broadcast %523 : vector<1x32xf32> to vector<16x32xf32>
    %543 = arith.mulf %541, %542 : vector<16x32xf32>
    %544 = vector.broadcast %525 : vector<1x32xf32> to vector<16x32xf32>
    %545 = arith.addf %543, %544 : vector<16x32xf32>
    %546 = vector.extract_strided_slice %545 {offsets = [0, 0], sizes = [1, 32], strides = [1, 1]} : vector<16x32xf32> to vector<1x32xf32>
    %c0_325 = arith.constant 0 : index
    %c0_326 = arith.constant 0 : index
    %547 = vector.load %arg21[%c0_325, %c0_326] : memref<16x32xf32, #tpu.memory_space<vmem>>, vector<1x32xf32>
    tpu.vector_store %arg21[%c0_325, %c0_326], %546 {strides = array<i32>} : memref<16x32xf32, #tpu.memory_space<vmem>>, vector<1x32xf32>,
    %548 = vector.extract_strided_slice %545 {offsets = [8, 0], sizes = [1, 32], strides = [1, 1]} : vector<16x32xf32> to vector<1x32xf32>
    %c1_327 = arith.constant 1 : index
    %c0_328 = arith.constant 0 : index
    %549 = vector.load %arg21[%c1_327, %c0_328] : memref<16x32xf32, #tpu.memory_space<vmem>>, vector<1x32xf32>
    tpu.vector_store %arg21[%c1_327, %c0_328], %548 {strides = array<i32>} : memref<16x32xf32, #tpu.memory_space<vmem>>, vector<1x32xf32>,
    %c0_329 = arith.constant 0 : index
    %c0_330 = arith.constant 0 : index
    %550 = vector.load %arg21[%c0_329, %c0_330] : memref<16x32xf32, #tpu.memory_space<vmem>>, vector<2x32xf32>
    %c0_331 = arith.constant 0 : index
    %c0_332 = arith.constant 0 : index
    %551 = vector.load %arg16[%c0_331, %c0_332] : memref<32x32xbf16, #tpu.memory_space<vmem>>, vector<32x32xbf16>
    %c0_333 = arith.constant 0 : index
    %c0_334 = arith.constant 0 : index
    %552 = vector.load %arg17[%c0_333, %c0_334] : memref<1x32xf32, #tpu.memory_space<vmem>>, vector<1x32xf32>
    %553 = arith.truncf %550 : vector<2x32xf32> to vector<2x32xbf16>
    %cst_335 = arith.constant dense<0.000000e+00> : vector<2x32xf32>
    %554 = tpu.matmul %553, %551, %cst_335 {dimension_numbers = #tpu.dot_dimension_numbers<[1], [0], [0], [1], [0, 0, 1, 1], [], []>} : vector<2x32xbf16>, vector<32x32xbf16>, vector<2x32xf32> -> vector<2x32xf32>
    %555 = vector.broadcast %552 : vector<1x32xf32> to vector<2x32xf32>
    %556 = arith.addf %554, %555 : vector<2x32xf32>
    %557 = math.tanh %556 : vector<2x32xf32>
    %c0_336 = arith.constant 0 : index
    %c0_337 = arith.constant 0 : index
    %558 = vector.load %arg18[%c0_336, %c0_337] : memref<32x2xbf16, #tpu.memory_space<vmem>>, vector<32x2xbf16>
    %c0_338 = arith.constant 0 : index
    %c0_339 = arith.constant 0 : index
    %559 = vector.load %arg19[%c0_338, %c0_339] : memref<1x2xf32, #tpu.memory_space<vmem>>, vector<1x2xf32>
    %560 = arith.truncf %557 : vector<2x32xf32> to vector<2x32xbf16>
    %cst_340 = arith.constant dense<0.000000e+00> : vector<2x2xf32>
    %561 = tpu.matmul %560, %558, %cst_340 {dimension_numbers = #tpu.dot_dimension_numbers<[1], [0], [0], [1], [0, 0, 1, 1], [], []>} : vector<2x32xbf16>, vector<32x2xbf16>, vector<2x2xf32> -> vector<2x2xf32>
    %562 = vector.broadcast %559 : vector<1x2xf32> to vector<2x2xf32>
    %563 = arith.addf %561, %562 : vector<2x2xf32>
    %c0_341 = arith.constant 0 : index
    %c0_342 = arith.constant 0 : index
    %564 = vector.load %arg20[%c0_341, %c0_342] : memref<2x2xf32, #tpu.memory_space<vmem>>, vector<2x2xf32>
    tpu.vector_store %arg20[%c0_341, %c0_342], %563 {strides = array<i32>} : memref<2x2xf32, #tpu.memory_space<vmem>>, vector<2x2xf32>,
    return
  }
}

</mosaic_0001>

<bundles_post_ra>
// kernel: sentiment_model_forward.1
= control target key start
LH: loop header
LB: loop body
LE: loop exit
PB: predicated region body
PF: predicated region fallthrough
CT: control target
= control target key end

     0   :  { %s5212_s0 = inlined_call_operand.vmem [shape: f32[16,32], index: 0, kind: input, shape index: {}]   ;;  %s5213_s1 = inlined_call_operand.vmem [shape: f32[2,8], index: 1, kind: input, shape index: {}]   ;;  %s5214_s2 = inlined_call_operand.vmem [shape: f32[1,32], index: 2, kind: input, shape index: {}]   ;;  %s5215_s3 = inlined_call_operand.vmem [shape: f32[1,32], index: 3, kind: input, shape index: {}, may-alias: {3,17}]   ;;  %s5216_s4 = inlined_call_operand.vmem [shape: bf16[2,32,96], index: 4, kind: input, shape index: {}]   ;;  %s5217_s5 = inlined_call_operand.vmem [shape: f32[2,1,96], index: 5, kind: input, shape index: {}]   ;;  %s5218_s6 = inlined_call_operand.vmem [shape: bf16[2,32,32], index: 6, kind: input, shape index: {}]   ;;  %s5219_s7 = inlined_call_operand.vmem [shape: f32[2,1,32], index: 7, kind: input, shape index: {}, may-alias: {7,9,13,15}]   ;;  %s5220_s8 = inlined_call_operand.vmem [shape: f32[2,1,32], index: 8, kind: input, shape index: {}, may-alias: {8,14}]   ;;  %s5221_s9 = inlined_call_operand.vmem [shape: f32[2,1,32], index: 9, kind: input, shape index: {}, may-alias: {7,9,13,15}]   ;;  %s5222_s10 = inlined_call_operand.vmem [shape: bf16[2,32,64], index: 10, kind: input, shape index: {}]   ;;  %s5223_s11 = inlined_call_operand.vmem [shape: f32[2,1,64], index: 11, kind: input, shape index: {}]   ;;  %s5224_s12 = inlined_call_operand.vmem [shape: bf16[2,64,32], index: 12, kind: input, shape index: {}]   ;;  %s5225_s13 = inlined_call_operand.vmem [shape: f32[2,1,32], index: 13, kind: input, shape index: {}, may-alias: {7,9,13,15}]   ;;  %s5226_s14 = inlined_call_operand.vmem [shape: f32[2,1,32], index: 14, kind: input, shape index: {}, may-alias: {8,14}]   ;;  %s5227_s15 = inlined_call_operand.vmem [shape: f32[2,1,32], index: 15, kind: input, shape index: {}, may-alias: {7,9,13,15}]   ;;  %s5228_s16 = inlined_call_operand.vmem [shape: bf16[32,32], index: 16, kind: input, shape index: {}]   ;;  %s5229_s17 = inlined_call_operand.vmem [shape: f32[1,32], index: 17, kind: input, shape index: {}, may-alias: {3,17}]   ;;  %s5230_s18 = inlined_call_operand.vmem [shape: bf16[32,2], index: 18, kind: input, shape index: {}]   ;;  %s5231_s19 = inlined_call_operand.vmem [shape: f32[1,2], index: 19, kind: input, shape index: {}]   ;;  %s5232_s20 = inlined_call_operand.hbm [shape: f32[2,2], index: 20, kind: output, shape index: {}]  }
   0x1   :  { %5251 = sst [smem:[#allocation7_spill]] %s5212_s0 }
   0x2   :  { %5252 = sst [smem:[#allocation8_spill]] %s5213_s1 }
   0x3   :  { %5253 = sst [smem:[#allocation9_spill]] %s5214_s2 }
   0x4   :  { %5254 = sst [smem:[#allocation10_spill]] %s5215_s3 }
   0x5   :  { %5255 = sst [smem:[#allocation11_spill]] %s5216_s4 }
   0x6   :  { %s5256_s23 = sld [smem:[#allocation7_spill]]  ;;  %vm71_vm0 = vcmask 261120  }
   0xc   :  { %v67_v0 = vld [vmem:[%s5256_s23] sm:$0xff]  ;;  %v68_v1 = vld [vmem:[%s5256_s23 + $0x8] sm:$0xff] }
   0xd   :  { %v72_v2 = vsel %vm71_vm0, %v67_v0, 0.0  ;;  %v75_v3 = vsel %vm71_vm0, %v68_v1, 0.0 }
   0xe   :  { %73 = vadd.xlane.f32.xlu0 %v72_v2 }
  0x12   :  { %76 = vadd.xlane.f32.xlu0 %v75_v3 }
  0x13   :  { %25 = vsyncpa [#allocation5], 0  ;;  %s5257_s26 = sld [smem:[#allocation11_spill]]  ;;  %v4496_v15 = vmov 0.0   ;;  %vm4497_vm1 = vmmov 0   ;;  %vm186_vm2 = vcmask 785408   ;;  %v269_v44 = vlaneseq }
  0x14   :  { %4091 = vmatprep.subr.bf16.mxu0 %v4496_v15  ;;  %4095 = vmatprep.mubr.msk.bf16.mxu0 %vm4497_vm1, %v4496_v15  ;;  %s5258_s30 = sld [smem:[#allocation9_spill]]  ;;  %v3865_v34 = vld [vmem:[%s5217_s5] ss:$0 sm:$0xff]  ;;  %s4498_s24 = smov 96   ;;  %vm193_vm3 = vcmask 64512   ;;  %vm535_vm4 = vcmask 130112  }
  0x15   :  { %4099 = vmatprep.subr.mxu1 %v4496_v15  ;;  %4101 = vmatprep.mubr.msk.f32.mxu1 %vm4497_vm1, %v4496_v15  ;;  %s5259_s1 = sld [smem:[#allocation10_spill]]  ;;  %s4499_s2 = smov 88   ;;  %v4691_v47 = vshrl.u32 %v269_v44, 7  ;;  %vm710_vm5 = vcmask 195712   ;;  %vm885_vm6 = vcmask 261312   ;;  %vm1823_vm7 = vcmask 523264  }
  0x16   :  { %s4500_s25 = smov 80   ;;  %s5249_s3 = smov 72   ;;  %vm3708_vm8 = vcmask 253952   ;;  %vm3847_vm9 = vcmask 9216  }
  0x17   :  { %s4502_s27 = smov 120   ;;  %s4503_s28 = smov 112   ;;  %v271_v49 = vsub.s32 0, %v4691_v47 }
  0x18   :  { %s4504_s4 = smov 104   ;;  %s5260_s0 = sld [smem:[#allocation8_spill]] }
  0x19   :  { %v4356_v14 = vld [vmem:[%s5257_s26 + $0x8] sm:$0xff]   ;;  %v4357_v16 = vld [vmem:[%s5257_s26] sm:$0xff]   ;;  %s5241_s21 = smov 64   ;;  %s5237_s22 = smov 40  }
  0x1a   :  { %4092 = vmatpush3.bf16.msra.mxu0 %v4356_v14  ;;  %v3863_v25 = vld [vmem:[%s5258_s30] ss:$0 sm:$0xff]  ;;  %s5239_s23 = smov 48   ;;  %s5247_s29 = smov 8  }
  0x1b   :  { %4093 = vmatprep.subr.bf16.mxu0 %v4496_v15  ;;  %v3864_v29 = vld [vmem:[%s5259_s1] ss:$0 sm:$0xff]  ;;  %s5235_s1 = smov 56   ;;  %s5245_s30 = smov 16  }
  0x1e   :  { %4094 = vmatpush3.bf16.msra.mxu0 %v4357_v16  ;;  %v115_v45 = vld [vmem:[%s5260_s0] sm:$0x3]  ;;  %s5243_s0 = smov 24  }
  0x1f   :  { %4114 = vmatprep.subr.mxu0 %v4496_v15  ;;  %v116_v46 = vsub.f32 1.0, %v115_v45 }
  0x21   :  { %v4693_v48 = vmul.f32 -10000.0, %v116_v46 }
  0x23   :  { %v4697_v50 = vrot.slane %v4693_v48, %v271_v49 }
  0x97   :  { %v74_v4 = vpop.xlane.xlu0 %73 }
  0x98   :  { %v79_v5 = vmul.f32 0.03125, %v74_v4 }
  0x9a   :  { %v81_v6 = vsub.f32 %v67_v0, %v79_v5 }
  0x9b   :  { %v77_v7 = vpop.xlane.xlu0 %76 }
  0x9c   :  { %v80_v8 = vmul.f32 0.03125, %v77_v7  ;;  %v83_v9 = vmul.f32 %v81_v6, %v81_v6 }
  0x9e   :  { %v82_v10 = vsub.f32 %v68_v1, %v80_v8  ;;  %v85_v11 = vsel %vm71_vm0, %v83_v9, 0.0 }
  0x9f   :  { %86 = vadd.xlane.f32.xlu1 %v85_v11 }
  0xa0   :  { %v84_v12 = vmul.f32 %v82_v10, %v82_v10 }
  0xa2   :  { %v88_v13 = vsel %vm71_vm0, %v84_v12, 0.0 }
  0xa3   :  { %89 = vadd.xlane.f32.xlu1 %v88_v13 }
 0x128   :  { %v87_v17 = vpop.xlane.xlu1 %86 }
 0x129   :  { %v91_v18 = vmul.f32 0.03125, %v87_v17 }
 0x12b   :  { %v93_v19 = vadd.f32 1e-12, %v91_v18 }
 0x12c   :  { %v90_v20 = vpop.xlane.xlu1 %89 }
 0x12d   :  { %4380 = vrsqrt.f32 %v93_v19  ;;  %v92_v21 = vmul.f32 0.03125, %v90_v20 }
 0x12f   :  { %v94_v22 = vadd.f32 1e-12, %v92_v21 }
 0x131   :  { %4382 = vrsqrt.f32 %v94_v22 }
 0x13a   :  { %v4381_v23 = vpop.eup %4380 }
 0x13b   :  { %v97_v24 = vmul.f32 %v4381_v23, %v81_v6 }
 0x13d   :  { %v105_v28 = vmul.f32 %v3863_v25, %v97_v24 }
 0x13e   :  { %v4383_v26 = vpop.eup %4382 }
 0x13f   :  { %v98_v27 = vmul.f32 %v4383_v26, %v82_v10  ;;  %v4648_v31 = vadd.f32 %v3864_v29, %v105_v28  ;;  %v968_v26 = vsub.s32 1, %v4691_v47 }
 0x141   :  { %v106_v30 = vmul.f32 %v3863_v25, %v98_v27 }
 0x143   :  { %v4650_v32 = vadd.f32 %v3864_v29, %v106_v30 }
 0x145   :  { %v123_v33 = vpack.c.bf16 %v4650_v32, %v4648_v31 }
 0x147   :  { %4096 = vmatmul.mubr.msk.bf16.vlgmr.msra.gmra.mxu0 %vm71_vm0, %v123_v33 }
 0x148   :  { %4116 = vmatprep.mubr.msk.f32.mxu0 %vm4497_vm1, %v4496_v15 }
 0x207   :  { %v179_v35 = vpop.f32.mrf.mxu0 }
 0x208   :  { %v180_v36 = vadd.f32 %v3865_v34, %v179_v35 }
 0x209   :  { %v4097_v37 = vpop.f32.mrf.mxu0 }
 0x20a   :  { %187 = vst.msk [vmem:[#allocation3] sm:$0xff] %vm186_vm2, %v180_v36 }
 0x20b   :  { %v182_v38 = vpop.f32.mrf.mxu0 }
 0x20c   :  { %v183_v39 = vadd.f32 %v3865_v34, %v182_v38  ;;  %v4764_v34 = vrot.slane %v4693_v48, %v968_v26 }
 0x20d   :  { %v4098_v40 = vpop.f32.mrf.mxu0 }
 0x20e   :  { %188 = vst.msk [vmem:[#allocation3 + $0x8] sm:$0xff] %vm186_vm2, %v183_v39 }
 0x211   :  { %v4662_v41 = vld [vmem:[#allocation3] sm:$0xff] }
 0x212   :  { %191 = vrot.lane.b32.xlu0 %v4662_v41, %s4498_s24 }
 0x215   :  { %v4672_v42 = vld [vmem:[#allocation3 + $0x8] sm:$0xff] }
 0x216   :  { %366 = vrot.lane.b32.xlu0 %v4662_v41, %s4499_s2 }
 0x21a   :  { %541 = vrot.lane.b32.xlu0 %v4662_v41, %s4500_s25 }
 0x21e   :  { %716 = vrot.lane.b32.xlu0 %v4662_v41, %s5249_s3 }
 0x222   :  { %889 = vrot.lane.b32.xlu0 %v4672_v42, %s4498_s24 }
 0x226   :  { %1061 = vrot.lane.b32.xlu0 %v4672_v42, %s4502_s27 }
 0x22a   :  { %1235 = vrot.lane.b32.xlu0 %v4672_v42, %s4503_s28 }
 0x22e   :  { %1409 = vrot.lane.b32.xlu0 %v4672_v42, %s4504_s4 }
 0x284   :  { %v192_v43 = vpop.permute.xlu0 %191 }
 0x285   :  { %4100 = vmatpush3.xpose.msk.msra.mxu1 %vm193_vm3, %v192_v43 }
 0x286   :  { %4104 = vmatprep.subr.mxu1 %v4496_v15 }
 0x288   :  { %4102 = vmatmul.mubr.msk.f32.vlgmr.msra.gmra.mxu1 %vm193_vm3, %v4662_v41  ;;  %v367_v0 = vpop.permute.xlu0 %366 }
 0x289   :  { %4106 = vmatprep.mubr.msk.f32.mxu1 %vm4497_vm1, %v4496_v15 }
 0x28c   :  { %v542_v2 = vpop.permute.xlu0 %541 }
 0x290   :  { %v717_v5 = vpop.permute.xlu0 %716 }
 0x294   :  { %v890_v7 = vpop.permute.xlu0 %889 }
 0x298   :  { %v1062_v9 = vpop.permute.xlu0 %1061 }
 0x29c   :  { %v1236_v11 = vpop.permute.xlu0 %1235 }
 0x2a0   :  { %v1410_v13 = vpop.permute.xlu0 %1409 }
 0x348   :  { %v264_v51 = vpop.f32.mrf.mxu1 }
 0x349   :  { %v268_v52 = vmul.f32 0.35355338, %v264_v51 }
 0x34a   :  { %v4103_v53 = vpop.f32.mrf.mxu1 }
 0x34b   :  { %v273_v54 = vadd.f32 %v4697_v50, %v268_v52 }
 0x34d   :  { %v274_v55 = vsel %vm193_vm3, %v273_v54, -inf }
 0x34e   :  { %275 = vmax.xlane.f32.xlu1 %v274_v55 }
 0x35f   :  { %285 = vrot.lane.b32.xlu1 %v4662_v41, %s5241_s21 }
 0x363   :  { %364 = vrot.lane.b32.xlu1 %v4662_v41, %s4502_s27 }
 0x3d7   :  { %v276_v56 = vpop.xlane.xlu1 %275 }
 0x3d8   :  { %v277_v57 = vsub.f32 %v273_v54, %v276_v56 }
 0x3da   :  { %v278_v58 = vmul.f32 1.442695, %v277_v57 }
 0x3db   :  { %v286_v59 = vpop.permute.xlu1 %285 }
 0x3dc   :  { %4384 = vpow2.f32 %v278_v58  ;;  %4105 = vmatpush3.msra.mxu1 %v286_v59 }
 0x3dd   :  { %4109 = vmatprep.subr.mxu1 %v4496_v15 }
 0x3df   :  { %v365_v62 = vpop.permute.xlu1 %364 }
 0x3e9   :  { %v4385_v60 = vpop.eup %4384 }
 0x3ea   :  { %v280_v61 = vsel %vm193_vm3, %v4385_v60, 0.0 }
 0x3eb   :  { %281 = vadd.xlane.f32.xlu1 %v280_v61 }
 0x3fc   :  { %539 = vrot.lane.b32.xlu1 %v4662_v41, %s4503_s28 }
 0x400   :  { %714 = vrot.lane.b32.xlu1 %v4662_v41, %s4504_s4 }
 0x404   :  { %1063 = vrot.lane.b32.xlu1 %v4672_v42, %s4499_s2 }
 0x408   :  { %1237 = vrot.lane.b32.xlu1 %v4672_v42, %s4500_s25 }
 0x40c   :  { %1411 = vrot.lane.b32.xlu1 %v4672_v42, %s5249_s3 }
 0x474   :  { %v282_v63 = vpop.xlane.xlu1 %281 }
 0x475   :  { %4386 = vrcp.f32 %v282_v63 }
 0x478   :  { %v540_v4 = vpop.permute.xlu1 %539 }
 0x47c   :  { %v715_v6 = vpop.permute.xlu1 %714 }
 0x480   :  { %v1064_v8 = vpop.permute.xlu1 %1063 }
 0x482   :  { %v4387_v1 = vpop.eup %4386 }
 0x483   :  { %v284_v3 = vmul.f32 %v4387_v1, %v4385_v60 }
 0x484   :  { %v1238_v10 = vpop.permute.xlu1 %1237 }
 0x485   :  { %4107 = vmatmul.mubr.msk.f32.vlgmr.msra.gmra.mxu1 %vm193_vm3, %v284_v3 }
 0x486   :  { %4110 = vmatpush3.xpose.msk.msra.mxu1 %vm193_vm3, %v367_v0  ;;  %4111 = vmatprep.mubr.msk.f32.mxu1 %vm4497_vm1, %v4496_v15 }
 0x487   :  { %4119 = vmatprep.subr.mxu1 %v4496_v15 }
 0x488   :  { %v1412_v12 = vpop.permute.xlu1 %1411 }
 0x489   :  { %4112 = vmatmul.mubr.msk.f32.vlgmr.msra.gmra.mxu1 %vm193_vm3, %v365_v62 }
 0x48a   :  { %4120 = vmatpush3.xpose.msk.msra.mxu1 %vm193_vm3, %v542_v2  ;;  %4121 = vmatprep.mubr.msk.f32.mxu1 %vm4497_vm1, %v4496_v15 }
 0x48b   :  { %4129 = vmatprep.subr.mxu1 %v4496_v15 }
 0x48d   :  { %4122 = vmatmul.mubr.msk.f32.vlgmr.msra.gmra.mxu1 %vm193_vm3, %v540_v4 }
 0x48e   :  { %4130 = vmatpush3.xpose.msk.msra.mxu1 %vm193_vm3, %v717_v5  ;;  %4131 = vmatprep.mubr.msk.f32.mxu1 %vm4497_vm1, %v4496_v15 }
 0x48f   :  { %4139 = vmatprep.subr.mxu1 %v4496_v15 }
 0x491   :  { %4132 = vmatmul.mubr.msk.f32.vlgmr.msra.gmra.mxu1 %vm193_vm3, %v715_v6 }
 0x492   :  { %4140 = vmatpush3.xpose.msk.msra.mxu1 %vm193_vm3, %v890_v7  ;;  %4141 = vmatprep.mubr.msk.f32.mxu1 %vm4497_vm1, %v4496_v15 }
 0x493   :  { %4149 = vmatprep.subr.mxu1 %v4496_v15 }
 0x495   :  { %4142 = vmatmul.mubr.msk.f32.vlgmr.msra.gmra.mxu1 %vm193_vm3, %v4672_v42 }
 0x496   :  { %4150 = vmatpush3.xpose.msk.msra.mxu1 %vm193_vm3, %v1064_v8  ;;  %4151 = vmatprep.mubr.msk.f32.mxu1 %vm4497_vm1, %v4496_v15 }
 0x497   :  { %4159 = vmatprep.subr.mxu1 %v4496_v15 }
 0x499   :  { %4152 = vmatmul.mubr.msk.f32.vlgmr.msra.gmra.mxu1 %vm193_vm3, %v1062_v9 }
 0x49a   :  { %4160 = vmatpush3.xpose.msk.msra.mxu1 %vm193_vm3, %v1238_v10  ;;  %4161 = vmatprep.mubr.msk.f32.mxu1 %vm4497_vm1, %v4496_v15 }
 0x49b   :  { %4169 = vmatprep.subr.mxu1 %v4496_v15 }
 0x49d   :  { %4162 = vmatmul.mubr.msk.f32.vlgmr.msra.gmra.mxu1 %vm193_vm3, %v1236_v11 }
 0x49e   :  { %4170 = vmatpush3.xpose.msk.msra.mxu1 %vm193_vm3, %v1412_v12  ;;  %4171 = vmatprep.mubr.msk.f32.mxu1 %vm4497_vm1, %v4496_v15 }
 0x49f   :  { %4179 = vmatprep.subr.bf16.mxu1 %v4496_v15 }
 0x4a1   :  { %4172 = vmatmul.mubr.msk.f32.vlgmr.msra.gmra.mxu1 %vm193_vm3, %v1410_v13 }
 0x4a2   :  { %4183 = vmatprep.mubr.msk.bf16.mxu1 %vm4497_vm1, %v4496_v15 }
 0x545   :  { %v357_v14 = vpop.f32.mrf.mxu1 }
 0x546   :  { %361 = vst.msk [vmem:[#allocation2] sm:$0xff] %vm193_vm3, %v357_v14 }
 0x547   :  { %v4108_v16 = vpop.f32.mrf.mxu1 }
 0x549   :  { %v438_v17 = vpop.f32.mrf.mxu1 }
 0x54a   :  { %v442_v18 = vmul.f32 0.35355338, %v438_v17 }
 0x54b   :  { %v4113_v19 = vpop.f32.mrf.mxu1 }
 0x54c   :  { %v443_v20 = vadd.f32 %v442_v18, %v4697_v50 }
 0x54d   :  { %v613_v21 = vpop.f32.mrf.mxu1 }
 0x54e   :  { %v617_v22 = vmul.f32 0.35355338, %v613_v21  ;;  %v444_v23 = vsel %vm193_vm3, %v443_v20, -inf }
 0x54f   :  { %v4123_v24 = vpop.f32.mrf.mxu1  ;;  %445 = vmax.xlane.f32.xlu1 %v444_v23 }
 0x550   :  { %v618_v25 = vadd.f32 %v617_v22, %v4697_v50 }
 0x551   :  { %v788_v27 = vpop.f32.mrf.mxu1 }
 0x552   :  { %v792_v28 = vmul.f32 0.35355338, %v788_v27  ;;  %v619_v29 = vsel %vm193_vm3, %v618_v25, -inf }
 0x553   :  { %v4133_v30 = vpop.f32.mrf.mxu1  ;;  %620 = vmax.xlane.f32.xlu0 %v619_v29 }
 0x554   :  { %v793_v33 = vadd.f32 %v792_v28, %v4697_v50 }
 0x555   :  { %v961_v35 = vpop.f32.mrf.mxu1 }
 0x556   :  { %v965_v36 = vmul.f32 0.35355338, %v961_v35  ;;  %v794_v37 = vsel %vm193_vm3, %v793_v33, -inf }
 0x557   :  { %795 = vmax.xlane.f32.xlu0 %v794_v37  ;;  %v4143_v38 = vpop.f32.mrf.mxu1 }
 0x558   :  { %v970_v39 = vadd.f32 %v4764_v34, %v965_v36 }
 0x559   :  { %v1135_v40 = vpop.f32.mrf.mxu1 }
 0x55a   :  { %v1139_v43 = vmul.f32 0.35355338, %v1135_v40  ;;  %v971_v44 = vsel %vm193_vm3, %v970_v39, -inf }
 0x55b   :  { %972 = vmax.xlane.f32.xlu0 %v971_v44  ;;  %v4153_v45 = vpop.f32.mrf.mxu1 }
 0x55c   :  { %v1140_v46 = vadd.f32 %v1139_v43, %v4764_v34 }
 0x55d   :  { %v1309_v47 = vpop.f32.mrf.mxu1 }
 0x55e   :  { %v1313_v49 = vmul.f32 0.35355338, %v1309_v47  ;;  %v1141_v48 = vsel %vm193_vm3, %v1140_v46, -inf }
 0x55f   :  { %1142 = vmax.xlane.f32.xlu1 %v1141_v48  ;;  %v4163_v51 = vpop.f32.mrf.mxu1 }
 0x560   :  { %v1314_v52 = vadd.f32 %v1313_v49, %v4764_v34 }
 0x561   :  { %v1483_v53 = vpop.f32.mrf.mxu1 }
 0x562   :  { %v1315_v54 = vsel %vm193_vm3, %v1314_v52, -inf  ;;  %v1487_v56 = vmul.f32 0.35355338, %v1483_v53 }
 0x563   :  { %1316 = vmax.xlane.f32.xlu0 %v1315_v54  ;;  %v4173_v55 = vpop.f32.mrf.mxu1 }
 0x564   :  { %v1488_v57 = vadd.f32 %v1487_v56, %v4764_v34 }
 0x566   :  { %v1489_v58 = vsel %vm193_vm3, %v1488_v57, -inf }
 0x570   :  { %455 = vrot.lane.b32.xlu1 %v4662_v41, %s5235_s1 }
 0x594   :  { %1490 = vmax.xlane.f32.xlu1 %v1489_v58 }
 0x5a5   :  { %805 = vrot.lane.b32.xlu1 %v4662_v41, %s5237_s22 }
 0x5a9   :  { %982 = vrot.lane.b32.xlu1 %v4672_v42, %s5241_s21 }
 0x5d8   :  { %v446_v59 = vpop.xlane.xlu1 %445 }
 0x5d9   :  { %v447_v60 = vsub.f32 %v443_v20, %v446_v59 }
 0x5db   :  { %v448_v61 = vmul.f32 1.442695, %v447_v60 }
 0x5dc   :  { %v621_v62 = vpop.xlane.xlu0 %620 }
 0x5dd   :  { %4388 = vpow2.f32 %v448_v61  ;;  %v622_v63 = vsub.f32 %v618_v25, %v621_v62 }
 0x5df   :  { %v623_v0 = vmul.f32 1.442695, %v622_v63 }
 0x5e0   :  { %v796_v7 = vpop.xlane.xlu0 %795 }
 0x5e1   :  { %4390 = vpow2.f32 %v623_v0  ;;  %v797_v8 = vsub.f32 %v793_v33, %v796_v7 }
 0x5e3   :  { %v798_v11 = vmul.f32 1.442695, %v797_v8  ;;  %v4359_v8 = vld [vmem:[%s5218_s6] sm:$0xff]  }
 0x5e4   :  { %v973_v9 = vpop.xlane.xlu0 %972 }
 0x5e5   :  { %v974_v10 = vsub.f32 %v970_v39, %v973_v9  ;;  %4392 = vpow2.f32 %v798_v11 }
 0x5e7   :  { %v975_v14 = vmul.f32 1.442695, %v974_v10 }
 0x5e8   :  { %v1143_v1 = vpop.xlane.xlu1 %1142 }
 0x5e9   :  { %v1144_v12 = vsub.f32 %v1140_v46, %v1143_v1  ;;  %4394 = vpow2.f32 %v975_v14 }
 0x5ea   :  { %v4389_v2 = vpop.eup %4388 }
 0x5eb   :  { %v450_v3 = vsel %vm193_vm3, %v4389_v2, 0.0  ;;  %v1145_v16 = vmul.f32 1.442695, %v1144_v12 }
 0x5ec   :  { %v456_v4 = vpop.permute.xlu1 %455  ;;  %451 = vadd.xlane.f32.xlu0 %v450_v3  ;;  %v1317_v13 = vpop.xlane.xlu0 %1316 }
 0x5ed   :  { %4115 = vmatpush3.msra.mxu0 %v456_v4  ;;  %v1318_v17 = vsub.f32 %v1314_v52, %v1317_v13  ;;  %4396 = vpow2.f32 %v1145_v16 }
 0x5ee   :  { %v4391_v5 = vpop.eup %4390  ;;  %4124 = vmatprep.subr.mxu0 %v4496_v15 }
 0x5ef   :  { %v625_v6 = vsel %vm193_vm3, %v4391_v5, 0.0  ;;  %v1319_v18 = vmul.f32 1.442695, %v1318_v17 }
 0x5f0   :  { %626 = vadd.xlane.f32.xlu1 %v625_v6  ;;  %v4358_v6 = vld [vmem:[%s5218_s6 + $0x8] sm:$0xff]  }
 0x5f1   :  { %4398 = vpow2.f32 %v1319_v18  ;;  %4180 = vmatpush3.bf16.msra.mxu1 %v4358_v6  ;;  %v4365_v6 = vld [vmem:[%s5224_s12] sm:$0xff]  }
 0x5f2   :  { %v4393_v19 = vpop.eup %4392  ;;  %4181 = vmatprep.subr.bf16.mxu1 %v4496_v15 }
 0x5f5   :  { %4182 = vmatpush3.bf16.msra.mxu1 %v4359_v8 }
 0x5f6   :  { %v4395_v22 = vpop.eup %4394  ;;  %4195 = vmatprep.subr.bf16.mxu1 %v4496_v15 }
 0x5f7   :  { %v977_v26 = vsel %vm193_vm3, %v4395_v22, 0.0 }
 0x5fa   :  { %v4397_v24 = vpop.eup %4396 }
 0x5fb   :  { %v1147_v25 = vsel %vm193_vm3, %v4397_v24, 0.0 }
 0x5fe   :  { %v4399_v27 = vpop.eup %4398 }
 0x5ff   :  { %v1321_v28 = vsel %vm193_vm3, %v4399_v27, 0.0 }
 0x601   :  { %1152 = vrot.lane.b32.xlu1 %v4672_v42, %s5235_s1 }
 0x602   :  { %630 = vrot.lane.b32.xlu0 %v4662_v41, %s5239_s23  ;;  %v800_v41 = vsel %vm193_vm3, %v4393_v19, 0.0 }
 0x61d   :  { %v1491_v20 = vpop.xlane.xlu1 %1490 }
 0x61e   :  { %v1492_v21 = vsub.f32 %v1488_v57, %v1491_v20 }
 0x620   :  { %v1493_v23 = vmul.f32 1.442695, %v1492_v21 }
 0x621   :  { %801 = vadd.xlane.f32.xlu0 %v800_v41  ;;  %v806_v33 = vpop.permute.xlu1 %805 }
 0x622   :  { %4400 = vpow2.f32 %v1493_v23 }
 0x625   :  { %1148 = vadd.xlane.f32.xlu0 %v1147_v25  ;;  %978 = vadd.xlane.f32.xlu1 %v977_v26  ;;  %v983_v35 = vpop.permute.xlu1 %982 }
 0x629   :  { %1322 = vadd.xlane.f32.xlu1 %v1321_v28 }
 0x62f   :  { %v4401_v29 = vpop.eup %4400 }
 0x630   :  { %v1495_v30 = vsel %vm193_vm3, %v4401_v29, 0.0 }
 0x631   :  { %1496 = vadd.xlane.f32.xlu0 %v1495_v30 }
 0x63a   :  { %1500 = vrot.lane.b32.xlu1 %v4672_v42, %s5237_s22 }
 0x647   :  { %1326 = vrot.lane.b32.xlu0 %v4672_v42, %s5239_s23  ;;  %s5268_s23 = smov 24  }
 0x675   :  { %v452_v36 = vpop.xlane.xlu0 %451 }
 0x676   :  { %4402 = vrcp.f32 %v452_v36 }
 0x679   :  { %v627_v37 = vpop.xlane.xlu1 %626  ;;  %v631_v40 = vpop.permute.xlu0 %630 }
 0x67a   :  { %4404 = vrcp.f32 %v627_v37 }
 0x67d   :  { %v1153_v42 = vpop.permute.xlu1 %1152 }
 0x683   :  { %v4403_v38 = vpop.eup %4402 }
 0x684   :  { %v454_v39 = vmul.f32 %v4403_v38, %v4389_v2 }
 0x686   :  { %4117 = vmatmul.mubr.msk.f32.vlgmr.msra.gmra.mxu0 %vm193_vm3, %v454_v39 }
 0x687   :  { %v4405_v43 = vpop.eup %4404  ;;  %4125 = vmatpush3.msra.mxu0 %v631_v40  ;;  %4126 = vmatprep.mubr.msk.f32.mxu0 %vm4497_vm1, %v4496_v15 }
 0x688   :  { %4134 = vmatprep.subr.mxu0 %v4496_v15  ;;  %v629_v44 = vmul.f32 %v4405_v43, %v4391_v5 }
 0x68a   :  { %4127 = vmatmul.mubr.msk.f32.vlgmr.msra.gmra.mxu0 %vm193_vm3, %v629_v44 }
 0x68b   :  { %4135 = vmatpush3.msra.mxu0 %v806_v33  ;;  %4136 = vmatprep.mubr.msk.f32.mxu0 %vm4497_vm1, %v4496_v15 }
 0x68c   :  { %4144 = vmatprep.subr.mxu0 %v4496_v15 }
 0x6aa   :  { %v802_v45 = vpop.xlane.xlu0 %801 }
 0x6ab   :  { %4406 = vrcp.f32 %v802_v45 }
 0x6ae   :  { %v979_v46 = vpop.xlane.xlu1 %978  ;;  %v1149_v47 = vpop.xlane.xlu0 %1148 }
 0x6af   :  { %4408 = vrcp.f32 %v979_v46 }
 0x6b0   :  { %4410 = vrcp.f32 %v1149_v47 }
 0x6b2   :  { %v1323_v49 = vpop.xlane.xlu1 %1322 }
 0x6b3   :  { %4412 = vrcp.f32 %v1323_v49  ;;  %v4361_v49 = vld [vmem:[%s5222_s10] sm:$0xff]  }
 0x6b6   :  { %v1501_v60 = vpop.permute.xlu1 %1500 }
 0x6b8   :  { %v4407_v48 = vpop.eup %4406 }
 0x6b9   :  { %v804_v51 = vmul.f32 %v4407_v48, %v4393_v19 }
 0x6ba   :  { %v1497_v52 = vpop.xlane.xlu0 %1496 }
 0x6bb   :  { %4414 = vrcp.f32 %v1497_v52  ;;  %4137 = vmatmul.mubr.msk.f32.vlgmr.msra.gmra.mxu0 %vm193_vm3, %v804_v51 }
 0x6bc   :  { %v4409_v53 = vpop.eup %4408  ;;  %4145 = vmatpush3.msra.mxu0 %v983_v35  ;;  %4146 = vmatprep.mubr.msk.f32.mxu0 %vm4497_vm1, %v4496_v15 }
 0x6bd   :  { %4154 = vmatprep.subr.mxu0 %v4496_v15  ;;  %v981_v54 = vmul.f32 %v4409_v53, %v4395_v22  ;;  %v4411_v55 = vpop.eup %4410 }
 0x6be   :  { %v1151_v56 = vmul.f32 %v4411_v55, %v4397_v24  ;;  %v1327_v58 = vpop.permute.xlu0 %1326  ;;  %v3893_v24 = vld [vmem:[%s5219_s7] ss:$0 sm:$0xff] }
 0x6bf   :  { %4147 = vmatmul.mubr.msk.f32.vlgmr.msra.gmra.mxu0 %vm193_vm3, %v981_v54 }
 0x6c0   :  { %4155 = vmatpush3.msra.mxu0 %v1153_v42  ;;  %4156 = vmatprep.mubr.msk.f32.mxu0 %vm4497_vm1, %v4496_v15  ;;  %v4413_v57 = vpop.eup %4412 }
 0x6c1   :  { %4164 = vmatprep.subr.mxu0 %v4496_v15  ;;  %v1325_v59 = vmul.f32 %v4413_v57, %v4399_v27 }
 0x6c3   :  { %4157 = vmatmul.mubr.msk.f32.vlgmr.msra.gmra.mxu0 %vm193_vm3, %v1151_v56 }
 0x6c4   :  { %4165 = vmatpush3.msra.mxu0 %v1327_v58  ;;  %4166 = vmatprep.mubr.msk.f32.mxu0 %vm4497_vm1, %v4496_v15  ;;  %v3897_v58 = vld [vmem:[%s5220_s8] ss:$0 sm:$0xff] }
 0x6c5   :  { %4174 = vmatprep.subr.mxu0 %v4496_v15 }
 0x6c7   :  { %4167 = vmatmul.mubr.msk.f32.vlgmr.msra.gmra.mxu0 %vm193_vm3, %v1325_v59 }
 0x6c8   :  { %v4415_v61 = vpop.eup %4414  ;;  %4175 = vmatpush3.msra.mxu0 %v1501_v60  ;;  %4176 = vmatprep.mubr.msk.f32.mxu0 %vm4497_vm1, %v4496_v15 }
 0x6c9   :  { %v1499_v62 = vmul.f32 %v4415_v61, %v4401_v29  ;;  %4187 = vmatprep.subr.bf16.mxu0 %v4496_v15 }
 0x6cb   :  { %4177 = vmatmul.mubr.msk.f32.vlgmr.msra.gmra.mxu0 %vm193_vm3, %v1499_v62  ;;  %v3898_v62 = vld [vmem:[%s5221_s9] ss:$0 sm:$0xff] }
 0x6cc   :  { %4191 = vmatprep.mubr.msk.bf16.mxu0 %vm4497_vm1, %v4496_v15 }
 0x746   :  { %v527_v63 = vpop.f32.mrf.mxu0 }
 0x747   :  { %532 = vrot.lane.b32.xlu0 %v527_v63, %s5247_s29 }
 0x748   :  { %v4118_v0 = vpop.f32.mrf.mxu0 }
 0x74a   :  { %v702_v1 = vpop.f32.mrf.mxu0 }
 0x74b   :  { %707 = vrot.lane.b32.xlu0 %v702_v1, %s5245_s30 }
 0x74c   :  { %v4128_v2 = vpop.f32.mrf.mxu0 }
 0x77b   :  { %v877_v3 = vpop.f32.mrf.mxu0 }
 0x77c   :  { %882 = vrot.lane.b32.xlu0 %v877_v3, %s5243_s0  ;;  %v4362_v3 = vld [vmem:[%s5224_s12 + $0x18] sm:$0xff]  }
 0x77d   :  { %v4138_v4 = vpop.f32.mrf.mxu0 }
 0x77e   :  { %v4363_v4 = vld [vmem:[%s5224_s12 + $0x10] sm:$0xff]  }
 0x77f   :  { %v1054_v5 = vpop.f32.mrf.mxu0 }
 0x780   :  { %1058 = vst.msk [vmem:[#allocation2 + $0x8] sm:$0xff] %vm193_vm3, %v1054_v5  ;;  %v4364_v5 = vld [vmem:[%s5224_s12 + $0x8] sm:$0xff]  }
 0x781   :  { %v4148_v7 = vpop.f32.mrf.mxu0 }
 0x782   :  { %v3899_v7 = vld [vmem:[%s5223_s11] ss:$0 sm:$0xff] }
 0x783   :  { %v1224_v9 = vpop.f32.mrf.mxu0 }
 0x784   :  { %1229 = vrot.lane.b32.xlu1 %v1224_v9, %s5247_s29 }
 0x785   :  { %v4158_v10 = vpop.f32.mrf.mxu0 }
 0x787   :  { %v1398_v11 = vpop.f32.mrf.mxu0 }
 0x788   :  { %1403 = vrot.lane.b32.xlu1 %v1398_v11, %s5245_s30 }
 0x789   :  { %v4168_v12 = vpop.f32.mrf.mxu0 }
 0x78b   :  { %v1572_v13 = vpop.f32.mrf.mxu0 }
 0x78c   :  { %1577 = vrot.lane.b32.xlu1 %v1572_v13, %s5243_s0 }
 0x78d   :  { %v4178_v14 = vpop.f32.mrf.mxu0 }
 0x7b9   :  { %v533_v16 = vpop.permute.xlu0 %532 }
 0x7ba   :  { %536 = vst.msk [vmem:[#allocation2] sm:$0xff] %vm535_vm4, %v533_v16 }
 0x7bd   :  { %v708_v17 = vpop.permute.xlu0 %707 }
 0x7be   :  { %711 = vst.msk [vmem:[#allocation2] sm:$0xff] %vm710_vm5, %v708_v17 }
 0x7ee   :  { %v883_v18 = vpop.permute.xlu0 %882 }
 0x7ef   :  { %886 = vst.msk [vmem:[#allocation2] sm:$0xff] %vm885_vm6, %v883_v18 }
 0x7f6   :  { %v1230_v19 = vpop.permute.xlu1 %1229  ;;  %v1581_v22 = vld [vmem:[#allocation2] sm:$0xff] }
 0x7f7   :  { %1232 = vst.msk [vmem:[#allocation2 + $0x8] sm:$0xff] %vm535_vm4, %v1230_v19 }
 0x7fa   :  { %v1404_v20 = vpop.permute.xlu1 %1403 }
 0x7fb   :  { %1406 = vst.msk [vmem:[#allocation2 + $0x8] sm:$0xff] %vm710_vm5, %v1404_v20 }
 0x7fe   :  { %v1578_v21 = vpop.permute.xlu1 %1577 }
 0x7ff   :  { %1580 = vst.msk [vmem:[#allocation2 + $0x8] sm:$0xff] %vm885_vm6, %v1578_v21 }
 0x806   :  { %v1582_v23 = vld [vmem:[#allocation2 + $0x8] sm:$0xff] }
 0x807   :  { %v1588_v41 = vpack.c.bf16 %v1582_v23, %v1581_v22 }
 0x809   :  { %4184 = vmatmul.mubr.msk.bf16.vlgmr.msra.gmra.mxu1 %vm71_vm0, %v1588_v41 }
 0x80a   :  { %4203 = vmatprep.mubr.msk.bf16.mxu1 %vm4497_vm1, %v4496_v15  ;;  %4196 = vmatpush3.bf16.msra.mxu1 %v4362_v3  ;;  %v3909_v3 = vld [vmem:[%s5226_s14] ss:$0 sm:$0xff] }
 0x80b   :  { %4197 = vmatprep.subr.bf16.mxu1 %v4496_v15 }
 0x80e   :  { %4198 = vmatpush3.bf16.msra.mxu1 %v4363_v4 }
 0x80f   :  { %4199 = vmatprep.subr.bf16.mxu1 %v4496_v15 }
 0x812   :  { %4200 = vmatpush3.bf16.msra.mxu1 %v4364_v5 }
 0x813   :  { %4201 = vmatprep.subr.bf16.mxu1 %v4496_v15 }
 0x816   :  { %4202 = vmatpush3.bf16.msra.mxu1 %v4365_v6 }
 0x817   :  { %4225 = vmatprep.subr.mxu1 %v4496_v15 }
 0x8c9   :  { %v1644_v25 = vpop.f32.mrf.mxu1 }
 0x8ca   :  { %v1645_v26 = vadd.f32 %v3893_v24, %v1644_v25 }
 0x8cb   :  { %v4185_v27 = vpop.f32.mrf.mxu1 }
 0x8cc   :  { %v1651_v28 = vadd.f32 %v1645_v26, %v4648_v31 }
 0x8cd   :  { %v1647_v29 = vpop.f32.mrf.mxu1 }
 0x8ce   :  { %v1648_v30 = vadd.f32 %v3893_v24, %v1647_v29  ;;  %v1655_v33 = vsel %vm71_vm0, %v1651_v28, 0.0 }
 0x8cf   :  { %1656 = vadd.xlane.f32.xlu0 %v1655_v33  ;;  %v4186_v35 = vpop.f32.mrf.mxu1 }
 0x8d0   :  { %v1652_v36 = vadd.f32 %v1648_v30, %v4650_v32  ;;  %v4360_v32 = vld [vmem:[%s5222_s10 + $0x8] sm:$0xff]  }
 0x8d1   :  { %4188 = vmatpush3.bf16.msra.mxu0 %v4360_v32 }
 0x8d2   :  { %v1658_v37 = vsel %vm71_vm0, %v1652_v36, 0.0  ;;  %4189 = vmatprep.subr.bf16.mxu0 %v4496_v15 }
 0x8d3   :  { %1659 = vadd.xlane.f32.xlu1 %v1658_v37 }
 0x8d5   :  { %4190 = vmatpush3.bf16.msra.mxu0 %v4361_v49 }
 0x8d6   :  { %4207 = vmatprep.subr.bf16.mxu0 %v4496_v15 }
 0x958   :  { %v1657_v38 = vpop.xlane.xlu0 %1656 }
 0x959   :  { %v1661_v39 = vmul.f32 0.03125, %v1657_v38 }
 0x95b   :  { %v1663_v40 = vsub.f32 %v1651_v28, %v1661_v39 }
 0x95c   :  { %v1660_v43 = vpop.xlane.xlu1 %1659 }
 0x95d   :  { %v1662_v44 = vmul.f32 0.03125, %v1660_v43  ;;  %v1665_v42 = vmul.f32 %v1663_v40, %v1663_v40 }
 0x95f   :  { %v1664_v45 = vsub.f32 %v1652_v36, %v1662_v44  ;;  %v1667_v31 = vsel %vm71_vm0, %v1665_v42, 0.0  ;;  %v3903_v36 = vld [vmem:[%s5225_s13] ss:$0 sm:$0xff] }
 0x960   :  { %1668 = vadd.xlane.f32.xlu0 %v1667_v31 }
 0x961   :  { %v1666_v46 = vmul.f32 %v1664_v45, %v1664_v45 }
 0x963   :  { %v1670_v47 = vsel %vm71_vm0, %v1666_v46, 0.0 }
 0x964   :  { %1671 = vadd.xlane.f32.xlu0 %v1670_v47 }
 0x9e9   :  { %v1669_v48 = vpop.xlane.xlu0 %1668 }
 0x9ea   :  { %v1673_v51 = vmul.f32 0.03125, %v1669_v48 }
 0x9ec   :  { %v1675_v52 = vadd.f32 1e-12, %v1673_v51 }
 0x9ed   :  { %v1672_v53 = vpop.xlane.xlu0 %1671 }
 0x9ee   :  { %4416 = vrsqrt.f32 %v1675_v52  ;;  %v1674_v54 = vmul.f32 0.03125, %v1672_v53 }
 0x9f0   :  { %v1676_v55 = vadd.f32 1e-12, %v1674_v54 }
 0x9f2   :  { %4418 = vrsqrt.f32 %v1676_v55 }
 0x9fb   :  { %v4417_v56 = vpop.eup %4416 }
 0x9fc   :  { %v1679_v57 = vmul.f32 %v4417_v56, %v1663_v40 }
 0x9fe   :  { %v1687_v61 = vmul.f32 %v3897_v58, %v1679_v57  ;;  %v4366_v57 = vld [vmem:[%s5257_s26 + $0x18] sm:$0xff]  }
 0x9ff   :  { %v4419_v59 = vpop.eup %4418 }
 0xa00   :  { %v1680_v60 = vmul.f32 %v4419_v59, %v1664_v45  ;;  %v1695_v0 = vadd.f32 %v3898_v62, %v1687_v61 }
 0xa02   :  { %v1688_v63 = vmul.f32 %v3897_v58, %v1680_v60  ;;  %v4367_v58 = vld [vmem:[%s5257_s26 + $0x10] sm:$0xff]  }
 0xa04   :  { %v1696_v1 = vadd.f32 %v3898_v62, %v1688_v63 }
 0xa06   :  { %v1702_v2 = vpack.c.bf16 %v1696_v1, %v1695_v0 }
 0xa08   :  { %4192 = vmatmul.mubr.msk.bf16.vlgmr.msra.gmra.mxu0 %vm71_vm0, %v1702_v2 }
 0xa09   :  { %4211 = vmatprep.mubr.msk.bf16.mxu0 %vm4497_vm1, %v4496_v15  ;;  %4208 = vmatpush3.bf16.msra.mxu0 %v4366_v57 }
 0xa0a   :  { %4209 = vmatprep.subr.bf16.mxu0 %v4496_v15 }
 0xa0d   :  { %4210 = vmatpush3.bf16.msra.mxu0 %v4367_v58 }
 0xa0e   :  { %4215 = vmatprep.subr.mxu0 %v4496_v15 }
 0xac8   :  { %v1758_v8 = vpop.f32.mrf.mxu0 }
 0xac9   :  { %v1759_v9 = vadd.f32 %v3899_v7, %v1758_v8 }
 0xaca   :  { %v4193_v10 = vpop.f32.mrf.mxu0 }
 0xacb   :  { %v1767_v11 = vmul.f32 0.044715, %v1759_v9  ;;  %v1765_v27 = vmul.f32 0.5, %v1759_v9 }
 0xacc   :  { %v1761_v12 = vpop.f32.mrf.mxu0 }
 0xacd   :  { %v1769_v13 = vmul.f32 %v1767_v11, %v1759_v9  ;;  %v1762_v14 = vadd.f32 %v3899_v7, %v1761_v12  ;;  %v3910_v7 = vld [vmem:[%s5227_s15] ss:$0 sm:$0xff]  ;;  %v3916_v12 = vld [vmem:[%s5217_s5 + $0x1] ss:$0 sm:$0xff]  ;;  %s5261_s5 = smov 72  }
 0xace   :  { %v4194_v16 = vpop.f32.mrf.mxu0 }
 0xacf   :  { %v1771_v17 = vmul.f32 %v1769_v13, %v1759_v9  ;;  %v1768_v18 = vmul.f32 0.044715, %v1762_v14  ;;  %v1766_v28 = vmul.f32 0.5, %v1762_v14 }
 0xad1   :  { %v1773_v19 = vadd.f32 %v1771_v17, %v1759_v9  ;;  %v1770_v20 = vmul.f32 %v1768_v18, %v1762_v14 }
 0xad3   :  { %v1775_v21 = vmul.f32 0.7978846, %v1773_v19  ;;  %v1772_v22 = vmul.f32 %v1770_v20, %v1762_v14 }
 0xad5   :  { %4420 = vtanh.f32 %v1775_v21  ;;  %v1774_v23 = vadd.f32 %v1772_v22, %v1762_v14 }
 0xad7   :  { %v1776_v41 = vmul.f32 0.7978846, %v1774_v23 }
 0xad9   :  { %4422 = vtanh.f32 %v1776_v41 }
 0xae2   :  { %v4421_v24 = vpop.eup %4420 }
 0xae3   :  { %v1779_v25 = vadd.f32 1.0, %v4421_v24 }
 0xae5   :  { %v1781_v30 = vmul.f32 %v1779_v25, %v1765_v27 }
 0xae6   :  { %v4423_v26 = vpop.eup %4422 }
 0xae7   :  { %v1780_v29 = vadd.f32 1.0, %v4423_v26 }
 0xae9   :  { %v1782_v33 = vmul.f32 %v1780_v29, %v1766_v28 }
 0xaeb   :  { %v1792_v35 = vpack.c.bf16 %v1782_v33, %v1781_v30 }
 0xaed   :  { %4204 = vmatmul.mubr.msk.bf16.vlgmr.msra.gmra.mxu1 %vm1823_vm7, %v1792_v35 }
 0xaee   :  { %4227 = vmatprep.mubr.msk.f32.mxu1 %vm4497_vm1, %v4496_v15 }
 0xbad   :  { %v1861_v37 = vpop.f32.mrf.mxu1 }
 0xbae   :  { %v1862_v38 = vadd.f32 %v3903_v36, %v1861_v37 }
 0xbaf   :  { %v4205_v39 = vpop.f32.mrf.mxu1 }
 0xbb0   :  { %v1868_v40 = vadd.f32 %v1862_v38, %v1695_v0 }
 0xbb1   :  { %v1864_v43 = vpop.f32.mrf.mxu1 }
 0xbb2   :  { %v1865_v44 = vadd.f32 %v3903_v36, %v1864_v43  ;;  %v1872_v42 = vsel %vm71_vm0, %v1868_v40, 0.0 }
 0xbb3   :  { %1873 = vadd.xlane.f32.xlu0 %v1872_v42  ;;  %v4206_v45 = vpop.f32.mrf.mxu1 }
 0xbb4   :  { %v1869_v31 = vadd.f32 %v1865_v44, %v1696_v1 }
 0xbb6   :  { %v1875_v46 = vsel %vm71_vm0, %v1869_v31, 0.0 }
 0xbb7   :  { %1876 = vadd.xlane.f32.xlu1 %v1875_v46 }
 0xc3c   :  { %v1874_v47 = vpop.xlane.xlu0 %1873 }
 0xc3d   :  { %v1878_v32 = vmul.f32 0.03125, %v1874_v47 }
 0xc3f   :  { %v1880_v49 = vsub.f32 %v1868_v40, %v1878_v32 }
 0xc40   :  { %v1877_v48 = vpop.xlane.xlu1 %1876 }
 0xc41   :  { %v1879_v51 = vmul.f32 0.03125, %v1877_v48  ;;  %v1882_v52 = vmul.f32 %v1880_v49, %v1880_v49 }
 0xc43   :  { %v1881_v53 = vsub.f32 %v1869_v31, %v1879_v51  ;;  %v1884_v54 = vsel %vm71_vm0, %v1882_v52, 0.0 }
 0xc44   :  { %1885 = vadd.xlane.f32.xlu0 %v1884_v54 }
 0xc45   :  { %v1883_v55 = vmul.f32 %v1881_v53, %v1881_v53 }
 0xc47   :  { %v1887_v56 = vsel %vm71_vm0, %v1883_v55, 0.0 }
 0xc48   :  { %1888 = vadd.xlane.f32.xlu1 %v1887_v56 }
 0xccd   :  { %v1886_v59 = vpop.xlane.xlu0 %1885 }
 0xcce   :  { %v1890_v60 = vmul.f32 0.03125, %v1886_v59 }
 0xcd0   :  { %v1892_v61 = vadd.f32 1e-12, %v1890_v60 }
 0xcd1   :  { %v1889_v62 = vpop.xlane.xlu1 %1888 }
 0xcd2   :  { %4424 = vrsqrt.f32 %v1892_v61  ;;  %v1891_v63 = vmul.f32 0.03125, %v1889_v62 }
 0xcd4   :  { %v1893_v0 = vadd.f32 1e-12, %v1891_v63 }
 0xcd6   :  { %4426 = vrsqrt.f32 %v1893_v0 }
 0xcdf   :  { %v4425_v1 = vpop.eup %4424 }
 0xce0   :  { %v1896_v2 = vmul.f32 %v4425_v1, %v1880_v49 }
 0xce2   :  { %v1904_v6 = vmul.f32 %v3909_v3, %v1896_v2 }
 0xce3   :  { %v4427_v4 = vpop.eup %4426 }
 0xce4   :  { %v1897_v5 = vmul.f32 %v4427_v4, %v1881_v53  ;;  %v4917_v9 = vadd.f32 %v3910_v7, %v1904_v6 }
 0xce6   :  { %v1905_v8 = vmul.f32 %v3909_v3, %v1897_v5 }
 0xce8   :  { %v4919_v10 = vadd.f32 %v3910_v7, %v1905_v8 }
 0xcea   :  { %v1921_v11 = vpack.c.bf16 %v4919_v10, %v4917_v9 }
 0xcec   :  { %4212 = vmatmul.mubr.msk.bf16.vlgmr.msra.gmra.mxu0 %vm71_vm0, %v1921_v11 }
 0xced   :  { %4217 = vmatprep.mubr.msk.f32.mxu0 %vm4497_vm1, %v4496_v15 }
 0xdac   :  { %v1977_v13 = vpop.f32.mrf.mxu0 }
 0xdad   :  { %v1978_v14 = vadd.f32 %v3916_v12, %v1977_v13 }
 0xdae   :  { %v4213_v16 = vpop.f32.mrf.mxu0 }
 0xdaf   :  { %1984 = vst.msk [vmem:[#allocation3] sm:$0xff] %vm186_vm2, %v1978_v14 }
 0xdb0   :  { %v1980_v17 = vpop.f32.mrf.mxu0 }
 0xdb1   :  { %v1981_v18 = vadd.f32 %v3916_v12, %v1980_v17 }
 0xdb2   :  { %v4214_v19 = vpop.f32.mrf.mxu0 }
 0xdb3   :  { %1985 = vst.msk [vmem:[#allocation3 + $0x8] sm:$0xff] %vm186_vm2, %v1981_v18 }
 0xdb6   :  { %v4931_v20 = vld [vmem:[#allocation3] sm:$0xff] }
 0xdb7   :  { %2158 = vrot.lane.b32.xlu1 %v4931_v20, %s4499_s2  ;;  %1988 = vrot.lane.b32.xlu0 %v4931_v20, %s4498_s24 }
 0xdba   :  { %v4945_v21 = vld [vmem:[#allocation3 + $0x8] sm:$0xff] }
 0xdbb   :  { %2156 = vrot.lane.b32.xlu1 %v4931_v20, %s4502_s27  ;;  %2330 = vrot.lane.b32.xlu0 %v4931_v20, %s4503_s28 }
 0xdbf   :  { %2332 = vrot.lane.b32.xlu1 %v4931_v20, %s4500_s25  ;;  %2504 = vrot.lane.b32.xlu0 %v4931_v20, %s4504_s4 }
 0xdc3   :  { %2506 = vrot.lane.b32.xlu1 %v4931_v20, %s5261_s5  ;;  %2848 = vrot.lane.b32.xlu0 %v4945_v21, %s4499_s2  ;;  %s5263_s2 = smov 48  }
 0xdc7   :  { %3022 = vrot.lane.b32.xlu0 %v4945_v21, %s4500_s25  ;;  %2678 = vrot.lane.b32.xlu1 %v4945_v21, %s4498_s24  ;;  %s5262_s24 = smov 64   ;;  %s5264_s25 = smov 40  }
 0xdcb   :  { %3196 = vrot.lane.b32.xlu0 %v4945_v21, %s5261_s5  ;;  %2846 = vrot.lane.b32.xlu1 %v4945_v21, %s4502_s27  ;;  %s5265_s27 = smov 56  }
 0xdcf   :  { %3020 = vrot.lane.b32.xlu1 %v4945_v21, %s4503_s28  ;;  %s5266_s28 = smov 8  }
 0xdd3   :  { %3194 = vrot.lane.b32.xlu1 %v4945_v21, %s4504_s4  ;;  %s5267_s4 = smov 16  }
 0xe29   :  { %v2159_v22 = vpop.permute.xlu1 %2158  ;;  %v1989_v23 = vpop.permute.xlu0 %1988 }
 0xe2a   :  { %4216 = vmatpush3.xpose.msk.msra.mxu0 %vm193_vm3, %v1989_v23  ;;  %4226 = vmatpush3.xpose.msk.msra.mxu1 %vm193_vm3, %v2159_v22 }
 0xe2b   :  { %4235 = vmatprep.subr.mxu1 %v4496_v15  ;;  %4220 = vmatprep.subr.mxu0 %v4496_v15 }
 0xe2d   :  { %v2157_v41 = vpop.permute.xlu1 %2156  ;;  %4218 = vmatmul.mubr.msk.f32.vlgmr.msra.gmra.mxu0 %vm193_vm3, %v4931_v20  ;;  %v2331_v24 = vpop.permute.xlu0 %2330 }
 0xe2e   :  { %4228 = vmatmul.mubr.msk.f32.vlgmr.msra.gmra.mxu1 %vm193_vm3, %v2157_v41  ;;  %4222 = vmatprep.mubr.msk.f32.mxu0 %vm4497_vm1, %v4496_v15 }
 0xe2f   :  { %4237 = vmatprep.mubr.msk.f32.mxu1 %vm4497_vm1, %v4496_v15 }
 0xe31   :  { %v2333_v25 = vpop.permute.xlu1 %2332  ;;  %v2505_v26 = vpop.permute.xlu0 %2504 }
 0xe32   :  { %4236 = vmatpush3.xpose.msk.msra.mxu1 %vm193_vm3, %v2333_v25 }
 0xe33   :  { %4245 = vmatprep.subr.mxu1 %v4496_v15 }
 0xe35   :  { %v2507_v27 = vpop.permute.xlu1 %2506  ;;  %4238 = vmatmul.mubr.msk.f32.vlgmr.msra.gmra.mxu1 %vm193_vm3, %v2331_v24  ;;  %v2849_v28 = vpop.permute.xlu0 %2848 }
 0xe36   :  { %4246 = vmatpush3.xpose.msk.msra.mxu1 %vm193_vm3, %v2507_v27  ;;  %4247 = vmatprep.mubr.msk.f32.mxu1 %vm4497_vm1, %v4496_v15 }
 0xe37   :  { %4255 = vmatprep.subr.mxu1 %v4496_v15 }
 0xe39   :  { %4248 = vmatmul.mubr.msk.f32.vlgmr.msra.gmra.mxu1 %vm193_vm3, %v2505_v26  ;;  %v2679_v29 = vpop.permute.xlu1 %2678  ;;  %v3023_v33 = vpop.permute.xlu0 %3022 }
 0xe3a   :  { %4256 = vmatpush3.xpose.msk.msra.mxu1 %vm193_vm3, %v2679_v29  ;;  %4257 = vmatprep.mubr.msk.f32.mxu1 %vm4497_vm1, %v4496_v15 }
 0xe3b   :  { %4265 = vmatprep.subr.mxu1 %v4496_v15 }
 0xe3d   :  { %4258 = vmatmul.mubr.msk.f32.vlgmr.msra.gmra.mxu1 %vm193_vm3, %v4945_v21  ;;  %v2847_v30 = vpop.permute.xlu1 %2846  ;;  %v3197_v36 = vpop.permute.xlu0 %3196 }
 0xe3e   :  { %4266 = vmatpush3.xpose.msk.msra.mxu1 %vm193_vm3, %v2849_v28  ;;  %4267 = vmatprep.mubr.msk.f32.mxu1 %vm4497_vm1, %v4496_v15 }
 0xe3f   :  { %4275 = vmatprep.subr.mxu1 %v4496_v15 }
 0xe41   :  { %4268 = vmatmul.mubr.msk.f32.vlgmr.msra.gmra.mxu1 %vm193_vm3, %v2847_v30  ;;  %v3021_v35 = vpop.permute.xlu1 %3020 }
 0xe42   :  { %4276 = vmatpush3.xpose.msk.msra.mxu1 %vm193_vm3, %v3023_v33  ;;  %4277 = vmatprep.mubr.msk.f32.mxu1 %vm4497_vm1, %v4496_v15 }
 0xe43   :  { %4285 = vmatprep.subr.mxu1 %v4496_v15 }
 0xe45   :  { %4278 = vmatmul.mubr.msk.f32.vlgmr.msra.gmra.mxu1 %vm193_vm3, %v3021_v35  ;;  %v3195_v37 = vpop.permute.xlu1 %3194 }
 0xe46   :  { %4286 = vmatpush3.xpose.msk.msra.mxu1 %vm193_vm3, %v3197_v36  ;;  %4287 = vmatprep.mubr.msk.f32.mxu1 %vm4497_vm1, %v4496_v15 }
 0xe47   :  { %4295 = vmatprep.subr.bf16.mxu1 %v4496_v15 }
 0xe49   :  { %4288 = vmatmul.mubr.msk.f32.vlgmr.msra.gmra.mxu1 %vm193_vm3, %v3195_v37 }
 0xe4a   :  { %4299 = vmatprep.mubr.msk.bf16.mxu1 %vm4497_vm1, %v4496_v15 }
 0xeed   :  { %v2060_v38 = vpop.f32.mrf.mxu0 }
 0xeee   :  { %v2064_v39 = vmul.f32 0.35355338, %v2060_v38  ;;  %v2230_v40 = vpop.f32.mrf.mxu1 }
 0xeef   :  { %v2234_v43 = vmul.f32 0.35355338, %v2230_v40  ;;  %v4219_v44 = vpop.f32.mrf.mxu0 }
 0xef0   :  { %v4229_v42 = vpop.f32.mrf.mxu1  ;;  %v2065_v45 = vadd.f32 %v2064_v39, %v4697_v50 }
 0xef1   :  { %v2235_v31 = vadd.f32 %v2234_v43, %v4697_v50 }
 0xef2   :  { %v2066_v46 = vsel %vm193_vm3, %v2065_v45, -inf }
 0xef3   :  { %2067 = vmax.xlane.f32.xlu0 %v2066_v46  ;;  %v2236_v47 = vsel %vm193_vm3, %v2235_v31, -inf }
 0xef4   :  { %2237 = vmax.xlane.f32.xlu1 %v2236_v47 }
 0xef5   :  { %v2404_v32 = vpop.f32.mrf.mxu1 }
 0xef6   :  { %v2408_v49 = vmul.f32 0.35355338, %v2404_v32 }
 0xef7   :  { %v4239_v48 = vpop.f32.mrf.mxu1 }
 0xef8   :  { %v5010_v51 = vadd.f32 %v2408_v49, %v4697_v50 }
 0xef9   :  { %v2578_v52 = vpop.f32.mrf.mxu1 }
 0xefa   :  { %v2582_v53 = vmul.f32 0.35355338, %v2578_v52  ;;  %v2410_v54 = vsel %vm193_vm3, %v5010_v51, -inf }
 0xefb   :  { %v4249_v55 = vpop.f32.mrf.mxu1  ;;  %2411 = vmax.xlane.f32.xlu0 %v2410_v54 }
 0xefc   :  { %v2583_v56 = vadd.f32 %v2582_v53, %v4697_v50 }
 0xefd   :  { %v2750_v57 = vpop.f32.mrf.mxu1 }
 0xefe   :  { %v2754_v58 = vmul.f32 0.35355338, %v2750_v57  ;;  %v2584_v59 = vsel %vm193_vm3, %v2583_v56, -inf }
 0xeff   :  { %v4259_v60 = vpop.f32.mrf.mxu1  ;;  %2585 = vmax.xlane.f32.xlu0 %v2584_v59 }
 0xf00   :  { %v2755_v61 = vadd.f32 %v2754_v58, %v4764_v34 }
 0xf01   :  { %v2920_v62 = vpop.f32.mrf.mxu1 }
 0xf02   :  { %v2924_v63 = vmul.f32 0.35355338, %v2920_v62  ;;  %v2756_v0 = vsel %vm193_vm3, %v2755_v61, -inf }
 0xf03   :  { %v4269_v1 = vpop.f32.mrf.mxu1  ;;  %2757 = vmax.xlane.f32.xlu0 %v2756_v0 }
 0xf04   :  { %v2925_v2 = vadd.f32 %v2924_v63, %v4764_v34 }
 0xf05   :  { %v3094_v3 = vpop.f32.mrf.mxu1 }
 0xf06   :  { %v3098_v4 = vmul.f32 0.35355338, %v3094_v3  ;;  %v2926_v50 = vsel %vm193_vm3, %v2925_v2, -inf }
 0xf07   :  { %2927 = vmax.xlane.f32.xlu1 %v2926_v50  ;;  %v4279_v5 = vpop.f32.mrf.mxu1 }
 0xf08   :  { %v3099_v6 = vadd.f32 %v3098_v4, %v4764_v34 }
 0xf09   :  { %v3268_v7 = vpop.f32.mrf.mxu1 }
 0xf0a   :  { %v3100_v8 = vsel %vm193_vm3, %v3099_v6, -inf  ;;  %v3272_v12 = vmul.f32 0.35355338, %v3268_v7 }
 0xf0b   :  { %v4289_v11 = vpop.f32.mrf.mxu1  ;;  %3101 = vmax.xlane.f32.xlu0 %v3100_v8 }
 0xf0c   :  { %v3273_v13 = vadd.f32 %v3272_v12, %v4764_v34 }
 0xf0e   :  { %v3274_v14 = vsel %vm193_vm3, %v3273_v13, -inf }
 0xf18   :  { %2077 = vrot.lane.b32.xlu1 %v4931_v20, %s5262_s24 }
 0xf3c   :  { %3275 = vmax.xlane.f32.xlu1 %v3274_v14 }
 0xf4d   :  { %2421 = vrot.lane.b32.xlu1 %v4931_v20, %s5263_s2 }
 0xf51   :  { %2595 = vrot.lane.b32.xlu1 %v4931_v20, %s5264_s25 }
 0xf55   :  { %2767 = vrot.lane.b32.xlu1 %v4945_v21, %s5262_s24 }
 0xf7c   :  { %v2068_v16 = vpop.xlane.xlu0 %2067 }
 0xf7d   :  { %v2069_v17 = vsub.f32 %v2065_v45, %v2068_v16  ;;  %v2238_v18 = vpop.xlane.xlu1 %2237 }
 0xf7e   :  { %v2239_v19 = vsub.f32 %v2235_v31, %v2238_v18 }
 0xf7f   :  { %v2070_v22 = vmul.f32 1.442695, %v2069_v17 }
 0xf80   :  { %v2240_v23 = vmul.f32 1.442695, %v2239_v19 }
 0xf81   :  { %4428 = vpow2.f32 %v2070_v22 }
 0xf82   :  { %4430 = vpow2.f32 %v2240_v23 }
 0xf84   :  { %v2412_v34 = vpop.xlane.xlu0 %2411 }
 0xf85   :  { %v2413_v37 = vsub.f32 %v5010_v51, %v2412_v34 }
 0xf87   :  { %v2414_v39 = vmul.f32 1.442695, %v2413_v37 }
 0xf88   :  { %v2586_v41 = vpop.xlane.xlu0 %2585 }
 0xf89   :  { %v2587_v24 = vsub.f32 %v2583_v56, %v2586_v41 }
 0xf8b   :  { %v2588_v25 = vmul.f32 1.442695, %v2587_v24 }
 0xf8c   :  { %v2758_v38 = vpop.xlane.xlu0 %2757 }
 0xf8d   :  { %4432 = vpow2.f32 %v2588_v25  ;;  %v2759_v40 = vsub.f32 %v2755_v61, %v2758_v38 }
 0xf8e   :  { %v4429_v26 = vpop.eup %4428  ;;  %4434 = vpow2.f32 %v2414_v39  ;;  %v4368_v39 = vld [vmem:[%s5218_s6 + $0x18] sm:$0xff]  }
 0xf8f   :  { %v5032_v27 = vpop.eup %4430  ;;  %v2072_v28 = vsel %vm193_vm3, %v4429_v26, 0.0  ;;  %v2760_v44 = vmul.f32 1.442695, %v2759_v40  ;;  %4296 = vmatpush3.bf16.msra.mxu1 %v4368_v39 }
 0xf90   :  { %v2928_v29 = vpop.xlane.xlu1 %2927  ;;  %2073 = vadd.xlane.f32.xlu0 %v2072_v28  ;;  %v2242_v30 = vsel %vm193_vm3, %v5032_v27, 0.0  ;;  %4297 = vmatprep.subr.bf16.mxu1 %v4496_v15 }
 0xf91   :  { %2243 = vadd.xlane.f32.xlu1 %v2242_v30  ;;  %4436 = vpow2.f32 %v2760_v44  ;;  %v2929_v45 = vsub.f32 %v2925_v2, %v2928_v29 }
 0xf93   :  { %v2930_v46 = vmul.f32 1.442695, %v2929_v45 }
 0xf94   :  { %v2078_v33 = vpop.permute.xlu1 %2077  ;;  %v3102_v43 = vpop.xlane.xlu0 %3101 }
 0xf95   :  { %4221 = vmatpush3.msra.mxu0 %v2078_v33  ;;  %v3103_v42 = vsub.f32 %v3099_v6, %v3102_v43  ;;  %v4369_v43 = vld [vmem:[%s5218_s6 + $0x10] sm:$0xff]  }
 0xf96   :  { %4230 = vmatprep.subr.mxu0 %v4496_v15  ;;  %4298 = vmatpush3.bf16.msra.mxu1 %v4369_v43 }
 0xf97   :  { %v3104_v31 = vmul.f32 1.442695, %v3103_v42  ;;  %4311 = vmatprep.subr.bf16.mxu1 %v4496_v15 }
 0xf99   :  { %4438 = vpow2.f32 %v3104_v31 }
 0xf9a   :  { %v5038_v35 = vpop.eup %4432  ;;  %4440 = vpow2.f32 %v2930_v46 }
 0xf9b   :  { %v2590_v36 = vsel %vm193_vm3, %v5038_v35, 0.0  ;;  %v4435_v47 = vpop.eup %4434 }
 0xf9c   :  { %2591 = vadd.xlane.f32.xlu1 %v2590_v36 }
 0xf9e   :  { %v5048_v32 = vpop.eup %4436 }
 0xf9f   :  { %v2762_v52 = vsel %vm193_vm3, %v5048_v32, 0.0 }
 0xfa6   :  { %2247 = vrot.lane.b32.xlu0 %v4931_v20, %s5265_s27  ;;  %v2416_v20 = vsel %vm193_vm3, %v4435_v47, 0.0  ;;  %v5052_v53 = vpop.eup %4438 }
 0xfa7   :  { %v3106_v54 = vsel %vm193_vm3, %v5052_v53, 0.0  ;;  %v4441_v55 = vpop.eup %4440 }
 0xfa8   :  { %v2932_v56 = vsel %vm193_vm3, %v4441_v55, 0.0 }
 0xfad   :  { %2937 = vrot.lane.b32.xlu1 %v4945_v21, %s5265_s27 }
 0xfc5   :  { %v3276_v49 = vpop.xlane.xlu1 %3275  ;;  %2417 = vadd.xlane.f32.xlu0 %v2416_v20 }
 0xfc6   :  { %v3277_v48 = vsub.f32 %v3273_v13, %v3276_v49 }
 0xfc8   :  { %v3278_v51 = vmul.f32 1.442695, %v3277_v48 }
 0xfc9   :  { %2763 = vadd.xlane.f32.xlu0 %v2762_v52  ;;  %v2422_v59 = vpop.permute.xlu1 %2421 }
 0xfca   :  { %4442 = vpow2.f32 %v3278_v51 }
 0xfcd   :  { %3107 = vadd.xlane.f32.xlu0 %v3106_v54  ;;  %v2596_v60 = vpop.permute.xlu1 %2595 }
 0xfd1   :  { %2933 = vadd.xlane.f32.xlu1 %v2932_v56  ;;  %v2768_v61 = vpop.permute.xlu1 %2767  ;;  %v3949_v56 = vld [vmem:[%s5219_s7 + $0x1] ss:$0 sm:$0xff] }
 0xfd7   :  { %v5057_v57 = vpop.eup %4442 }
 0xfd8   :  { %v3280_v58 = vsel %vm193_vm3, %v5057_v57, 0.0 }
 0xfd9   :  { %3281 = vadd.xlane.f32.xlu0 %v3280_v58 }
 0xfe2   :  { %3285 = vrot.lane.b32.xlu1 %v4945_v21, %s5264_s25 }
 0xfef   :  { %3111 = vrot.lane.b32.xlu0 %v4945_v21, %s5263_s2 }
0x1019   :  { %v2074_v62 = vpop.xlane.xlu0 %2073 }
0x101a   :  { %4444 = vrcp.f32 %v2074_v62  ;;  %v2244_v63 = vpop.xlane.xlu1 %2243 }
0x101b   :  { %4446 = vrcp.f32 %v2244_v63 }
0x101d   :  { %v2248_v3 = vpop.permute.xlu0 %2247 }
0x1025   :  { %v2592_v4 = vpop.xlane.xlu1 %2591 }
0x1027   :  { %v4445_v0 = vpop.eup %4444 }
0x1028   :  { %v2076_v1 = vmul.f32 %v4445_v0, %v4429_v26  ;;  %v4447_v2 = vpop.eup %4446 }
0x1029   :  { %v2246_v21 = vmul.f32 %v4447_v2, %v5032_v27  ;;  %v2938_v6 = vpop.permute.xlu1 %2937 }
0x102a   :  { %4223 = vmatmul.mubr.msk.f32.vlgmr.msra.gmra.mxu0 %vm193_vm3, %v2076_v1 }
0x102b   :  { %4231 = vmatpush3.msra.mxu0 %v2248_v3  ;;  %4232 = vmatprep.mubr.msk.f32.mxu0 %vm4497_vm1, %v4496_v15 }
0x102c   :  { %4240 = vmatprep.subr.mxu0 %v4496_v15 }
0x102e   :  { %4233 = vmatmul.mubr.msk.f32.vlgmr.msra.gmra.mxu0 %vm193_vm3, %v2246_v21 }
0x102f   :  { %4241 = vmatpush3.msra.mxu0 %v2422_v59  ;;  %4242 = vmatprep.mubr.msk.f32.mxu0 %vm4497_vm1, %v4496_v15 }
0x1030   :  { %4250 = vmatprep.subr.mxu0 %v4496_v15 }
0x104e   :  { %v2418_v50 = vpop.xlane.xlu0 %2417 }
0x104f   :  { %4448 = vrcp.f32 %v2418_v50 }
0x1050   :  { %4450 = vrcp.f32 %v2592_v4 }
0x1052   :  { %v2764_v5 = vpop.xlane.xlu0 %2763 }
0x1053   :  { %4452 = vrcp.f32 %v2764_v5 }
0x1056   :  { %v3108_v7 = vpop.xlane.xlu0 %3107 }
0x105a   :  { %v2934_v8 = vpop.xlane.xlu1 %2933 }
0x105b   :  { %4454 = vrcp.f32 %v2934_v8 }
0x105c   :  { %v4449_v11 = vpop.eup %4448  ;;  %4456 = vrcp.f32 %v3108_v7 }
0x105d   :  { %v2420_v12 = vmul.f32 %v4449_v11, %v4435_v47  ;;  %v4451_v13 = vpop.eup %4450 }
0x105e   :  { %v2594_v14 = vmul.f32 %v4451_v13, %v5038_v35  ;;  %v3286_v24 = vpop.permute.xlu1 %3285 }
0x105f   :  { %4243 = vmatmul.mubr.msk.f32.vlgmr.msra.gmra.mxu0 %vm193_vm3, %v2420_v12  ;;  %v4371_v12 = vld [vmem:[%s5222_s10 + $0x10] sm:$0xff]  }
0x1060   :  { %4251 = vmatpush3.msra.mxu0 %v2596_v60  ;;  %4252 = vmatprep.mubr.msk.f32.mxu0 %vm4497_vm1, %v4496_v15  ;;  %v4453_v16 = vpop.eup %4452 }
0x1061   :  { %4260 = vmatprep.subr.mxu0 %v4496_v15  ;;  %v2766_v18 = vmul.f32 %v4453_v16, %v5048_v32 }
0x1062   :  { %v3282_v17 = vpop.xlane.xlu0 %3281 }
0x1063   :  { %4458 = vrcp.f32 %v3282_v17  ;;  %4253 = vmatmul.mubr.msk.f32.vlgmr.msra.gmra.mxu0 %vm193_vm3, %v2594_v14 }
0x1064   :  { %4261 = vmatpush3.msra.mxu0 %v2768_v61  ;;  %4262 = vmatprep.mubr.msk.f32.mxu0 %vm4497_vm1, %v4496_v15 }
0x1065   :  { %4270 = vmatprep.subr.mxu0 %v4496_v15 }
0x1066   :  { %v3112_v34 = vpop.permute.xlu0 %3111 }
0x1067   :  { %4263 = vmatmul.mubr.msk.f32.vlgmr.msra.gmra.mxu0 %vm193_vm3, %v2766_v18 }
0x1068   :  { %v4455_v19 = vpop.eup %4454  ;;  %4271 = vmatpush3.msra.mxu0 %v2938_v6  ;;  %4272 = vmatprep.mubr.msk.f32.mxu0 %vm4497_vm1, %v4496_v15 }
0x1069   :  { %4280 = vmatprep.subr.mxu0 %v4496_v15  ;;  %v2936_v22 = vmul.f32 %v4455_v19, %v4441_v55  ;;  %v4457_v23 = vpop.eup %4456 }
0x106a   :  { %v3110_v41 = vmul.f32 %v4457_v23, %v5052_v53 }
0x106b   :  { %4273 = vmatmul.mubr.msk.f32.vlgmr.msra.gmra.mxu0 %vm193_vm3, %v2936_v22 }
0x106c   :  { %4281 = vmatpush3.msra.mxu0 %v3112_v34  ;;  %4282 = vmatprep.mubr.msk.f32.mxu0 %vm4497_vm1, %v4496_v15  ;;  %v3955_v34 = vld [vmem:[%s5220_s8 + $0x1] ss:$0 sm:$0xff] }
0x106d   :  { %4290 = vmatprep.subr.mxu0 %v4496_v15 }
0x106f   :  { %4283 = vmatmul.mubr.msk.f32.vlgmr.msra.gmra.mxu0 %vm193_vm3, %v3110_v41 }
0x1070   :  { %v4459_v25 = vpop.eup %4458  ;;  %4291 = vmatpush3.msra.mxu0 %v3286_v24  ;;  %4292 = vmatprep.mubr.msk.f32.mxu0 %vm4497_vm1, %v4496_v15 }
0x1071   :  { %v3284_v26 = vmul.f32 %v4459_v25, %v5057_v57  ;;  %4303 = vmatprep.subr.bf16.mxu0 %v4496_v15 }
0x1073   :  { %4293 = vmatmul.mubr.msk.f32.vlgmr.msra.gmra.mxu0 %vm193_vm3, %v3284_v26  ;;  %v3956_v26 = vld [vmem:[%s5221_s9 + $0x1] ss:$0 sm:$0xff] }
0x1074   :  { %4307 = vmatprep.mubr.msk.bf16.mxu0 %vm4497_vm1, %v4496_v15 }
0x10ea   :  { %v2149_v27 = vpop.f32.mrf.mxu0 }
0x10eb   :  { %2153 = vst.msk [vmem:[#allocation2] sm:$0xff] %vm193_vm3, %v2149_v27 }
0x10ec   :  { %v4224_v28 = vpop.f32.mrf.mxu0 }
0x10ee   :  { %v2319_v29 = vpop.f32.mrf.mxu0 }
0x10ef   :  { %2324 = vrot.lane.b32.xlu0 %v2319_v29, %s5266_s28 }
0x10f0   :  { %v4234_v30 = vpop.f32.mrf.mxu0 }
0x111f   :  { %v2493_v33 = vpop.f32.mrf.mxu0 }
0x1120   :  { %2498 = vrot.lane.b32.xlu0 %v2493_v33, %s5267_s4  ;;  %v4372_v33 = vld [vmem:[%s5224_s12 + $0x38] sm:$0xff]  }
0x1121   :  { %v4244_v35 = vpop.f32.mrf.mxu0 }
0x1122   :  { %v4373_v35 = vld [vmem:[%s5224_s12 + $0x30] sm:$0xff]  }
0x1123   :  { %v2667_v36 = vpop.f32.mrf.mxu0 }
0x1124   :  { %2672 = vrot.lane.b32.xlu0 %v2667_v36, %s5268_s23  ;;  %v4374_v36 = vld [vmem:[%s5224_s12 + $0x28] sm:$0xff]  }
0x1125   :  { %v4254_v37 = vpop.f32.mrf.mxu0 }
0x1126   :  { %v4375_v37 = vld [vmem:[%s5224_s12 + $0x20] sm:$0xff]  }
0x1127   :  { %v2839_v38 = vpop.f32.mrf.mxu0 }
0x1128   :  { %2843 = vst.msk [vmem:[#allocation2 + $0x8] sm:$0xff] %vm193_vm3, %v2839_v38  ;;  %v3962_v38 = vld [vmem:[%s5223_s11 + $0x1] ss:$0 sm:$0xff] }
0x1129   :  { %v4264_v40 = vpop.f32.mrf.mxu0 }
0x112b   :  { %v3009_v44 = vpop.f32.mrf.mxu0 }
0x112c   :  { %3014 = vrot.lane.b32.xlu1 %v3009_v44, %s5266_s28 }
0x112d   :  { %v4274_v42 = vpop.f32.mrf.mxu0 }
0x112f   :  { %v3183_v45 = vpop.f32.mrf.mxu0 }
0x1130   :  { %3188 = vrot.lane.b32.xlu1 %v3183_v45, %s5267_s4 }
0x1131   :  { %v4284_v31 = vpop.f32.mrf.mxu0 }
0x1133   :  { %v3357_v46 = vpop.f32.mrf.mxu0 }
0x1134   :  { %3362 = vrot.lane.b32.xlu1 %v3357_v46, %s5268_s23 }
0x1135   :  { %v4294_v47 = vpop.f32.mrf.mxu0 }
0x1161   :  { %v2325_v20 = vpop.permute.xlu0 %2324 }
0x1162   :  { %2327 = vst.msk [vmem:[#allocation2] sm:$0xff] %vm535_vm4, %v2325_v20 }
0x1192   :  { %v2499_v32 = vpop.permute.xlu0 %2498 }
0x1193   :  { %2501 = vst.msk [vmem:[#allocation2] sm:$0xff] %vm710_vm5, %v2499_v32 }
0x1196   :  { %v2673_v49 = vpop.permute.xlu0 %2672 }
0x1197   :  { %2675 = vst.msk [vmem:[#allocation2] sm:$0xff] %vm885_vm6, %v2673_v49 }
0x119e   :  { %v3015_v48 = vpop.permute.xlu1 %3014  ;;  %v3366_v53 = vld [vmem:[#allocation2] sm:$0xff] }
0x119f   :  { %3017 = vst.msk [vmem:[#allocation2 + $0x8] sm:$0xff] %vm535_vm4, %v3015_v48 }
0x11a2   :  { %v3189_v51 = vpop.permute.xlu1 %3188 }
0x11a3   :  { %3191 = vst.msk [vmem:[#allocation2 + $0x8] sm:$0xff] %vm710_vm5, %v3189_v51 }
0x11a6   :  { %v3363_v52 = vpop.permute.xlu1 %3362 }
0x11a7   :  { %3365 = vst.msk [vmem:[#allocation2 + $0x8] sm:$0xff] %vm885_vm6, %v3363_v52 }
0x11ae   :  { %v3367_v54 = vld [vmem:[#allocation2 + $0x8] sm:$0xff] }
0x11af   :  { %v3375_v55 = vpack.c.bf16 %v3367_v54, %v3366_v53 }
0x11b1   :  { %4300 = vmatmul.mubr.msk.bf16.vlgmr.msra.gmra.mxu1 %vm71_vm0, %v3375_v55 }
0x11b2   :  { %4319 = vmatprep.mubr.msk.bf16.mxu1 %vm4497_vm1, %v4496_v15  ;;  %4312 = vmatpush3.bf16.msra.mxu1 %v4372_v33 }
0x11b3   :  { %4313 = vmatprep.subr.bf16.mxu1 %v4496_v15 }
0x11b6   :  { %4314 = vmatpush3.bf16.msra.mxu1 %v4373_v35 }
0x11b7   :  { %4315 = vmatprep.subr.bf16.mxu1 %v4496_v15 }
0x11ba   :  { %4316 = vmatpush3.bf16.msra.mxu1 %v4374_v36 }
0x11bb   :  { %4317 = vmatprep.subr.bf16.mxu1 %v4496_v15 }
0x11be   :  { %4318 = vmatpush3.bf16.msra.mxu1 %v4375_v37 }
0x1271   :  { %v3431_v57 = vpop.f32.mrf.mxu1 }
0x1272   :  { %v3432_v58 = vadd.f32 %v3949_v56, %v3431_v57 }
0x1273   :  { %v4301_v59 = vpop.f32.mrf.mxu1 }
0x1274   :  { %v3438_v60 = vadd.f32 %v3432_v58, %v4917_v9 }
0x1275   :  { %v3434_v61 = vpop.f32.mrf.mxu1 }
0x1276   :  { %v3435_v62 = vadd.f32 %v3949_v56, %v3434_v61  ;;  %v3444_v63 = vsel %vm71_vm0, %v3438_v60, 0.0 }
0x1277   :  { %3445 = vadd.xlane.f32.xlu0 %v3444_v63  ;;  %v4302_v0 = vpop.f32.mrf.mxu1  ;;  %v3975_v63 = vld [vmem:[%s5225_s13 + $0x1] ss:$0 sm:$0xff] }
0x1278   :  { %v3439_v1 = vadd.f32 %v3435_v62, %v4919_v10  ;;  %v4370_v10 = vld [vmem:[%s5222_s10 + $0x18] sm:$0xff]  }
0x1279   :  { %4304 = vmatpush3.bf16.msra.mxu0 %v4370_v10 }
0x127a   :  { %v3447_v2 = vsel %vm71_vm0, %v3439_v1, 0.0  ;;  %4305 = vmatprep.subr.bf16.mxu0 %v4496_v15 }
0x127b   :  { %3448 = vadd.xlane.f32.xlu1 %v3447_v2 }
0x127d   :  { %4306 = vmatpush3.bf16.msra.mxu0 %v4371_v12 }
0x127e   :  { %4323 = vmatprep.subr.bf16.mxu0 %v4496_v15 }
0x1300   :  { %v3446_v3 = vpop.xlane.xlu0 %3445 }
0x1301   :  { %v3450_v21 = vmul.f32 0.03125, %v3446_v3 }
0x1303   :  { %v3452_v4 = vsub.f32 %v3438_v60, %v3450_v21 }
0x1304   :  { %v3449_v50 = vpop.xlane.xlu1 %3448 }
0x1305   :  { %v3451_v5 = vmul.f32 0.03125, %v3449_v50  ;;  %v3454_v6 = vmul.f32 %v3452_v4, %v3452_v4 }
0x1307   :  { %v3453_v7 = vsub.f32 %v3439_v1, %v3451_v5  ;;  %v3456_v9 = vsel %vm71_vm0, %v3454_v6, 0.0 }
0x1308   :  { %3457 = vadd.xlane.f32.xlu0 %v3456_v9 }
0x1309   :  { %v3455_v8 = vmul.f32 %v3453_v7, %v3453_v7 }
0x130b   :  { %v3459_v11 = vsel %vm71_vm0, %v3455_v8, 0.0 }
0x130c   :  { %3460 = vadd.xlane.f32.xlu0 %v3459_v11 }
0x1391   :  { %v3458_v13 = vpop.xlane.xlu0 %3457 }
0x1392   :  { %v3462_v14 = vmul.f32 0.03125, %v3458_v13 }
0x1394   :  { %v3464_v16 = vadd.f32 1e-12, %v3462_v14 }
0x1395   :  { %v3461_v17 = vpop.xlane.xlu0 %3460 }
0x1396   :  { %4460 = vrsqrt.f32 %v3464_v16  ;;  %v3463_v18 = vmul.f32 0.03125, %v3461_v17 }
0x1398   :  { %v3465_v19 = vadd.f32 1e-12, %v3463_v18 }
0x139a   :  { %4462 = vrsqrt.f32 %v3465_v19  ;;  %v4376_v19 = vld [vmem:[%s5228_s16 + $0x8] sm:$0xff]  }
0x13a3   :  { %v4461_v22 = vpop.eup %4460 }
0x13a4   :  { %v3468_v23 = vmul.f32 %v4461_v22, %v3452_v4  ;;  %v4377_v22 = vld [vmem:[%s5228_s16] sm:$0xff]  }
0x13a6   :  { %v3476_v25 = vmul.f32 %v3955_v34, %v3468_v23 }
0x13a7   :  { %v4463_v41 = vpop.eup %4462 }
0x13a8   :  { %v3469_v24 = vmul.f32 %v4463_v41, %v3453_v7  ;;  %v3484_v28 = vadd.f32 %v3956_v26, %v3476_v25 }
0x13aa   :  { %v3477_v27 = vmul.f32 %v3955_v34, %v3469_v24 }
0x13ac   :  { %v3485_v29 = vadd.f32 %v3956_v26, %v3477_v27 }
0x13ae   :  { %v3493_v30 = vpack.c.bf16 %v3485_v29, %v3484_v28 }
0x13b0   :  { %4308 = vmatmul.mubr.msk.bf16.vlgmr.msra.gmra.mxu0 %vm71_vm0, %v3493_v30  ;;  %v3984_v30 = vld [vmem:[%s5227_s15 + $0x1] ss:$0 sm:$0xff] }
0x13b1   :  { %4327 = vmatprep.mubr.msk.bf16.mxu0 %vm4497_vm1, %v4496_v15  ;;  %4324 = vmatpush3.bf16.msra.mxu0 %v4376_v19 }
0x13b2   :  { %4325 = vmatprep.subr.bf16.mxu0 %v4496_v15 }
0x13b5   :  { %4326 = vmatpush3.bf16.msra.mxu0 %v4377_v22 }
0x13b6   :  { %4331 = vmatprep.subr.bf16.mxu0 %v4496_v15 }
0x1470   :  { %v3549_v39 = vpop.f32.mrf.mxu0 }
0x1471   :  { %v3550_v40 = vadd.f32 %v3962_v38, %v3549_v39 }
0x1472   :  { %v4309_v43 = vpop.f32.mrf.mxu0 }
0x1473   :  { %v3558_v44 = vmul.f32 0.044715, %v3550_v40  ;;  %v3556_v57 = vmul.f32 0.5, %v3550_v40 }
0x1474   :  { %v3552_v42 = vpop.f32.mrf.mxu0 }
0x1475   :  { %v3560_v45 = vmul.f32 %v3558_v44, %v3550_v40  ;;  %v3553_v31 = vadd.f32 %v3962_v38, %v3552_v42  ;;  %v4378_v44 = vld [vmem:[%s5230_s18 + $0x8] sm:$0xff]   ;;  %v4379_v42 = vld [vmem:[%s5230_s18] sm:$0xff]   ;;  %s4512_s18 = smov [#allocation4]  }
0x1476   :  { %v4310_v46 = vpop.f32.mrf.mxu0  ;;  %s3855_s27 = sshll.u32 %s4512_s18, 4  ;;  %s3856_s27 = int_to_ptr.vmem [resolvable:$true] %s3855_s27 }
0x1477   :  { %v3562_v47 = vmul.f32 %v3560_v45, %v3550_v40  ;;  %v3559_v20 = vmul.f32 0.044715, %v3553_v31  ;;  %v3557_v58 = vmul.f32 0.5, %v3553_v31  ;;  %v3985_v45 = vld [vmem:[%s5229_s17] ss:$0 sm:$0xff]  ;;  %s4474_s17 = scalar_lea.vmem %s3856_s27, 32  ;;  %p4479_p1 = scmp.lt.s32.totalorder %s3856_s27, %s3856_s27 }
0x1478   :  { %p4475_p0 = scmp.ne.s32.totalorder %s3856_s27, %s4474_s17  ;;  %p4480_p2 = scmp.lt.s32.totalorder %s4474_s17, %s4474_s17 }
0x1479   :  { %v3564_v32 = vadd.f32 %v3562_v47, %v3550_v40  ;;  %v3561_v49 = vmul.f32 %v3559_v20, %v3553_v31 }
0x147a   :  { %p4481_p3 = por %p4480_p2, %p4479_p1 }
0x147b   :  { %v3566_v48 = vmul.f32 0.7978846, %v3564_v32  ;;  %v3563_v51 = vmul.f32 %v3561_v49, %v3553_v31 }
0x147c   :  { %p4482_p4 = pnand %p4481_p3, %p4475_p0 }
0x147d   :  { %4464 = vtanh.f32 %v3566_v48  ;;  %v3565_v52 = vadd.f32 %v3563_v51, %v3553_v31 }
0x147f   :  { %v3567_v53 = vmul.f32 0.7978846, %v3565_v52 }
0x1481   :  { %4466 = vtanh.f32 %v3567_v53 }
0x148a   :  { %v4465_v54 = vpop.eup %4464 }
0x148b   :  { %v3570_v55 = vadd.f32 1.0, %v4465_v54 }
0x148d   :  { %v3572_v60 = vmul.f32 %v3570_v55, %v3556_v57 }
0x148e   :  { %v4467_v56 = vpop.eup %4466 }
0x148f   :  { %v3571_v59 = vadd.f32 1.0, %v4467_v56 }
0x1491   :  { %v3573_v61 = vmul.f32 %v3571_v59, %v3557_v58 }
0x1493   :  { %v3585_v62 = vpack.c.bf16 %v3573_v61, %v3572_v60 }
0x1495   :  { %4320 = vmatmul.mubr.msk.bf16.vlgmr.msra.gmra.mxu1 %vm1823_vm7, %v3585_v62 }
0x1555   :  { %v3653_v0 = vpop.f32.mrf.mxu1 }
0x1556   :  { %v3654_v1 = vadd.f32 %v3975_v63, %v3653_v0 }
0x1557   :  { %v4321_v2 = vpop.f32.mrf.mxu1 }
0x1558   :  { %v3660_v3 = vadd.f32 %v3654_v1, %v3484_v28  ;;  %v3983_v28 = vld [vmem:[%s5226_s14 + $0x1] ss:$0 sm:$0xff] }
0x1559   :  { %v3656_v21 = vpop.f32.mrf.mxu1 }
0x155a   :  { %v3657_v4 = vadd.f32 %v3975_v63, %v3656_v21  ;;  %v3666_v50 = vsel %vm71_vm0, %v3660_v3, 0.0 }
0x155b   :  { %3667 = vadd.xlane.f32.xlu0 %v3666_v50  ;;  %v4322_v5 = vpop.f32.mrf.mxu1 }
0x155c   :  { %v3661_v6 = vadd.f32 %v3657_v4, %v3485_v29 }
0x155e   :  { %v3669_v7 = vsel %vm71_vm0, %v3661_v6, 0.0 }
0x155f   :  { %3670 = vadd.xlane.f32.xlu1 %v3669_v7 }
0x15e4   :  { %v3668_v9 = vpop.xlane.xlu0 %3667 }
0x15e5   :  { %v3672_v8 = vmul.f32 0.03125, %v3668_v9 }
0x15e7   :  { %v3674_v11 = vsub.f32 %v3660_v3, %v3672_v8 }
0x15e8   :  { %v3671_v10 = vpop.xlane.xlu1 %3670 }
0x15e9   :  { %v3673_v12 = vmul.f32 0.03125, %v3671_v10  ;;  %v3676_v13 = vmul.f32 %v3674_v11, %v3674_v11 }
0x15eb   :  { %v3675_v14 = vsub.f32 %v3661_v6, %v3673_v12  ;;  %v3678_v16 = vsel %vm71_vm0, %v3676_v13, 0.0 }
0x15ec   :  { %3679 = vadd.xlane.f32.xlu0 %v3678_v16 }
0x15ed   :  { %v3677_v17 = vmul.f32 %v3675_v14, %v3675_v14 }
0x15ef   :  { %v3681_v18 = vsel %vm71_vm0, %v3677_v17, 0.0 }
0x15f0   :  { %3682 = vadd.xlane.f32.xlu1 %v3681_v18 }
0x1675   :  { %v3680_v23 = vpop.xlane.xlu0 %3679 }
0x1676   :  { %v3684_v34 = vmul.f32 0.03125, %v3680_v23 }
0x1678   :  { %v3686_v41 = vadd.f32 1e-12, %v3684_v34 }
0x1679   :  { %v3683_v24 = vpop.xlane.xlu1 %3682 }
0x167a   :  { %4468 = vrsqrt.f32 %v3686_v41  ;;  %v3685_v25 = vmul.f32 0.03125, %v3683_v24 }
0x167c   :  { %v3687_v26 = vadd.f32 1e-12, %v3685_v25 }
0x167e   :  { %4470 = vrsqrt.f32 %v3687_v26 }
0x1687   :  { %v4469_v27 = vpop.eup %4468 }
0x1688   :  { %v3690_v29 = vmul.f32 %v4469_v27, %v3674_v11 }
0x168a   :  { %v3698_v33 = vmul.f32 %v3983_v28, %v3690_v29 }
0x168b   :  { %v4471_v35 = vpop.eup %4470 }
0x168c   :  { %v3706_v36 = vadd.f32 %v3984_v30, %v3698_v33  ;;  %v3691_v37 = vmul.f32 %v4471_v35, %v3675_v14 }
0x168e   :  { %3709 = vst.msk [vmem:[#allocation2] sm:$0x1] %vm3708_vm8, %v3706_v36  ;;  %v3699_v38 = vmul.f32 %v3983_v28, %v3691_v37 }
0x1690   :  { %v3707_v39 = vadd.f32 %v3984_v30, %v3699_v38 }
0x1692   :  { %3710 = vst.msk [vmem:[#allocation2 + $0x1] sm:$0x1] %vm3708_vm8, %v3707_v39 }
0x1699   :  { %v3711_v40 = vld [vmem:[#allocation2] sm:$0x3] }
0x169a   :  { %v3717_v43 = vpack.c.bf16 %v3711_v40, %v3711_v40 }
0x169c   :  { %4328 = vmatmul.mubr.msk.bf16.vlgmr.msra.gmra.mxu0 %vm71_vm0, %v3717_v43 }
0x169d   :  { %4335 = vmatprep.mubr.msk.bf16.mxu0 %vm4497_vm1, %v4496_v15  ;;  %4332 = vmatpush3.bf16.msra.mxu0 %v4378_v44 }
0x169e   :  { %4333 = vmatprep.subr.bf16.mxu0 %v4496_v15  ;;  %v3989_v15 = vld [vmem:[%s5231_s19] ss:$0 sm:$0xff] }
0x16a1   :  { %4334 = vmatpush3.bf16.msra.mxu0 %v4379_v42 }
0x175c   :  { %v3773_v31 = vpop.f32.mrf.mxu0 }
0x175d   :  { %v3774_v46 = vadd.f32 %v3985_v45, %v3773_v31 }
0x175e   :  { %v4329_v47 = vpop.f32.mrf.mxu0 }
0x175f   :  { %4472 = vtanh.f32 %v3774_v46 }
0x1760   :  { %v3776_v20 = vpop.f32.mrf.mxu0 }
0x1762   :  { %v4330_v32 = vpop.f32.mrf.mxu0 }
0x176c   :  { %v4473_v49 = vpop.eup %4472 }
0x176d   :  { %v3785_v48 = vpack.c.bf16 %v4473_v49, %v4473_v49 }
0x176f   :  { %4336 = vmatmul.mubr.msk.bf16.vlgmr.msra.gmra.mxu0 %vm71_vm0, %v3785_v48 }
0x182f   :  { %v3841_v51 = vpop.f32.mrf.mxu0 }
0x1830   :  { %v3842_v52 = vadd.f32 %v3989_v15, %v3841_v51 }
0x1831   :  { %v4337_v53 = vpop.f32.mrf.mxu0 }
0x1832   :  { %3848 = vst.msk [vmem:[#allocation4] sm:$0x3] %vm3847_vm9, %v3842_v52 }
0x1833   :  { %v3844_v54 = vpop.f32.mrf.mxu0 }
0x1834   :  { %4485 = shalt.err (!%p4482_p4)
}
0x1835   :  { %3858 = dma.vmem_to_hbm [thread:$0]  %s3856_s27, 32, %s5232_s20, [#allocation5]   ;;  %v4338_v55 = vpop.f32.mrf.mxu0 }
0x1836   :  { %4494 = dma.done.wait [#allocation5], 32  }
0x1837   :  { %4495 = vsyncadd [#allocation5], 4294967264 }
0x1838   :  { %3862 = vsyncpa [#allocation5], 1 }

</bundles_post_ra>
